<compile_context>
chip_gen: v7x
topology: tpu7x:2x2x1
jax: 0.10.0
libtpu: 0.0.40
codegen_flags: <defaults>
</compile_context>

<pallas_src>
import functools

import numpy as np
import jax
import jax.numpy as jnp
from jax.experimental import pallas as pl
from jax.experimental.pallas import tpu as pltpu

LEAKY_SLOPE = 0.01          # F.leaky_relu default
BN_EPS = 1e-5               # nn.BatchNorm default eps
CONV_K = 4
CONV_STRIDE = 2
N_CONV = 4
VMEM = pltpu.MemorySpace.VMEM

# Row layout of the packed f32 vector table (assumes 4 convs + 2 BatchNorm2d):
ROW_CB = 0      # rows 0..3   : conv biases, tiled per (w, c) column, width wo*cout
ROW_BN2D = 4    # rows 4..7   : bn2d gamma0, beta0, gamma1, beta1 (width C)
ROW_FCB = 8     # rows 8..    : fc biases, then bn1d gammas, bn1d betas, out bias


def _dot(a, b):
    """MXU matmul: bf16 operands, f32 accumulation.  Shared by kernel and ref."""
    return jnp.dot(a.astype(jnp.bfloat16), b.astype(jnp.bfloat16),
                   preferred_element_type=jnp.float32)


def _pool_lanes(row, wo, c):
    """Sum wo contiguous lane chunks of width c: (1, wo*c) -> (1, c).  Exact f32,
    off the MXU (replaces v1's 0/1 pooling matmul)."""
    acc = row[:, :c]
    for w in range(1, wo):
        acc = acc + row[:, w * c:(w + 1) * c]
    return acc


def _rep_lanes(x, wo):
    """Repeat a per-channel (1, C) row wo times along lanes -> (1, wo*C)."""
    if wo == 1:
        return x
    return jnp.concatenate([x] * wo, axis=1)


# ----------------------------- fused Pallas kernel --------------------------

def gc_critic_kernel(y0_ref, act_ref, r_ref, t0_ref, t1_ref, t2_ref, t3_ref,
                     vec_ref, fcw_ref, o_ref,
                     *, conv_cfg, batch, enc_dim, n_mlp):
    """Whole GC_Critic forward; every intermediate stays in VMEM."""
    t_refs = (t0_ref, t1_ref, t2_ref, t3_ref)
    row_fcb = ROW_FCB
    row_bn1g = ROW_FCB + n_mlp
    row_bn1b = ROW_FCB + 2 * n_mlp
    row_outb = ROW_FCB + 3 * n_mlp

    # ---- GC_Encoder: 4 stride-2 convs as sums of (row-select @ Y) @ T_i ----
    y_bf = y0_ref[...]                                    # (B*H0, W0*C0) bf16
    for li, (bho, bhi, wcin, wcout, wo, cout, bn_slot) in enumerate(conv_cfg):
        t_ref = t_refs[li]
        z = None
        for i in range(CONV_K):                           # static unroll (4 taps)
            rows = _dot(r_ref[CONV_K * li + i, :bho, :bhi], y_bf)   # exact row copies
            zi = _dot(rows, t_ref[i])                     # (bho, wo*cout) f32
            z = zi if z is None else z + zi
        z = z + vec_ref[ROW_CB + li:ROW_CB + li + 1, :wcout]        # conv bias (f32)
        y = jnp.where(z >= 0.0, z, LEAKY_SLOPE * z)       # F.leaky_relu, f32
        if bn_slot >= 0:                                  # BatchNorm2d, train-mode stats
            n = bho * wo
            g = vec_ref[ROW_BN2D + 2 * bn_slot:ROW_BN2D + 2 * bn_slot + 1, :cout]
            beta = vec_ref[ROW_BN2D + 2 * bn_slot + 1:ROW_BN2D + 2 * bn_slot + 2, :cout]
            mu = _pool_lanes(jnp.sum(y, axis=0, keepdims=True), wo, cout) * (1.0 / n)
            dev = y - _rep_lanes(mu, wo)
            var = _pool_lanes(jnp.sum(dev * dev, axis=0, keepdims=True),
                              wo, cout) * (1.0 / n)       # two-pass variance
            scale = g * jax.lax.rsqrt(var + BN_EPS)
            y = dev * _rep_lanes(scale, wo) + _rep_lanes(beta, wo)
        y_bf = y.astype(jnp.bfloat16)                     # cast once per layer

    # Final conv spatial is 1x1, so y_bf is already (B, enc_dim).
    # ---- MLP head; torch.cat([enc, action]) folded into a split fc0 weight ----
    w0 = fcw_ref[0]                                       # (units, units) bf16
    x = (_dot(y_bf, w0[:enc_dim, :]) + _dot(act_ref[...], w0[enc_dim:, :])
         + vec_ref[row_fcb:row_fcb + 1, :])
    inv_b = 1.0 / batch
    for li in range(n_mlp):                               # static unroll (4 layers)
        if li > 0:
            x = _dot(x, fcw_ref[li]) + vec_ref[row_fcb + li:row_fcb + li + 1, :]
        x = jnp.maximum(x, 0.0)                           # F.relu
        mu = jnp.sum(x, axis=0, keepdims=True) * inv_b
        dev = x - mu
        var = jnp.sum(dev * dev, axis=0, keepdims=True) * inv_b
        x = (dev * jax.lax.rsqrt(var + BN_EPS)
             * vec_ref[row_bn1g + li:row_bn1g + li + 1, :]
             + vec_ref[row_bn1b + li:row_bn1b + li + 1, :])

    # Output Linear: this (B, 1) store is the only HBM write of the kernel.
    out = _dot(x, fcw_ref[n_mlp, :, :1]) + vec_ref[row_outb:row_outb + 1, :1]
    o_ref[...] = out


# ------------------- structural (shape-only) matrix builders ----------------

def _conv_out(size):
    return (size - CONV_K) // CONV_STRIDE + 1


def _row_select(batch, h_in, h_out, i):
    """R_i: (B*h_out, B*h_in) 0/1 matrix selecting input row 2*oh + i per batch."""
    r = np.zeros((batch * h_out, batch * h_in), np.float32)
    for b in range(batch):
        for oh in range(h_out):
            r[b * h_out + oh, b * h_in + CONV_STRIDE * oh + i] = 1.0
    return r


def _col_weight(conv_w, w_in, w_out):
    """T: (k, w_in*Cin, w_out*Cout) packing conv weights for each kernel row
    (exact copies of the dense weights; built once at prepare time)."""
    k, _, cin, cout = conv_w.shape
    s = np.zeros((w_in, w_out, k), np.float32)
    for ow in range(w_out):
        for j in range(k):
            s[CONV_STRIDE * ow + j, ow, j] = 1.0
    t = np.einsum('wvj,ijcd->iwcvd', s, np.asarray(conv_w, np.float32))
    return t.reshape(k, w_in * cin, w_out * cout)


# ----------------------------- operand preparation ---------------------------

def prepare_operands(params, obs_shape):
    """Build all packed / structural constants ONCE (outside the per-call path)."""
    b, c0, h0, w0 = obs_shape
    heights, widths, chans = [h0], [w0], [c0]
    for li in range(N_CONV):
        heights.append(_conv_out(heights[-1]))
        widths.append(_conv_out(widths[-1]))
        chans.append(params["conv_w"][li].shape[-1])
    assert heights[-1] == 1 and widths[-1] == 1, "encoder must reduce to 1x1 spatial"

    n_mlp = params["fc_w"].shape[0]
    units = params["fc_w"].shape[-1]
    enc_dim = chans[-1]

    # One padded stack of row-selection matrices (layer 0 is the biggest).
    rmats = np.zeros((N_CONV * CONV_K, b * heights[1], b * heights[0]), np.float32)
    t_list, conv_cfg = [], []
    for li in range(N_CONV):
        hi, ho = heights[li], heights[li + 1]
        wi, wo = widths[li], widths[li + 1]
        cin, cout = chans[li], chans[li + 1]
        for i in range(CONV_K):
            rs = _row_select(b, hi, ho, i)
            rmats[CONV_K * li + i, :rs.shape[0], :rs.shape[1]] = rs
        t_list.append(jnp.asarray(_col_weight(params["conv_w"][li], wi, wo),
                                  jnp.bfloat16))
        bn_slot = {1: 0, 3: 1}.get(li, -1)
        conv_cfg.append((b * ho, b * hi, wi * cin, wo * cout, wo, cout, bn_slot))
    rmats = jnp.asarray(rmats, jnp.bfloat16)               # 0/1, exact in bf16

    # Packed f32 vector table: conv biases, bn2d affine, fc biases, bn1d affine, out bias.
    n_rows = ROW_FCB + 3 * n_mlp + 1
    vecs = np.zeros((n_rows, units), np.float32)
    for li in range(N_CONV):
        wo, cout = widths[li + 1], chans[li + 1]
        cb = np.tile(np.asarray(params["conv_b"][li]).reshape(1, cout), (1, wo))[0]
        vecs[ROW_CB + li, :wo * cout] = cb
    for s in range(2):
        g = np.asarray(params["bn2d_g"][s]).reshape(-1)
        bb = np.asarray(params["bn2d_b"][s]).reshape(-1)
        vecs[ROW_BN2D + 2 * s, :g.shape[0]] = g
        vecs[ROW_BN2D + 2 * s + 1, :bb.shape[0]] = bb
    vecs[ROW_FCB:ROW_FCB + n_mlp, :] = np.asarray(params["fc_b"]).reshape(n_mlp, units)
    vecs[ROW_FCB + n_mlp:ROW_FCB + 2 * n_mlp, :] = \
        np.asarray(params["bn1d_g"]).reshape(n_mlp, units)
    vecs[ROW_FCB + 2 * n_mlp:ROW_FCB + 3 * n_mlp, :] = \
        np.asarray(params["bn1d_b"]).reshape(n_mlp, units)
    vecs[ROW_FCB + 3 * n_mlp, 0] = float(np.asarray(params["out_b"]).reshape(-1)[0])
    vecs = jnp.asarray(vecs, jnp.float32)

    # Packed bf16 weight stack: fc weights + out weight in slot n_mlp, column 0.
    fcw = np.zeros((n_mlp + 1, units, units), np.float32)
    fcw[:n_mlp] = np.asarray(params["fc_w"])
    fcw[n_mlp, :, 0] = np.asarray(params["out_w"]).reshape(-1)
    fcw = jnp.asarray(fcw, jnp.bfloat16)

    static = dict(conv_cfg=tuple(conv_cfg), batch=b, enc_dim=enc_dim, n_mlp=n_mlp)
    return (rmats, *t_list, vecs, fcw), static


# ----------------------------- wrapper ---------------------------------------

def make_forward(params, obs_shape, action_dim):
    """Build the fused forward (constants prepared once, then jitted)."""
    ops, static = prepare_operands(params, obs_shape)
    b, c0, h0, w0 = obs_shape
    units = params["fc_w"].shape[-1]
    assert static["enc_dim"] + action_dim == units, "concat width != units"

    flops = 0
    for (bho, bhi, wcin, wcout, *_rest) in static["conv_cfg"]:
        flops += 2 * CONV_K * (bho * bhi * wcin + bho * wcin * wcout)
    flops += 2 * (static["n_mlp"] + 1) * b * units * units
    bytes_accessed = (sum(int(o.size) * o.dtype.itemsize for o in ops)
                      + b * h0 * w0 * c0 * 2 + b * action_dim * 2 + b * 4)
    cost = pl.CostEstimate(flops=int(flops), transcendentals=1024,
                           bytes_accessed=int(bytes_accessed))

    call = pl.pallas_call(
        functools.partial(gc_critic_kernel, **static),
        out_shape=jax.ShapeDtypeStruct((b, 1), jnp.float32),
        in_specs=[pl.BlockSpec(memory_space=VMEM)] * (2 + len(ops)),
        out_specs=pl.BlockSpec(memory_space=VMEM),
        cost_estimate=cost,
    )

    def forward(gc_obs, action):
        # NCHW -> NHWC -> lane-dense (B*H, W*C) bf16; done inside the same jit.
        y0 = jnp.transpose(gc_obs, (0, 2, 3, 1)).astype(jnp.float32)
        y0 = y0.reshape(b * h0, w0 * c0).astype(jnp.bfloat16)
        act = action.astype(jnp.bfloat16)
        out = call(y0, act, *ops)
        return jnp.squeeze(out)                           # matches .squeeze()

    return jax.jit(forward)


# ------------------------- pure-JAX reference --------------------------------

def _im2col(x, k, stride):
    bb, hh, ww, cc = x.shape
    ho = (hh - k) // stride + 1
    wo = (ww - k) // stride + 1
    cols = []
    for i in range(k):
        for j in range(k):
            cols.append(x[:, i:i + stride * ho:stride, j:j + stride * wo:stride, :])
    p = jnp.concatenate(cols, axis=-1)
    return p.reshape(bb * ho * wo, k * k * cc), (bb, ho, wo)


def reference_forward(params, gc_obs_nchw, action):
    x = jnp.transpose(gc_obs_nchw, (0, 2, 3, 1)).astype(jnp.float32)
    for li in range(N_CONV):
        w = params["conv_w"][li]
        p, (bb, ho, wo) = _im2col(x, CONV_K, CONV_STRIDE)
        y = _dot(p, w.reshape(-1, w.shape[-1])) + params["conv_b"][li].reshape(1, -1)
        y = jnp.where(y >= 0.0, y, LEAKY_SLOPE * y)
        if li in (1, 3):
            n = y.shape[0]
            mu = jnp.sum(y, 0, keepdims=True) / n
            dev = y - mu
            var = jnp.sum(dev * dev, 0, keepdims=True) / n
            y = (dev * jax.lax.rsqrt(var + BN_EPS)
                 * params["bn2d_g"][li // 2].reshape(1, -1)
                 + params["bn2d_b"][li // 2].reshape(1, -1))
        x = y.reshape(bb, ho, wo, -1)
    h = jnp.concatenate([x.reshape(x.shape[0], -1),
                         action.astype(jnp.float32)], axis=-1)
    nb = h.shape[0]
    for i in range(params["fc_w"].shape[0]):
        z = _dot(h, params["fc_w"][i]) + params["fc_b"][i]
        z = jnp.maximum(z, 0.0)
        mu = jnp.sum(z, 0, keepdims=True) / nb
        dev = z - mu
        var = jnp.sum(dev * dev, 0, keepdims=True) / nb
        h = (dev * jax.lax.rsqrt(var + BN_EPS)
             * params["bn1d_g"][i] + params["bn1d_b"][i])
    return jnp.squeeze(_dot(h, params["out_w"]) + params["out_b"])


# ----------------------------- params init -----------------------------------

def init_params(key, depth=8, kernels=(4, 4, 4, 4), units=128, layers=4):
    ks = iter(jax.random.split(key, 32))
    f32 = jnp.float32
    conv_in = [1 * depth, kernels[0], kernels[1], kernels[2]]
    conv_w, conv_b = [], []
    for li in range(N_CONV):
        conv_w.append(0.1 * jax.random.normal(
            next(ks), (CONV_K, CONV_K, conv_in[li], kernels[li]), f32))
        conv_b.append(0.05 * jax.random.normal(next(ks), (1, kernels[li]), f32))
    bn2d_g = [1.0 + 0.1 * jax.random.normal(next(ks), (1, kernels[1]), f32),
              1.0 + 0.1 * jax.random.normal(next(ks), (1, kernels[3]), f32)]
    bn2d_b = [0.05 * jax.random.normal(next(ks), (1, kernels[1]), f32),
              0.05 * jax.random.normal(next(ks), (1, kernels[3]), f32)]
    fc_w = 0.1 * jax.random.normal(next(ks), (layers, units, units), f32)
    fc_b = 0.05 * jax.random.normal(next(ks), (layers, 1, units), f32)
    bn1d_g = 1.0 + 0.1 * jax.random.normal(next(ks), (layers, 1, units), f32)
    bn1d_b = 0.05 * jax.random.normal(next(ks), (layers, 1, units), f32)
    out_w = 0.1 * jax.random.normal(next(ks), (units, 1), f32)
    out_b = 0.05 * jax.random.normal(next(ks), (1, 1), f32)
    return dict(conv_w=conv_w, conv_b=conv_b, bn2d_g=bn2d_g, bn2d_b=bn2d_b,
                fc_w=fc_w, fc_b=fc_b, bn1d_g=bn1d_g, bn1d_b=bn1d_b,
                out_w=out_w, out_b=out_b)


# ------------------------------- main -----------------------------------------

if __name__ == "__main__":
    key = jax.random.PRNGKey(0)
    kp, kx, ka = jax.random.split(key, 3)

    B, C_in, H, W = 2, 8, 48, 48             # 48 -> 23 -> 10 -> 4 -> 1 spatial
    units, layers = 128, 4
    enc_flat = 4 * 1 * 1                      # encoder output feature dim
    action_dim = units - enc_flat             # concat must equal Linear in-dim

    params = init_params(kp, depth=C_in, units=units, layers=layers)
    gc_obs = jax.random.normal(kx, (B, C_in, H, W), jnp.float32)   # NCHW like PyTorch
    action = jax.random.normal(ka, (B, action_dim), jnp.float32)

    fwd = make_forward(params, gc_obs.shape, action_dim)
    out = jax.block_until_ready(fwd(gc_obs, action))
    ref = jax.block_until_ready(jax.jit(reference_forward)(params, gc_obs, action))

    assert out.shape == (B,), f"unexpected output shape {out.shape}"
    max_err = float(jnp.max(jnp.abs(out - ref)))
    # Train-mode BatchNorm with batch-2 statistics (6 BN layers, eps=1e-5)
    # amplifies benign f32 reassociation differences between the fused kernel
    # and the differently-factored reference by up to ~1/sqrt(eps) per layer.
    # With BN math kept in exact f32 on both sides the residual difference is
    # O(1e-4); structural errors would be O(0.1-10), so 3e-2 still discriminates.
    assert max_err < 3e-2, f"mismatch vs reference: {max_err}"
    print("KERNEL_OK")
</pallas_src>

<mosaic_0001>
module attributes {stable_mosaic.version = 11 : i64} {
  func.func @gc_critic_kernel(%arg0: memref<96x384xbf16, #tpu.memory_space<vmem>>, %arg1: memref<2x124xbf16, #tpu.memory_space<vmem>>, %arg2: memref<16x46x96xbf16, #tpu.memory_space<vmem>>, %arg3: memref<4x384x92xbf16, #tpu.memory_space<vmem>>, %arg4: memref<4x92x40xbf16, #tpu.memory_space<vmem>>, %arg5: memref<4x40x16xbf16, #tpu.memory_space<vmem>>, %arg6: memref<4x16x4xbf16, #tpu.memory_space<vmem>>, %arg7: memref<21x128xf32, #tpu.memory_space<vmem>>, %arg8: memref<5x128x128xbf16, #tpu.memory_space<vmem>>, %arg9: memref<2x1xf32, #tpu.memory_space<vmem>>) attributes {dimension_semantics = [], scalar_prefetch = 0 : i64, scratch_operands = 0 : i64, tpu.core_type = #tpu.core_type<tc>} {
    %c0 = arith.constant 0 : index
    %c0_0 = arith.constant 0 : index
    %0 = vector.load %arg0[%c0, %c0_0] : memref<96x384xbf16, #tpu.memory_space<vmem>>, vector<96x384xbf16>
    %c0_1 = arith.constant 0 : index
    %c0_2 = arith.constant 0 : index
    %c0_3 = arith.constant 0 : index
    %1 = vector.load %arg2[%c0_1, %c0_2, %c0_3] : memref<16x46x96xbf16, #tpu.memory_space<vmem>>, vector<1x46x96xbf16>
    %2 = vector.shape_cast %1 : vector<1x46x96xbf16> to vector<46x96xbf16>
    %cst = arith.constant dense<0.000000e+00> : vector<46x384xf32>
    %3 = tpu.matmul %2, %0, %cst {dimension_numbers = #tpu.dot_dimension_numbers<[1], [0], [0], [1], [0, 0, 1, 1], [], []>} : vector<46x96xbf16>, vector<96x384xbf16>, vector<46x384xf32> -> vector<46x384xf32>
    %c0_4 = arith.constant 0 : index
    %c0_5 = arith.constant 0 : index
    %c0_6 = arith.constant 0 : index
    %4 = vector.load %arg3[%c0_4, %c0_5, %c0_6] : memref<4x384x92xbf16, #tpu.memory_space<vmem>>, vector<1x384x92xbf16>
    %5 = vector.shape_cast %4 : vector<1x384x92xbf16> to vector<384x92xbf16>
    %6 = arith.truncf %3 : vector<46x384xf32> to vector<46x384xbf16>
    %cst_7 = arith.constant dense<0.000000e+00> : vector<46x92xf32>
    %7 = tpu.matmul %6, %5, %cst_7 {dimension_numbers = #tpu.dot_dimension_numbers<[1], [0], [0], [1], [0, 0, 1, 1], [], []>} : vector<46x384xbf16>, vector<384x92xbf16>, vector<46x92xf32> -> vector<46x92xf32>
    %c1 = arith.constant 1 : index
    %c0_8 = arith.constant 0 : index
    %c0_9 = arith.constant 0 : index
    %8 = vector.load %arg2[%c1, %c0_8, %c0_9] : memref<16x46x96xbf16, #tpu.memory_space<vmem>>, vector<1x46x96xbf16>
    %9 = vector.shape_cast %8 : vector<1x46x96xbf16> to vector<46x96xbf16>
    %cst_10 = arith.constant dense<0.000000e+00> : vector<46x384xf32>
    %10 = tpu.matmul %9, %0, %cst_10 {dimension_numbers = #tpu.dot_dimension_numbers<[1], [0], [0], [1], [0, 0, 1, 1], [], []>} : vector<46x96xbf16>, vector<96x384xbf16>, vector<46x384xf32> -> vector<46x384xf32>
    %c1_11 = arith.constant 1 : index
    %c0_12 = arith.constant 0 : index
    %c0_13 = arith.constant 0 : index
    %11 = vector.load %arg3[%c1_11, %c0_12, %c0_13] : memref<4x384x92xbf16, #tpu.memory_space<vmem>>, vector<1x384x92xbf16>
    %12 = vector.shape_cast %11 : vector<1x384x92xbf16> to vector<384x92xbf16>
    %13 = arith.truncf %10 : vector<46x384xf32> to vector<46x384xbf16>
    %cst_14 = arith.constant dense<0.000000e+00> : vector<46x92xf32>
    %14 = tpu.matmul %13, %12, %cst_14 {dimension_numbers = #tpu.dot_dimension_numbers<[1], [0], [0], [1], [0, 0, 1, 1], [], []>} : vector<46x384xbf16>, vector<384x92xbf16>, vector<46x92xf32> -> vector<46x92xf32>
    %15 = arith.addf %7, %14 : vector<46x92xf32>
    %c2 = arith.constant 2 : index
    %c0_15 = arith.constant 0 : index
    %c0_16 = arith.constant 0 : index
    %16 = vector.load %arg2[%c2, %c0_15, %c0_16] : memref<16x46x96xbf16, #tpu.memory_space<vmem>>, vector<1x46x96xbf16>
    %17 = vector.shape_cast %16 : vector<1x46x96xbf16> to vector<46x96xbf16>
    %cst_17 = arith.constant dense<0.000000e+00> : vector<46x384xf32>
    %18 = tpu.matmul %17, %0, %cst_17 {dimension_numbers = #tpu.dot_dimension_numbers<[1], [0], [0], [1], [0, 0, 1, 1], [], []>} : vector<46x96xbf16>, vector<96x384xbf16>, vector<46x384xf32> -> vector<46x384xf32>
    %c2_18 = arith.constant 2 : index
    %c0_19 = arith.constant 0 : index
    %c0_20 = arith.constant 0 : index
    %19 = vector.load %arg3[%c2_18, %c0_19, %c0_20] : memref<4x384x92xbf16, #tpu.memory_space<vmem>>, vector<1x384x92xbf16>
    %20 = vector.shape_cast %19 : vector<1x384x92xbf16> to vector<384x92xbf16>
    %21 = arith.truncf %18 : vector<46x384xf32> to vector<46x384xbf16>
    %cst_21 = arith.constant dense<0.000000e+00> : vector<46x92xf32>
    %22 = tpu.matmul %21, %20, %cst_21 {dimension_numbers = #tpu.dot_dimension_numbers<[1], [0], [0], [1], [0, 0, 1, 1], [], []>} : vector<46x384xbf16>, vector<384x92xbf16>, vector<46x92xf32> -> vector<46x92xf32>
    %23 = arith.addf %15, %22 : vector<46x92xf32>
    %c3 = arith.constant 3 : index
    %c0_22 = arith.constant 0 : index
    %c0_23 = arith.constant 0 : index
    %24 = vector.load %arg2[%c3, %c0_22, %c0_23] : memref<16x46x96xbf16, #tpu.memory_space<vmem>>, vector<1x46x96xbf16>
    %25 = vector.shape_cast %24 : vector<1x46x96xbf16> to vector<46x96xbf16>
    %cst_24 = arith.constant dense<0.000000e+00> : vector<46x384xf32>
    %26 = tpu.matmul %25, %0, %cst_24 {dimension_numbers = #tpu.dot_dimension_numbers<[1], [0], [0], [1], [0, 0, 1, 1], [], []>} : vector<46x96xbf16>, vector<96x384xbf16>, vector<46x384xf32> -> vector<46x384xf32>
    %c3_25 = arith.constant 3 : index
    %c0_26 = arith.constant 0 : index
    %c0_27 = arith.constant 0 : index
    %27 = vector.load %arg3[%c3_25, %c0_26, %c0_27] : memref<4x384x92xbf16, #tpu.memory_space<vmem>>, vector<1x384x92xbf16>
    %28 = vector.shape_cast %27 : vector<1x384x92xbf16> to vector<384x92xbf16>
    %29 = arith.truncf %26 : vector<46x384xf32> to vector<46x384xbf16>
    %cst_28 = arith.constant dense<0.000000e+00> : vector<46x92xf32>
    %30 = tpu.matmul %29, %28, %cst_28 {dimension_numbers = #tpu.dot_dimension_numbers<[1], [0], [0], [1], [0, 0, 1, 1], [], []>} : vector<46x384xbf16>, vector<384x92xbf16>, vector<46x92xf32> -> vector<46x92xf32>
    %31 = arith.addf %23, %30 : vector<46x92xf32>
    %c0_29 = arith.constant 0 : index
    %c0_30 = arith.constant 0 : index
    %32 = vector.load %arg7[%c0_29, %c0_30] : memref<21x128xf32, #tpu.memory_space<vmem>>, vector<1x92xf32>
    %33 = vector.broadcast %32 : vector<1x92xf32> to vector<46x92xf32>
    %34 = arith.addf %31, %33 : vector<46x92xf32>
    %cst_31 = arith.constant 0.000000e+00 : f32
    %35 = vector.broadcast %cst_31 : f32 to vector<46x92xf32>
    %36 = arith.cmpf oge, %34, %35 : vector<46x92xf32>
    %cst_32 = arith.constant 0.00999999977 : f32
    %37 = vector.broadcast %cst_32 : f32 to vector<46x92xf32>
    %38 = arith.mulf %37, %34 : vector<46x92xf32>
    %39 = arith.select %36, %34, %38 : vector<46x92xi1>, vector<46x92xf32>
    %40 = arith.truncf %39 : vector<46x92xf32> to vector<46x92xbf16>
    %c4 = arith.constant 4 : index
    %c0_33 = arith.constant 0 : index
    %c0_34 = arith.constant 0 : index
    %41 = vector.load %arg2[%c4, %c0_33, %c0_34] : memref<16x46x96xbf16, #tpu.memory_space<vmem>>, vector<1x20x46xbf16>
    %42 = vector.shape_cast %41 : vector<1x20x46xbf16> to vector<20x46xbf16>
    %cst_35 = arith.constant dense<0.000000e+00> : vector<20x92xf32>
    %43 = tpu.matmul %42, %40, %cst_35 {dimension_numbers = #tpu.dot_dimension_numbers<[1], [0], [0], [1], [0, 0, 1, 1], [], []>} : vector<20x46xbf16>, vector<46x92xbf16>, vector<20x92xf32> -> vector<20x92xf32>
    %c0_36 = arith.constant 0 : index
    %c0_37 = arith.constant 0 : index
    %c0_38 = arith.constant 0 : index
    %44 = vector.load %arg4[%c0_36, %c0_37, %c0_38] : memref<4x92x40xbf16, #tpu.memory_space<vmem>>, vector<1x92x40xbf16>
    %45 = vector.shape_cast %44 : vector<1x92x40xbf16> to vector<92x40xbf16>
    %46 = arith.truncf %43 : vector<20x92xf32> to vector<20x92xbf16>
    %cst_39 = arith.constant dense<0.000000e+00> : vector<20x40xf32>
    %47 = tpu.matmul %46, %45, %cst_39 {dimension_numbers = #tpu.dot_dimension_numbers<[1], [0], [0], [1], [0, 0, 1, 1], [], []>} : vector<20x92xbf16>, vector<92x40xbf16>, vector<20x40xf32> -> vector<20x40xf32>
    %c5 = arith.constant 5 : index
    %c0_40 = arith.constant 0 : index
    %c0_41 = arith.constant 0 : index
    %48 = vector.load %arg2[%c5, %c0_40, %c0_41] : memref<16x46x96xbf16, #tpu.memory_space<vmem>>, vector<1x20x46xbf16>
    %49 = vector.shape_cast %48 : vector<1x20x46xbf16> to vector<20x46xbf16>
    %cst_42 = arith.constant dense<0.000000e+00> : vector<20x92xf32>
    %50 = tpu.matmul %49, %40, %cst_42 {dimension_numbers = #tpu.dot_dimension_numbers<[1], [0], [0], [1], [0, 0, 1, 1], [], []>} : vector<20x46xbf16>, vector<46x92xbf16>, vector<20x92xf32> -> vector<20x92xf32>
    %c1_43 = arith.constant 1 : index
    %c0_44 = arith.constant 0 : index
    %c0_45 = arith.constant 0 : index
    %51 = vector.load %arg4[%c1_43, %c0_44, %c0_45] : memref<4x92x40xbf16, #tpu.memory_space<vmem>>, vector<1x92x40xbf16>
    %52 = vector.shape_cast %51 : vector<1x92x40xbf16> to vector<92x40xbf16>
    %53 = arith.truncf %50 : vector<20x92xf32> to vector<20x92xbf16>
    %cst_46 = arith.constant dense<0.000000e+00> : vector<20x40xf32>
    %54 = tpu.matmul %53, %52, %cst_46 {dimension_numbers = #tpu.dot_dimension_numbers<[1], [0], [0], [1], [0, 0, 1, 1], [], []>} : vector<20x92xbf16>, vector<92x40xbf16>, vector<20x40xf32> -> vector<20x40xf32>
    %55 = arith.addf %47, %54 : vector<20x40xf32>
    %c6 = arith.constant 6 : index
    %c0_47 = arith.constant 0 : index
    %c0_48 = arith.constant 0 : index
    %56 = vector.load %arg2[%c6, %c0_47, %c0_48] : memref<16x46x96xbf16, #tpu.memory_space<vmem>>, vector<1x20x46xbf16>
    %57 = vector.shape_cast %56 : vector<1x20x46xbf16> to vector<20x46xbf16>
    %cst_49 = arith.constant dense<0.000000e+00> : vector<20x92xf32>
    %58 = tpu.matmul %57, %40, %cst_49 {dimension_numbers = #tpu.dot_dimension_numbers<[1], [0], [0], [1], [0, 0, 1, 1], [], []>} : vector<20x46xbf16>, vector<46x92xbf16>, vector<20x92xf32> -> vector<20x92xf32>
    %c2_50 = arith.constant 2 : index
    %c0_51 = arith.constant 0 : index
    %c0_52 = arith.constant 0 : index
    %59 = vector.load %arg4[%c2_50, %c0_51, %c0_52] : memref<4x92x40xbf16, #tpu.memory_space<vmem>>, vector<1x92x40xbf16>
    %60 = vector.shape_cast %59 : vector<1x92x40xbf16> to vector<92x40xbf16>
    %61 = arith.truncf %58 : vector<20x92xf32> to vector<20x92xbf16>
    %cst_53 = arith.constant dense<0.000000e+00> : vector<20x40xf32>
    %62 = tpu.matmul %61, %60, %cst_53 {dimension_numbers = #tpu.dot_dimension_numbers<[1], [0], [0], [1], [0, 0, 1, 1], [], []>} : vector<20x92xbf16>, vector<92x40xbf16>, vector<20x40xf32> -> vector<20x40xf32>
    %63 = arith.addf %55, %62 : vector<20x40xf32>
    %c7 = arith.constant 7 : index
    %c0_54 = arith.constant 0 : index
    %c0_55 = arith.constant 0 : index
    %64 = vector.load %arg2[%c7, %c0_54, %c0_55] : memref<16x46x96xbf16, #tpu.memory_space<vmem>>, vector<1x20x46xbf16>
    %65 = vector.shape_cast %64 : vector<1x20x46xbf16> to vector<20x46xbf16>
    %cst_56 = arith.constant dense<0.000000e+00> : vector<20x92xf32>
    %66 = tpu.matmul %65, %40, %cst_56 {dimension_numbers = #tpu.dot_dimension_numbers<[1], [0], [0], [1], [0, 0, 1, 1], [], []>} : vector<20x46xbf16>, vector<46x92xbf16>, vector<20x92xf32> -> vector<20x92xf32>
    %c3_57 = arith.constant 3 : index
    %c0_58 = arith.constant 0 : index
    %c0_59 = arith.constant 0 : index
    %67 = vector.load %arg4[%c3_57, %c0_58, %c0_59] : memref<4x92x40xbf16, #tpu.memory_space<vmem>>, vector<1x92x40xbf16>
    %68 = vector.shape_cast %67 : vector<1x92x40xbf16> to vector<92x40xbf16>
    %69 = arith.truncf %66 : vector<20x92xf32> to vector<20x92xbf16>
    %cst_60 = arith.constant dense<0.000000e+00> : vector<20x40xf32>
    %70 = tpu.matmul %69, %68, %cst_60 {dimension_numbers = #tpu.dot_dimension_numbers<[1], [0], [0], [1], [0, 0, 1, 1], [], []>} : vector<20x92xbf16>, vector<92x40xbf16>, vector<20x40xf32> -> vector<20x40xf32>
    %71 = arith.addf %63, %70 : vector<20x40xf32>
    %c1_61 = arith.constant 1 : index
    %c0_62 = arith.constant 0 : index
    %72 = vector.load %arg7[%c1_61, %c0_62] : memref<21x128xf32, #tpu.memory_space<vmem>>, vector<1x40xf32>
    %73 = vector.broadcast %72 : vector<1x40xf32> to vector<20x40xf32>
    %74 = arith.addf %71, %73 : vector<20x40xf32>
    %cst_63 = arith.constant 0.000000e+00 : f32
    %75 = vector.broadcast %cst_63 : f32 to vector<20x40xf32>
    %76 = arith.cmpf oge, %74, %75 : vector<20x40xf32>
    %cst_64 = arith.constant 0.00999999977 : f32
    %77 = vector.broadcast %cst_64 : f32 to vector<20x40xf32>
    %78 = arith.mulf %77, %74 : vector<20x40xf32>
    %79 = arith.select %76, %74, %78 : vector<20x40xi1>, vector<20x40xf32>
    %c4_65 = arith.constant 4 : index
    %c0_66 = arith.constant 0 : index
    %80 = vector.load %arg7[%c4_65, %c0_66] : memref<21x128xf32, #tpu.memory_space<vmem>>, vector<1x4xf32>
    %c5_67 = arith.constant 5 : index
    %c0_68 = arith.constant 0 : index
    %81 = vector.load %arg7[%c5_67, %c0_68] : memref<21x128xf32, #tpu.memory_space<vmem>>, vector<1x4xf32>
    %cst_69 = arith.constant dense<0.000000e+00> : vector<40xf32>
    %82 = vector.multi_reduction <add>, %79, %cst_69 [0] : vector<20x40xf32> to vector<40xf32>
    %83 = vector.shape_cast %82 : vector<40xf32> to vector<1x40xf32>
    %84 = vector.extract_strided_slice %83 {offsets = [0, 0], sizes = [1, 4], strides = [1, 1]} : vector<1x40xf32> to vector<1x4xf32>
    %85 = vector.extract_strided_slice %83 {offsets = [0, 4], sizes = [1, 4], strides = [1, 1]} : vector<1x40xf32> to vector<1x4xf32>
    %86 = arith.addf %84, %85 : vector<1x4xf32>
    %87 = vector.extract_strided_slice %83 {offsets = [0, 8], sizes = [1, 4], strides = [1, 1]} : vector<1x40xf32> to vector<1x4xf32>
    %88 = arith.addf %86, %87 : vector<1x4xf32>
    %89 = vector.extract_strided_slice %83 {offsets = [0, 12], sizes = [1, 4], strides = [1, 1]} : vector<1x40xf32> to vector<1x4xf32>
    %90 = arith.addf %88, %89 : vector<1x4xf32>
    %91 = vector.extract_strided_slice %83 {offsets = [0, 16], sizes = [1, 4], strides = [1, 1]} : vector<1x40xf32> to vector<1x4xf32>
    %92 = arith.addf %90, %91 : vector<1x4xf32>
    %93 = vector.extract_strided_slice %83 {offsets = [0, 20], sizes = [1, 4], strides = [1, 1]} : vector<1x40xf32> to vector<1x4xf32>
    %94 = arith.addf %92, %93 : vector<1x4xf32>
    %95 = vector.extract_strided_slice %83 {offsets = [0, 24], sizes = [1, 4], strides = [1, 1]} : vector<1x40xf32> to vector<1x4xf32>
    %96 = arith.addf %94, %95 : vector<1x4xf32>
    %97 = vector.extract_strided_slice %83 {offsets = [0, 28], sizes = [1, 4], strides = [1, 1]} : vector<1x40xf32> to vector<1x4xf32>
    %98 = arith.addf %96, %97 : vector<1x4xf32>
    %99 = vector.extract_strided_slice %83 {offsets = [0, 32], sizes = [1, 4], strides = [1, 1]} : vector<1x40xf32> to vector<1x4xf32>
    %100 = arith.addf %98, %99 : vector<1x4xf32>
    %101 = vector.extract_strided_slice %83 {offsets = [0, 36], sizes = [1, 4], strides = [1, 1]} : vector<1x40xf32> to vector<1x4xf32>
    %102 = arith.addf %100, %101 : vector<1x4xf32>
    %cst_70 = arith.constant 5.000000e-03 : f32
    %103 = vector.broadcast %cst_70 : f32 to vector<1x4xf32>
    %104 = arith.mulf %102, %103 : vector<1x4xf32>
    %105 = tpu.concatenate %104, %104, %104, %104, %104, %104, %104, %104, %104, %104 in 1 : vector<1x4xf32>, vector<1x4xf32>, vector<1x4xf32>, vector<1x4xf32>, vector<1x4xf32>, vector<1x4xf32>, vector<1x4xf32>, vector<1x4xf32>, vector<1x4xf32>, vector<1x4xf32> -> vector<1x40xf32>
    %106 = vector.broadcast %105 : vector<1x40xf32> to vector<20x40xf32>
    %107 = arith.subf %79, %106 : vector<20x40xf32>
    %108 = arith.mulf %107, %107 : vector<20x40xf32>
    %cst_71 = arith.constant dense<0.000000e+00> : vector<40xf32>
    %109 = vector.multi_reduction <add>, %108, %cst_71 [0] : vector<20x40xf32> to vector<40xf32>
    %110 = vector.shape_cast %109 : vector<40xf32> to vector<1x40xf32>
    %111 = vector.extract_strided_slice %110 {offsets = [0, 0], sizes = [1, 4], strides = [1, 1]} : vector<1x40xf32> to vector<1x4xf32>
    %112 = vector.extract_strided_slice %110 {offsets = [0, 4], sizes = [1, 4], strides = [1, 1]} : vector<1x40xf32> to vector<1x4xf32>
    %113 = arith.addf %111, %112 : vector<1x4xf32>
    %114 = vector.extract_strided_slice %110 {offsets = [0, 8], sizes = [1, 4], strides = [1, 1]} : vector<1x40xf32> to vector<1x4xf32>
    %115 = arith.addf %113, %114 : vector<1x4xf32>
    %116 = vector.extract_strided_slice %110 {offsets = [0, 12], sizes = [1, 4], strides = [1, 1]} : vector<1x40xf32> to vector<1x4xf32>
    %117 = arith.addf %115, %116 : vector<1x4xf32>
    %118 = vector.extract_strided_slice %110 {offsets = [0, 16], sizes = [1, 4], strides = [1, 1]} : vector<1x40xf32> to vector<1x4xf32>
    %119 = arith.addf %117, %118 : vector<1x4xf32>
    %120 = vector.extract_strided_slice %110 {offsets = [0, 20], sizes = [1, 4], strides = [1, 1]} : vector<1x40xf32> to vector<1x4xf32>
    %121 = arith.addf %119, %120 : vector<1x4xf32>
    %122 = vector.extract_strided_slice %110 {offsets = [0, 24], sizes = [1, 4], strides = [1, 1]} : vector<1x40xf32> to vector<1x4xf32>
    %123 = arith.addf %121, %122 : vector<1x4xf32>
    %124 = vector.extract_strided_slice %110 {offsets = [0, 28], sizes = [1, 4], strides = [1, 1]} : vector<1x40xf32> to vector<1x4xf32>
    %125 = arith.addf %123, %124 : vector<1x4xf32>
    %126 = vector.extract_strided_slice %110 {offsets = [0, 32], sizes = [1, 4], strides = [1, 1]} : vector<1x40xf32> to vector<1x4xf32>
    %127 = arith.addf %125, %126 : vector<1x4xf32>
    %128 = vector.extract_strided_slice %110 {offsets = [0, 36], sizes = [1, 4], strides = [1, 1]} : vector<1x40xf32> to vector<1x4xf32>
    %129 = arith.addf %127, %128 : vector<1x4xf32>
    %cst_72 = arith.constant 5.000000e-03 : f32
    %130 = vector.broadcast %cst_72 : f32 to vector<1x4xf32>
    %131 = arith.mulf %129, %130 : vector<1x4xf32>
    %cst_73 = arith.constant 9.99999974E-6 : f32
    %132 = vector.broadcast %cst_73 : f32 to vector<1x4xf32>
    %133 = arith.addf %131, %132 : vector<1x4xf32>
    %134 = math.rsqrt %133 : vector<1x4xf32>
    %135 = arith.mulf %80, %134 : vector<1x4xf32>
    %136 = tpu.concatenate %135, %135, %135, %135, %135, %135, %135, %135, %135, %135 in 1 : vector<1x4xf32>, vector<1x4xf32>, vector<1x4xf32>, vector<1x4xf32>, vector<1x4xf32>, vector<1x4xf32>, vector<1x4xf32>, vector<1x4xf32>, vector<1x4xf32>, vector<1x4xf32> -> vector<1x40xf32>
    %137 = vector.broadcast %136 : vector<1x40xf32> to vector<20x40xf32>
    %138 = arith.mulf %107, %137 : vector<20x40xf32>
    %139 = tpu.concatenate %81, %81, %81, %81, %81, %81, %81, %81, %81, %81 in 1 : vector<1x4xf32>, vector<1x4xf32>, vector<1x4xf32>, vector<1x4xf32>, vector<1x4xf32>, vector<1x4xf32>, vector<1x4xf32>, vector<1x4xf32>, vector<1x4xf32>, vector<1x4xf32> -> vector<1x40xf32>
    %140 = vector.broadcast %139 : vector<1x40xf32> to vector<20x40xf32>
    %141 = arith.addf %138, %140 : vector<20x40xf32>
    %142 = arith.truncf %141 : vector<20x40xf32> to vector<20x40xbf16>
    %c8 = arith.constant 8 : index
    %c0_74 = arith.constant 0 : index
    %c0_75 = arith.constant 0 : index
    %143 = vector.load %arg2[%c8, %c0_74, %c0_75] : memref<16x46x96xbf16, #tpu.memory_space<vmem>>, vector<1x8x20xbf16>
    %144 = vector.shape_cast %143 : vector<1x8x20xbf16> to vector<8x20xbf16>
    %cst_76 = arith.constant dense<0.000000e+00> : vector<8x40xf32>
    %145 = tpu.matmul %144, %142, %cst_76 {dimension_numbers = #tpu.dot_dimension_numbers<[1], [0], [0], [1], [0, 0, 1, 1], [], []>} : vector<8x20xbf16>, vector<20x40xbf16>, vector<8x40xf32> -> vector<8x40xf32>
    %c0_77 = arith.constant 0 : index
    %c0_78 = arith.constant 0 : index
    %c0_79 = arith.constant 0 : index
    %146 = vector.load %arg5[%c0_77, %c0_78, %c0_79] : memref<4x40x16xbf16, #tpu.memory_space<vmem>>, vector<1x40x16xbf16>
    %147 = vector.shape_cast %146 : vector<1x40x16xbf16> to vector<40x16xbf16>
    %148 = arith.truncf %145 : vector<8x40xf32> to vector<8x40xbf16>
    %cst_80 = arith.constant dense<0.000000e+00> : vector<8x16xf32>
    %149 = tpu.matmul %148, %147, %cst_80 {dimension_numbers = #tpu.dot_dimension_numbers<[1], [0], [0], [1], [0, 0, 1, 1], [], []>} : vector<8x40xbf16>, vector<40x16xbf16>, vector<8x16xf32> -> vector<8x16xf32>
    %c9 = arith.constant 9 : index
    %c0_81 = arith.constant 0 : index
    %c0_82 = arith.constant 0 : index
    %150 = vector.load %arg2[%c9, %c0_81, %c0_82] : memref<16x46x96xbf16, #tpu.memory_space<vmem>>, vector<1x8x20xbf16>
    %151 = vector.shape_cast %150 : vector<1x8x20xbf16> to vector<8x20xbf16>
    %cst_83 = arith.constant dense<0.000000e+00> : vector<8x40xf32>
    %152 = tpu.matmul %151, %142, %cst_83 {dimension_numbers = #tpu.dot_dimension_numbers<[1], [0], [0], [1], [0, 0, 1, 1], [], []>} : vector<8x20xbf16>, vector<20x40xbf16>, vector<8x40xf32> -> vector<8x40xf32>
    %c1_84 = arith.constant 1 : index
    %c0_85 = arith.constant 0 : index
    %c0_86 = arith.constant 0 : index
    %153 = vector.load %arg5[%c1_84, %c0_85, %c0_86] : memref<4x40x16xbf16, #tpu.memory_space<vmem>>, vector<1x40x16xbf16>
    %154 = vector.shape_cast %153 : vector<1x40x16xbf16> to vector<40x16xbf16>
    %155 = arith.truncf %152 : vector<8x40xf32> to vector<8x40xbf16>
    %cst_87 = arith.constant dense<0.000000e+00> : vector<8x16xf32>
    %156 = tpu.matmul %155, %154, %cst_87 {dimension_numbers = #tpu.dot_dimension_numbers<[1], [0], [0], [1], [0, 0, 1, 1], [], []>} : vector<8x40xbf16>, vector<40x16xbf16>, vector<8x16xf32> -> vector<8x16xf32>
    %157 = arith.addf %149, %156 : vector<8x16xf32>
    %c10 = arith.constant 10 : index
    %c0_88 = arith.constant 0 : index
    %c0_89 = arith.constant 0 : index
    %158 = vector.load %arg2[%c10, %c0_88, %c0_89] : memref<16x46x96xbf16, #tpu.memory_space<vmem>>, vector<1x8x20xbf16>
    %159 = vector.shape_cast %158 : vector<1x8x20xbf16> to vector<8x20xbf16>
    %cst_90 = arith.constant dense<0.000000e+00> : vector<8x40xf32>
    %160 = tpu.matmul %159, %142, %cst_90 {dimension_numbers = #tpu.dot_dimension_numbers<[1], [0], [0], [1], [0, 0, 1, 1], [], []>} : vector<8x20xbf16>, vector<20x40xbf16>, vector<8x40xf32> -> vector<8x40xf32>
    %c2_91 = arith.constant 2 : index
    %c0_92 = arith.constant 0 : index
    %c0_93 = arith.constant 0 : index
    %161 = vector.load %arg5[%c2_91, %c0_92, %c0_93] : memref<4x40x16xbf16, #tpu.memory_space<vmem>>, vector<1x40x16xbf16>
    %162 = vector.shape_cast %161 : vector<1x40x16xbf16> to vector<40x16xbf16>
    %163 = arith.truncf %160 : vector<8x40xf32> to vector<8x40xbf16>
    %cst_94 = arith.constant dense<0.000000e+00> : vector<8x16xf32>
    %164 = tpu.matmul %163, %162, %cst_94 {dimension_numbers = #tpu.dot_dimension_numbers<[1], [0], [0], [1], [0, 0, 1, 1], [], []>} : vector<8x40xbf16>, vector<40x16xbf16>, vector<8x16xf32> -> vector<8x16xf32>
    %165 = arith.addf %157, %164 : vector<8x16xf32>
    %c11 = arith.constant 11 : index
    %c0_95 = arith.constant 0 : index
    %c0_96 = arith.constant 0 : index
    %166 = vector.load %arg2[%c11, %c0_95, %c0_96] : memref<16x46x96xbf16, #tpu.memory_space<vmem>>, vector<1x8x20xbf16>
    %167 = vector.shape_cast %166 : vector<1x8x20xbf16> to vector<8x20xbf16>
    %cst_97 = arith.constant dense<0.000000e+00> : vector<8x40xf32>
    %168 = tpu.matmul %167, %142, %cst_97 {dimension_numbers = #tpu.dot_dimension_numbers<[1], [0], [0], [1], [0, 0, 1, 1], [], []>} : vector<8x20xbf16>, vector<20x40xbf16>, vector<8x40xf32> -> vector<8x40xf32>
    %c3_98 = arith.constant 3 : index
    %c0_99 = arith.constant 0 : index
    %c0_100 = arith.constant 0 : index
    %169 = vector.load %arg5[%c3_98, %c0_99, %c0_100] : memref<4x40x16xbf16, #tpu.memory_space<vmem>>, vector<1x40x16xbf16>
    %170 = vector.shape_cast %169 : vector<1x40x16xbf16> to vector<40x16xbf16>
    %171 = arith.truncf %168 : vector<8x40xf32> to vector<8x40xbf16>
    %cst_101 = arith.constant dense<0.000000e+00> : vector<8x16xf32>
    %172 = tpu.matmul %171, %170, %cst_101 {dimension_numbers = #tpu.dot_dimension_numbers<[1], [0], [0], [1], [0, 0, 1, 1], [], []>} : vector<8x40xbf16>, vector<40x16xbf16>, vector<8x16xf32> -> vector<8x16xf32>
    %173 = arith.addf %165, %172 : vector<8x16xf32>
    %c2_102 = arith.constant 2 : index
    %c0_103 = arith.constant 0 : index
    %174 = vector.load %arg7[%c2_102, %c0_103] : memref<21x128xf32, #tpu.memory_space<vmem>>, vector<1x16xf32>
    %175 = vector.broadcast %174 : vector<1x16xf32> to vector<8x16xf32>
    %176 = arith.addf %173, %175 : vector<8x16xf32>
    %cst_104 = arith.constant 0.000000e+00 : f32
    %177 = vector.broadcast %cst_104 : f32 to vector<8x16xf32>
    %178 = arith.cmpf oge, %176, %177 : vector<8x16xf32>
    %cst_105 = arith.constant 0.00999999977 : f32
    %179 = vector.broadcast %cst_105 : f32 to vector<8x16xf32>
    %180 = arith.mulf %179, %176 : vector<8x16xf32>
    %181 = arith.select %178, %176, %180 : vector<8x16xi1>, vector<8x16xf32>
    %182 = arith.truncf %181 : vector<8x16xf32> to vector<8x16xbf16>
    %c12 = arith.constant 12 : index
    %c0_106 = arith.constant 0 : index
    %c0_107 = arith.constant 0 : index
    %183 = vector.load %arg2[%c12, %c0_106, %c0_107] : memref<16x46x96xbf16, #tpu.memory_space<vmem>>, vector<1x2x8xbf16>
    %184 = vector.shape_cast %183 : vector<1x2x8xbf16> to vector<2x8xbf16>
    %cst_108 = arith.constant dense<0.000000e+00> : vector<2x16xf32>
    %185 = tpu.matmul %184, %182, %cst_108 {dimension_numbers = #tpu.dot_dimension_numbers<[1], [0], [0], [1], [0, 0, 1, 1], [], []>} : vector<2x8xbf16>, vector<8x16xbf16>, vector<2x16xf32> -> vector<2x16xf32>
    %c0_109 = arith.constant 0 : index
    %c0_110 = arith.constant 0 : index
    %c0_111 = arith.constant 0 : index
    %186 = vector.load %arg6[%c0_109, %c0_110, %c0_111] : memref<4x16x4xbf16, #tpu.memory_space<vmem>>, vector<1x16x4xbf16>
    %187 = vector.shape_cast %186 : vector<1x16x4xbf16> to vector<16x4xbf16>
    %188 = arith.truncf %185 : vector<2x16xf32> to vector<2x16xbf16>
    %cst_112 = arith.constant dense<0.000000e+00> : vector<2x4xf32>
    %189 = tpu.matmul %188, %187, %cst_112 {dimension_numbers = #tpu.dot_dimension_numbers<[1], [0], [0], [1], [0, 0, 1, 1], [], []>} : vector<2x16xbf16>, vector<16x4xbf16>, vector<2x4xf32> -> vector<2x4xf32>
    %c13 = arith.constant 13 : index
    %c0_113 = arith.constant 0 : index
    %c0_114 = arith.constant 0 : index
    %190 = vector.load %arg2[%c13, %c0_113, %c0_114] : memref<16x46x96xbf16, #tpu.memory_space<vmem>>, vector<1x2x8xbf16>
    %191 = vector.shape_cast %190 : vector<1x2x8xbf16> to vector<2x8xbf16>
    %cst_115 = arith.constant dense<0.000000e+00> : vector<2x16xf32>
    %192 = tpu.matmul %191, %182, %cst_115 {dimension_numbers = #tpu.dot_dimension_numbers<[1], [0], [0], [1], [0, 0, 1, 1], [], []>} : vector<2x8xbf16>, vector<8x16xbf16>, vector<2x16xf32> -> vector<2x16xf32>
    %c1_116 = arith.constant 1 : index
    %c0_117 = arith.constant 0 : index
    %c0_118 = arith.constant 0 : index
    %193 = vector.load %arg6[%c1_116, %c0_117, %c0_118] : memref<4x16x4xbf16, #tpu.memory_space<vmem>>, vector<1x16x4xbf16>
    %194 = vector.shape_cast %193 : vector<1x16x4xbf16> to vector<16x4xbf16>
    %195 = arith.truncf %192 : vector<2x16xf32> to vector<2x16xbf16>
    %cst_119 = arith.constant dense<0.000000e+00> : vector<2x4xf32>
    %196 = tpu.matmul %195, %194, %cst_119 {dimension_numbers = #tpu.dot_dimension_numbers<[1], [0], [0], [1], [0, 0, 1, 1], [], []>} : vector<2x16xbf16>, vector<16x4xbf16>, vector<2x4xf32> -> vector<2x4xf32>
    %197 = arith.addf %189, %196 : vector<2x4xf32>
    %c14 = arith.constant 14 : index
    %c0_120 = arith.constant 0 : index
    %c0_121 = arith.constant 0 : index
    %198 = vector.load %arg2[%c14, %c0_120, %c0_121] : memref<16x46x96xbf16, #tpu.memory_space<vmem>>, vector<1x2x8xbf16>
    %199 = vector.shape_cast %198 : vector<1x2x8xbf16> to vector<2x8xbf16>
    %cst_122 = arith.constant dense<0.000000e+00> : vector<2x16xf32>
    %200 = tpu.matmul %199, %182, %cst_122 {dimension_numbers = #tpu.dot_dimension_numbers<[1], [0], [0], [1], [0, 0, 1, 1], [], []>} : vector<2x8xbf16>, vector<8x16xbf16>, vector<2x16xf32> -> vector<2x16xf32>
    %c2_123 = arith.constant 2 : index
    %c0_124 = arith.constant 0 : index
    %c0_125 = arith.constant 0 : index
    %201 = vector.load %arg6[%c2_123, %c0_124, %c0_125] : memref<4x16x4xbf16, #tpu.memory_space<vmem>>, vector<1x16x4xbf16>
    %202 = vector.shape_cast %201 : vector<1x16x4xbf16> to vector<16x4xbf16>
    %203 = arith.truncf %200 : vector<2x16xf32> to vector<2x16xbf16>
    %cst_126 = arith.constant dense<0.000000e+00> : vector<2x4xf32>
    %204 = tpu.matmul %203, %202, %cst_126 {dimension_numbers = #tpu.dot_dimension_numbers<[1], [0], [0], [1], [0, 0, 1, 1], [], []>} : vector<2x16xbf16>, vector<16x4xbf16>, vector<2x4xf32> -> vector<2x4xf32>
    %205 = arith.addf %197, %204 : vector<2x4xf32>
    %c15 = arith.constant 15 : index
    %c0_127 = arith.constant 0 : index
    %c0_128 = arith.constant 0 : index
    %206 = vector.load %arg2[%c15, %c0_127, %c0_128] : memref<16x46x96xbf16, #tpu.memory_space<vmem>>, vector<1x2x8xbf16>
    %207 = vector.shape_cast %206 : vector<1x2x8xbf16> to vector<2x8xbf16>
    %cst_129 = arith.constant dense<0.000000e+00> : vector<2x16xf32>
    %208 = tpu.matmul %207, %182, %cst_129 {dimension_numbers = #tpu.dot_dimension_numbers<[1], [0], [0], [1], [0, 0, 1, 1], [], []>} : vector<2x8xbf16>, vector<8x16xbf16>, vector<2x16xf32> -> vector<2x16xf32>
    %c3_130 = arith.constant 3 : index
    %c0_131 = arith.constant 0 : index
    %c0_132 = arith.constant 0 : index
    %209 = vector.load %arg6[%c3_130, %c0_131, %c0_132] : memref<4x16x4xbf16, #tpu.memory_space<vmem>>, vector<1x16x4xbf16>
    %210 = vector.shape_cast %209 : vector<1x16x4xbf16> to vector<16x4xbf16>
    %211 = arith.truncf %208 : vector<2x16xf32> to vector<2x16xbf16>
    %cst_133 = arith.constant dense<0.000000e+00> : vector<2x4xf32>
    %212 = tpu.matmul %211, %210, %cst_133 {dimension_numbers = #tpu.dot_dimension_numbers<[1], [0], [0], [1], [0, 0, 1, 1], [], []>} : vector<2x16xbf16>, vector<16x4xbf16>, vector<2x4xf32> -> vector<2x4xf32>
    %213 = arith.addf %205, %212 : vector<2x4xf32>
    %c3_134 = arith.constant 3 : index
    %c0_135 = arith.constant 0 : index
    %214 = vector.load %arg7[%c3_134, %c0_135] : memref<21x128xf32, #tpu.memory_space<vmem>>, vector<1x4xf32>
    %215 = vector.broadcast %214 : vector<1x4xf32> to vector<2x4xf32>
    %216 = arith.addf %213, %215 : vector<2x4xf32>
    %cst_136 = arith.constant 0.000000e+00 : f32
    %217 = vector.broadcast %cst_136 : f32 to vector<2x4xf32>
    %218 = arith.cmpf oge, %216, %217 : vector<2x4xf32>
    %cst_137 = arith.constant 0.00999999977 : f32
    %219 = vector.broadcast %cst_137 : f32 to vector<2x4xf32>
    %220 = arith.mulf %219, %216 : vector<2x4xf32>
    %221 = arith.select %218, %216, %220 : vector<2x4xi1>, vector<2x4xf32>
    %c6_138 = arith.constant 6 : index
    %c0_139 = arith.constant 0 : index
    %222 = vector.load %arg7[%c6_138, %c0_139] : memref<21x128xf32, #tpu.memory_space<vmem>>, vector<1x4xf32>
    %c7_140 = arith.constant 7 : index
    %c0_141 = arith.constant 0 : index
    %223 = vector.load %arg7[%c7_140, %c0_141] : memref<21x128xf32, #tpu.memory_space<vmem>>, vector<1x4xf32>
    %cst_142 = arith.constant dense<0.000000e+00> : vector<4xf32>
    %224 = vector.multi_reduction <add>, %221, %cst_142 [0] : vector<2x4xf32> to vector<4xf32>
    %225 = vector.shape_cast %224 : vector<4xf32> to vector<1x4xf32>
    %cst_143 = arith.constant 5.000000e-01 : f32
    %226 = vector.broadcast %cst_143 : f32 to vector<1x4xf32>
    %227 = arith.mulf %225, %226 : vector<1x4xf32>
    %228 = vector.broadcast %227 : vector<1x4xf32> to vector<2x4xf32>
    %229 = arith.subf %221, %228 : vector<2x4xf32>
    %230 = arith.mulf %229, %229 : vector<2x4xf32>
    %cst_144 = arith.constant dense<0.000000e+00> : vector<4xf32>
    %231 = vector.multi_reduction <add>, %230, %cst_144 [0] : vector<2x4xf32> to vector<4xf32>
    %232 = vector.shape_cast %231 : vector<4xf32> to vector<1x4xf32>
    %cst_145 = arith.constant 5.000000e-01 : f32
    %233 = vector.broadcast %cst_145 : f32 to vector<1x4xf32>
    %234 = arith.mulf %232, %233 : vector<1x4xf32>
    %cst_146 = arith.constant 9.99999974E-6 : f32
    %235 = vector.broadcast %cst_146 : f32 to vector<1x4xf32>
    %236 = arith.addf %234, %235 : vector<1x4xf32>
    %237 = math.rsqrt %236 : vector<1x4xf32>
    %238 = arith.mulf %222, %237 : vector<1x4xf32>
    %239 = vector.broadcast %238 : vector<1x4xf32> to vector<2x4xf32>
    %240 = arith.mulf %229, %239 : vector<2x4xf32>
    %241 = vector.broadcast %223 : vector<1x4xf32> to vector<2x4xf32>
    %242 = arith.addf %240, %241 : vector<2x4xf32>
    %243 = arith.truncf %242 : vector<2x4xf32> to vector<2x4xbf16>
    %c0_147 = arith.constant 0 : index
    %c0_148 = arith.constant 0 : index
    %c0_149 = arith.constant 0 : index
    %244 = vector.load %arg8[%c0_147, %c0_148, %c0_149] : memref<5x128x128xbf16, #tpu.memory_space<vmem>>, vector<1x128x128xbf16>
    %245 = vector.shape_cast %244 : vector<1x128x128xbf16> to vector<128x128xbf16>
    %246 = vector.extract_strided_slice %245 {offsets = [0, 0], sizes = [4, 128], strides = [1, 1]} : vector<128x128xbf16> to vector<4x128xbf16>
    %cst_150 = arith.constant dense<0.000000e+00> : vector<2x128xf32>
    %247 = tpu.matmul %243, %246, %cst_150 {dimension_numbers = #tpu.dot_dimension_numbers<[1], [0], [0], [1], [0, 0, 1, 1], [], []>} : vector<2x4xbf16>, vector<4x128xbf16>, vector<2x128xf32> -> vector<2x128xf32>
    %c0_151 = arith.constant 0 : index
    %c0_152 = arith.constant 0 : index
    %248 = vector.load %arg1[%c0_151, %c0_152] : memref<2x124xbf16, #tpu.memory_space<vmem>>, vector<2x124xbf16>
    %249 = vector.extract_strided_slice %245 {offsets = [4, 0], sizes = [124, 128], strides = [1, 1]} : vector<128x128xbf16> to vector<124x128xbf16>
    %cst_153 = arith.constant dense<0.000000e+00> : vector<2x128xf32>
    %250 = tpu.matmul %248, %249, %cst_153 {dimension_numbers = #tpu.dot_dimension_numbers<[1], [0], [0], [1], [0, 0, 1, 1], [], []>} : vector<2x124xbf16>, vector<124x128xbf16>, vector<2x128xf32> -> vector<2x128xf32>
    %251 = arith.addf %247, %250 : vector<2x128xf32>
    %c8_154 = arith.constant 8 : index
    %c0_155 = arith.constant 0 : index
    %252 = vector.load %arg7[%c8_154, %c0_155] : memref<21x128xf32, #tpu.memory_space<vmem>>, vector<1x128xf32>
    %253 = vector.broadcast %252 : vector<1x128xf32> to vector<2x128xf32>
    %254 = arith.addf %251, %253 : vector<2x128xf32>
    %cst_156 = arith.constant 0.000000e+00 : f32
    %255 = vector.broadcast %cst_156 : f32 to vector<2x128xf32>
    %256 = arith.maximumf %254, %255 : vector<2x128xf32>
    %cst_157 = arith.constant dense<0.000000e+00> : vector<128xf32>
    %257 = vector.multi_reduction <add>, %256, %cst_157 [0] : vector<2x128xf32> to vector<128xf32>
    %258 = vector.shape_cast %257 : vector<128xf32> to vector<1x128xf32>
    %cst_158 = arith.constant 5.000000e-01 : f32
    %259 = vector.broadcast %cst_158 : f32 to vector<1x128xf32>
    %260 = arith.mulf %258, %259 : vector<1x128xf32>
    %261 = vector.broadcast %260 : vector<1x128xf32> to vector<2x128xf32>
    %262 = arith.subf %256, %261 : vector<2x128xf32>
    %263 = arith.mulf %262, %262 : vector<2x128xf32>
    %cst_159 = arith.constant dense<0.000000e+00> : vector<128xf32>
    %264 = vector.multi_reduction <add>, %263, %cst_159 [0] : vector<2x128xf32> to vector<128xf32>
    %265 = vector.shape_cast %264 : vector<128xf32> to vector<1x128xf32>
    %cst_160 = arith.constant 5.000000e-01 : f32
    %266 = vector.broadcast %cst_160 : f32 to vector<1x128xf32>
    %267 = arith.mulf %265, %266 : vector<1x128xf32>
    %cst_161 = arith.constant 9.99999974E-6 : f32
    %268 = vector.broadcast %cst_161 : f32 to vector<1x128xf32>
    %269 = arith.addf %267, %268 : vector<1x128xf32>
    %270 = math.rsqrt %269 : vector<1x128xf32>
    %271 = vector.broadcast %270 : vector<1x128xf32> to vector<2x128xf32>
    %272 = arith.mulf %262, %271 : vector<2x128xf32>
    %c12_162 = arith.constant 12 : index
    %c0_163 = arith.constant 0 : index
    %273 = vector.load %arg7[%c12_162, %c0_163] : memref<21x128xf32, #tpu.memory_space<vmem>>, vector<1x128xf32>
    %274 = vector.broadcast %273 : vector<1x128xf32> to vector<2x128xf32>
    %275 = arith.mulf %272, %274 : vector<2x128xf32>
    %c16 = arith.constant 16 : index
    %c0_164 = arith.constant 0 : index
    %276 = vector.load %arg7[%c16, %c0_164] : memref<21x128xf32, #tpu.memory_space<vmem>>, vector<1x128xf32>
    %277 = vector.broadcast %276 : vector<1x128xf32> to vector<2x128xf32>
    %278 = arith.addf %275, %277 : vector<2x128xf32>
    %c1_165 = arith.constant 1 : index
    %c0_166 = arith.constant 0 : index
    %c0_167 = arith.constant 0 : index
    %279 = vector.load %arg8[%c1_165, %c0_166, %c0_167] : memref<5x128x128xbf16, #tpu.memory_space<vmem>>, vector<1x128x128xbf16>
    %280 = vector.shape_cast %279 : vector<1x128x128xbf16> to vector<128x128xbf16>
    %281 = arith.truncf %278 : vector<2x128xf32> to vector<2x128xbf16>
    %cst_168 = arith.constant dense<0.000000e+00> : vector<2x128xf32>
    %282 = tpu.matmul %281, %280, %cst_168 {dimension_numbers = #tpu.dot_dimension_numbers<[1], [0], [0], [1], [0, 0, 1, 1], [], []>} : vector<2x128xbf16>, vector<128x128xbf16>, vector<2x128xf32> -> vector<2x128xf32>
    %c9_169 = arith.constant 9 : index
    %c0_170 = arith.constant 0 : index
    %283 = vector.load %arg7[%c9_169, %c0_170] : memref<21x128xf32, #tpu.memory_space<vmem>>, vector<1x128xf32>
    %284 = vector.broadcast %283 : vector<1x128xf32> to vector<2x128xf32>
    %285 = arith.addf %282, %284 : vector<2x128xf32>
    %cst_171 = arith.constant 0.000000e+00 : f32
    %286 = vector.broadcast %cst_171 : f32 to vector<2x128xf32>
    %287 = arith.maximumf %285, %286 : vector<2x128xf32>
    %cst_172 = arith.constant dense<0.000000e+00> : vector<128xf32>
    %288 = vector.multi_reduction <add>, %287, %cst_172 [0] : vector<2x128xf32> to vector<128xf32>
    %289 = vector.shape_cast %288 : vector<128xf32> to vector<1x128xf32>
    %cst_173 = arith.constant 5.000000e-01 : f32
    %290 = vector.broadcast %cst_173 : f32 to vector<1x128xf32>
    %291 = arith.mulf %289, %290 : vector<1x128xf32>
    %292 = vector.broadcast %291 : vector<1x128xf32> to vector<2x128xf32>
    %293 = arith.subf %287, %292 : vector<2x128xf32>
    %294 = arith.mulf %293, %293 : vector<2x128xf32>
    %cst_174 = arith.constant dense<0.000000e+00> : vector<128xf32>
    %295 = vector.multi_reduction <add>, %294, %cst_174 [0] : vector<2x128xf32> to vector<128xf32>
    %296 = vector.shape_cast %295 : vector<128xf32> to vector<1x128xf32>
    %cst_175 = arith.constant 5.000000e-01 : f32
    %297 = vector.broadcast %cst_175 : f32 to vector<1x128xf32>
    %298 = arith.mulf %296, %297 : vector<1x128xf32>
    %cst_176 = arith.constant 9.99999974E-6 : f32
    %299 = vector.broadcast %cst_176 : f32 to vector<1x128xf32>
    %300 = arith.addf %298, %299 : vector<1x128xf32>
    %301 = math.rsqrt %300 : vector<1x128xf32>
    %302 = vector.broadcast %301 : vector<1x128xf32> to vector<2x128xf32>
    %303 = arith.mulf %293, %302 : vector<2x128xf32>
    %c13_177 = arith.constant 13 : index
    %c0_178 = arith.constant 0 : index
    %304 = vector.load %arg7[%c13_177, %c0_178] : memref<21x128xf32, #tpu.memory_space<vmem>>, vector<1x128xf32>
    %305 = vector.broadcast %304 : vector<1x128xf32> to vector<2x128xf32>
    %306 = arith.mulf %303, %305 : vector<2x128xf32>
    %c17 = arith.constant 17 : index
    %c0_179 = arith.constant 0 : index
    %307 = vector.load %arg7[%c17, %c0_179] : memref<21x128xf32, #tpu.memory_space<vmem>>, vector<1x128xf32>
    %308 = vector.broadcast %307 : vector<1x128xf32> to vector<2x128xf32>
    %309 = arith.addf %306, %308 : vector<2x128xf32>
    %c2_180 = arith.constant 2 : index
    %c0_181 = arith.constant 0 : index
    %c0_182 = arith.constant 0 : index
    %310 = vector.load %arg8[%c2_180, %c0_181, %c0_182] : memref<5x128x128xbf16, #tpu.memory_space<vmem>>, vector<1x128x128xbf16>
    %311 = vector.shape_cast %310 : vector<1x128x128xbf16> to vector<128x128xbf16>
    %312 = arith.truncf %309 : vector<2x128xf32> to vector<2x128xbf16>
    %cst_183 = arith.constant dense<0.000000e+00> : vector<2x128xf32>
    %313 = tpu.matmul %312, %311, %cst_183 {dimension_numbers = #tpu.dot_dimension_numbers<[1], [0], [0], [1], [0, 0, 1, 1], [], []>} : vector<2x128xbf16>, vector<128x128xbf16>, vector<2x128xf32> -> vector<2x128xf32>
    %c10_184 = arith.constant 10 : index
    %c0_185 = arith.constant 0 : index
    %314 = vector.load %arg7[%c10_184, %c0_185] : memref<21x128xf32, #tpu.memory_space<vmem>>, vector<1x128xf32>
    %315 = vector.broadcast %314 : vector<1x128xf32> to vector<2x128xf32>
    %316 = arith.addf %313, %315 : vector<2x128xf32>
    %cst_186 = arith.constant 0.000000e+00 : f32
    %317 = vector.broadcast %cst_186 : f32 to vector<2x128xf32>
    %318 = arith.maximumf %316, %317 : vector<2x128xf32>
    %cst_187 = arith.constant dense<0.000000e+00> : vector<128xf32>
    %319 = vector.multi_reduction <add>, %318, %cst_187 [0] : vector<2x128xf32> to vector<128xf32>
    %320 = vector.shape_cast %319 : vector<128xf32> to vector<1x128xf32>
    %cst_188 = arith.constant 5.000000e-01 : f32
    %321 = vector.broadcast %cst_188 : f32 to vector<1x128xf32>
    %322 = arith.mulf %320, %321 : vector<1x128xf32>
    %323 = vector.broadcast %322 : vector<1x128xf32> to vector<2x128xf32>
    %324 = arith.subf %318, %323 : vector<2x128xf32>
    %325 = arith.mulf %324, %324 : vector<2x128xf32>
    %cst_189 = arith.constant dense<0.000000e+00> : vector<128xf32>
    %326 = vector.multi_reduction <add>, %325, %cst_189 [0] : vector<2x128xf32> to vector<128xf32>
    %327 = vector.shape_cast %326 : vector<128xf32> to vector<1x128xf32>
    %cst_190 = arith.constant 5.000000e-01 : f32
    %328 = vector.broadcast %cst_190 : f32 to vector<1x128xf32>
    %329 = arith.mulf %327, %328 : vector<1x128xf32>
    %cst_191 = arith.constant 9.99999974E-6 : f32
    %330 = vector.broadcast %cst_191 : f32 to vector<1x128xf32>
    %331 = arith.addf %329, %330 : vector<1x128xf32>
    %332 = math.rsqrt %331 : vector<1x128xf32>
    %333 = vector.broadcast %332 : vector<1x128xf32> to vector<2x128xf32>
    %334 = arith.mulf %324, %333 : vector<2x128xf32>
    %c14_192 = arith.constant 14 : index
    %c0_193 = arith.constant 0 : index
    %335 = vector.load %arg7[%c14_192, %c0_193] : memref<21x128xf32, #tpu.memory_space<vmem>>, vector<1x128xf32>
    %336 = vector.broadcast %335 : vector<1x128xf32> to vector<2x128xf32>
    %337 = arith.mulf %334, %336 : vector<2x128xf32>
    %c18 = arith.constant 18 : index
    %c0_194 = arith.constant 0 : index
    %338 = vector.load %arg7[%c18, %c0_194] : memref<21x128xf32, #tpu.memory_space<vmem>>, vector<1x128xf32>
    %339 = vector.broadcast %338 : vector<1x128xf32> to vector<2x128xf32>
    %340 = arith.addf %337, %339 : vector<2x128xf32>
    %c3_195 = arith.constant 3 : index
    %c0_196 = arith.constant 0 : index
    %c0_197 = arith.constant 0 : index
    %341 = vector.load %arg8[%c3_195, %c0_196, %c0_197] : memref<5x128x128xbf16, #tpu.memory_space<vmem>>, vector<1x128x128xbf16>
    %342 = vector.shape_cast %341 : vector<1x128x128xbf16> to vector<128x128xbf16>
    %343 = arith.truncf %340 : vector<2x128xf32> to vector<2x128xbf16>
    %cst_198 = arith.constant dense<0.000000e+00> : vector<2x128xf32>
    %344 = tpu.matmul %343, %342, %cst_198 {dimension_numbers = #tpu.dot_dimension_numbers<[1], [0], [0], [1], [0, 0, 1, 1], [], []>} : vector<2x128xbf16>, vector<128x128xbf16>, vector<2x128xf32> -> vector<2x128xf32>
    %c11_199 = arith.constant 11 : index
    %c0_200 = arith.constant 0 : index
    %345 = vector.load %arg7[%c11_199, %c0_200] : memref<21x128xf32, #tpu.memory_space<vmem>>, vector<1x128xf32>
    %346 = vector.broadcast %345 : vector<1x128xf32> to vector<2x128xf32>
    %347 = arith.addf %344, %346 : vector<2x128xf32>
    %cst_201 = arith.constant 0.000000e+00 : f32
    %348 = vector.broadcast %cst_201 : f32 to vector<2x128xf32>
    %349 = arith.maximumf %347, %348 : vector<2x128xf32>
    %cst_202 = arith.constant dense<0.000000e+00> : vector<128xf32>
    %350 = vector.multi_reduction <add>, %349, %cst_202 [0] : vector<2x128xf32> to vector<128xf32>
    %351 = vector.shape_cast %350 : vector<128xf32> to vector<1x128xf32>
    %cst_203 = arith.constant 5.000000e-01 : f32
    %352 = vector.broadcast %cst_203 : f32 to vector<1x128xf32>
    %353 = arith.mulf %351, %352 : vector<1x128xf32>
    %354 = vector.broadcast %353 : vector<1x128xf32> to vector<2x128xf32>
    %355 = arith.subf %349, %354 : vector<2x128xf32>
    %356 = arith.mulf %355, %355 : vector<2x128xf32>
    %cst_204 = arith.constant dense<0.000000e+00> : vector<128xf32>
    %357 = vector.multi_reduction <add>, %356, %cst_204 [0] : vector<2x128xf32> to vector<128xf32>
    %358 = vector.shape_cast %357 : vector<128xf32> to vector<1x128xf32>
    %cst_205 = arith.constant 5.000000e-01 : f32
    %359 = vector.broadcast %cst_205 : f32 to vector<1x128xf32>
    %360 = arith.mulf %358, %359 : vector<1x128xf32>
    %cst_206 = arith.constant 9.99999974E-6 : f32
    %361 = vector.broadcast %cst_206 : f32 to vector<1x128xf32>
    %362 = arith.addf %360, %361 : vector<1x128xf32>
    %363 = math.rsqrt %362 : vector<1x128xf32>
    %364 = vector.broadcast %363 : vector<1x128xf32> to vector<2x128xf32>
    %365 = arith.mulf %355, %364 : vector<2x128xf32>
    %c15_207 = arith.constant 15 : index
    %c0_208 = arith.constant 0 : index
    %366 = vector.load %arg7[%c15_207, %c0_208] : memref<21x128xf32, #tpu.memory_space<vmem>>, vector<1x128xf32>
    %367 = vector.broadcast %366 : vector<1x128xf32> to vector<2x128xf32>
    %368 = arith.mulf %365, %367 : vector<2x128xf32>
    %c19 = arith.constant 19 : index
    %c0_209 = arith.constant 0 : index
    %369 = vector.load %arg7[%c19, %c0_209] : memref<21x128xf32, #tpu.memory_space<vmem>>, vector<1x128xf32>
    %370 = vector.broadcast %369 : vector<1x128xf32> to vector<2x128xf32>
    %371 = arith.addf %368, %370 : vector<2x128xf32>
    %c4_210 = arith.constant 4 : index
    %c0_211 = arith.constant 0 : index
    %c0_212 = arith.constant 0 : index
    %372 = vector.load %arg8[%c4_210, %c0_211, %c0_212] : memref<5x128x128xbf16, #tpu.memory_space<vmem>>, vector<1x128x1xbf16>
    %373 = vector.shape_cast %372 : vector<1x128x1xbf16> to vector<128x1xbf16>
    %374 = arith.truncf %371 : vector<2x128xf32> to vector<2x128xbf16>
    %cst_213 = arith.constant dense<0.000000e+00> : vector<2x1xf32>
    %375 = tpu.matmul %374, %373, %cst_213 {dimension_numbers = #tpu.dot_dimension_numbers<[1], [0], [0], [1], [0, 0, 1, 1], [], []>} : vector<2x128xbf16>, vector<128x1xbf16>, vector<2x1xf32> -> vector<2x1xf32>
    %c20 = arith.constant 20 : index
    %c0_214 = arith.constant 0 : index
    %376 = vector.load %arg7[%c20, %c0_214] : memref<21x128xf32, #tpu.memory_space<vmem>>, vector<1x1xf32>
    %377 = vector.broadcast %376 : vector<1x1xf32> to vector<2x1xf32>
    %378 = arith.addf %375, %377 : vector<2x1xf32>
    %c0_215 = arith.constant 0 : index
    %c0_216 = arith.constant 0 : index
    %379 = vector.load %arg9[%c0_215, %c0_216] : memref<2x1xf32, #tpu.memory_space<vmem>>, vector<2x1xf32>
    tpu.vector_store %arg9[%c0_215, %c0_216], %378 {strides = array<i32>} : memref<2x1xf32, #tpu.memory_space<vmem>>, vector<2x1xf32>,
    return
  }
}

</mosaic_0001>

<bundles_post_ra>
// kernel: forward.1
= control target key start
LH: loop header
LB: loop body
LE: loop exit
PB: predicated region body
PF: predicated region fallthrough
CT: control target
= control target key end

     0   :  { %v6478_v0 = vmov 0.0   ;;  %vm6479_vm0 = vmmov 0   ;;  %v6480_v3 = vmov 0   ;;  %vm174_vm1 = vcmask 785408   ;;  %s6481_s20 = smov 116   ;;  %s6482_s21 = smov 124   ;;  %s8002_s0 = inlined_call_operand.vmem [shape: bf16[96,384], index: 0, kind: input, shape index: {}]   ;;  %s8003_s2 = inlined_call_operand.vmem [shape: bf16[16,46,96], index: 2, kind: input, shape index: {}]   ;;  %s8004_s3 = inlined_call_operand.vmem [shape: bf16[4,384,92], index: 3, kind: input, shape index: {}]   ;;  %s8005_s4 = inlined_call_operand.vmem [shape: bf16[4,92,40], index: 4, kind: input, shape index: {}]   ;;  %s8006_s7 = inlined_call_operand.vmem [shape: f32[21,128], index: 7, kind: input, shape index: {}]   ;;  %s8007_s5 = inlined_call_operand.vmem [shape: bf16[4,40,16], index: 5, kind: input, shape index: {}]   ;;  %s8008_s6 = inlined_call_operand.vmem [shape: bf16[4,16,4], index: 6, kind: input, shape index: {}]   ;;  %s8009_s8 = inlined_call_operand.vmem [shape: bf16[5,128,128], index: 8, kind: input, shape index: {}]   ;;  %s8010_s1 = inlined_call_operand.vmem [shape: bf16[2,124], index: 1, kind: input, shape index: {}]   ;;  %s8011_s9 = inlined_call_operand.vmem [shape: f32[2,1], index: 9, kind: output, shape index: {}]  }
   0x1   :  { %5661 = vmatprep.subr.bf16.mxu1 %v6478_v0  ;;  %v6228_v1 = vld [vmem:[%s8002_s0 + $0x4] ss:$12 sps:$4 sm:$0xff]   ;;  %5673 = vmatprep.mubr.msk.bf16.mxu1 %vm6479_vm0, %v6478_v0  ;;  %v6230_v2 = vld [vmem:[%s8002_s0 + $0x8] ss:$12 sps:$4 sm:$0xff]   ;;  %v6231_v4 = vld [vmem:[%s8002_s0] ss:$12 sps:$4 sm:$0xff]  }
   0x2   :  { %216 = vmatprep.mubr.bf16.mxu0 %v6480_v3  ;;  %184 = vmatprep.subr.bf16.mxu0 %v6228_v1  ;;  %v6232_v5 = vld [vmem:[%s8002_s0 + $0x1c] ss:$12 sps:$4 sm:$0xff]   ;;  %v6234_v6 = vld [vmem:[%s8002_s0 + $0x20] ss:$12 sps:$4 sm:$0xff]   ;;  %v6235_v7 = vld [vmem:[%s8002_s0 + $0x18] ss:$12 sps:$4 sm:$0xff]  }
   0x3   :  { %5662 = vmatpush3.bf16.msra.mxu1 %v6230_v2  ;;  %185 = vmatpush1.bf16.msra.mxu0 %v6231_v4  ;;  %v6236_v8 = vld [vmem:[%s8002_s0 + $0x34] ss:$12 sps:$4 sm:$0xff]   ;;  %v6238_v9 = vld [vmem:[%s8002_s0 + $0x38] ss:$12 sps:$4 sm:$0xff]   ;;  %v6239_v10 = vld [vmem:[%s8002_s0 + $0x30] ss:$12 sps:$4 sm:$0xff]  }
   0x4   :  { %5663 = vmatprep.subr.bf16.mxu1 %v6478_v0  ;;  %186 = vmatprep.subr.bf16.mxu0 %v6232_v5  ;;  %v6240_v11 = vld [vmem:[%s8002_s0 + $0x4c] ss:$12 sps:$4 sm:$0xff]   ;;  %v6242_v12 = vld [vmem:[%s8002_s0 + $0x50] ss:$12 sps:$4 sm:$0xff]   ;;  %v6243_v13 = vld [vmem:[%s8002_s0 + $0x48] ss:$12 sps:$4 sm:$0xff]  }
   0x5   :  { %v6244_v14 = vld [vmem:[%s8002_s0 + $0x64] ss:$12 sps:$4 sm:$0xff]   ;;  %v6246_v15 = vld [vmem:[%s8002_s0 + $0x68] ss:$12 sps:$4 sm:$0xff]   ;;  %v6247_v16 = vld [vmem:[%s8002_s0 + $0x60] ss:$12 sps:$4 sm:$0xff]  }
   0x6   :  { %v6605_v17 = vld [vmem:[%s8002_s0 + $0x7c] ss:$12 sps:$4 sm:$0xff]   ;;  %v6610_v18 = vld [vmem:[%s8002_s0 + $0x80] ss:$12 sps:$4 sm:$0xff]   ;;  %v6616_v19 = vld [vmem:[%s8002_s0 + $0x78] ss:$12 sps:$4 sm:$0xff]  }
   0x7   :  { %5664 = vmatpush3.bf16.msra.mxu1 %v6234_v6  ;;  %187 = vmatpush1.bf16.msra.mxu0 %v6235_v7  ;;  %v6252_v20 = vld [vmem:[%s8003_s2] sm:$0xff]   ;;  %v6253_v21 = vld [vmem:[%s8003_s2 + $0x8] sm:$0xff]   ;;  %v6254_v22 = vld [vmem:[%s8003_s2 + $0x10] sm:$0x7f]   ;;  %vm2076_vm2 = vcmask 375808   ;;  %vm2083_vm9 = vcmask 1046528  }
   0x8   :  { %5665 = vmatprep.subr.bf16.mxu1 %v6478_v0  ;;  %188 = vmatprep.subr.bf16.mxu0 %v6236_v8  ;;  %v6259_v23 = vld [vmem:[%s8004_s3 + $0x100] sm:$0xff]   ;;  %v6255_v24 = vld [vmem:[%s8003_s2 + $0x18] sm:$0xff]   ;;  %v6257_v28 = vld [vmem:[%s8003_s2 + $0x28] sm:$0x7f]   ;;  %vm2272_vm10 = vcmask 1045504   ;;  %vm2265_vm11 = vcmask 752640  }
   0x9   :  { %v6258_v25 = vld [vmem:[%s8004_s3 + $0x140] sm:$0xff]   ;;  %v6261_v29 = vld [vmem:[%s8004_s3 + $0x148] sm:$0xff]   ;;  %v6264_v32 = vld [vmem:[%s8004_s3 + $0x150] sm:$0xff]   ;;  %vm2787_vm14 = vcmask 326656   ;;  %s6485_s22 = smov 104   ;;  %s6486_s23 = smov 108  }
   0xa   :  { %v6260_v26 = vld [vmem:[%s8004_s3 + $0xc0] sm:$0xff]   ;;  %v6262_v30 = vld [vmem:[%s8004_s3 + $0x108] sm:$0xff]   ;;  %v6265_v33 = vld [vmem:[%s8004_s3 + $0x110] sm:$0xff]   ;;  %s6487_s24 = smov 96   ;;  %s6488_s25 = smov 100  }
   0xb   :  { %5666 = vmatpush3.bf16.msra.mxu1 %v6238_v9  ;;  %189 = vmatpush1.bf16.msra.mxu0 %v6239_v10  ;;  %v6256_v27 = vld [vmem:[%s8003_s2 + $0x20] sm:$0xff]   ;;  %v6263_v31 = vld [vmem:[%s8004_s3 + $0xc8] sm:$0xff]   ;;  %v6266_v34 = vld [vmem:[%s8004_s3 + $0xd0] sm:$0xff]   ;;  %s6489_s26 = smov 92   ;;  %s6490_s27 = smov 8  }
   0xc   :  { %5667 = vmatprep.subr.bf16.mxu1 %v6478_v0  ;;  %190 = vmatprep.subr.bf16.mxu0 %v6240_v11  ;;  %v6267_v35 = vld [vmem:[%s8004_s3 + $0x158] sm:$0xff]   ;;  %v6270_v38 = vld [vmem:[%s8004_s3 + $0x160] sm:$0xff]   ;;  %v6273_v41 = vld [vmem:[%s8004_s3 + $0x168] sm:$0xff]   ;;  %s6491_s28 = smov 4   ;;  %s6492_s29 = smov 16  }
   0xd   :  { %v6268_v36 = vld [vmem:[%s8004_s3 + $0x118] sm:$0xff]   ;;  %v6271_v39 = vld [vmem:[%s8004_s3 + $0x120] sm:$0xff]   ;;  %v6274_v42 = vld [vmem:[%s8004_s3 + $0x128] sm:$0xff]   ;;  %s6493_s30 = smov 12   ;;  %s6494_s10 = smov 24  }
   0xe   :  { %v6269_v37 = vld [vmem:[%s8004_s3 + $0xd8] sm:$0xff]   ;;  %v6272_v40 = vld [vmem:[%s8004_s3 + $0xe0] sm:$0xff]   ;;  %v6275_v43 = vld [vmem:[%s8004_s3 + $0xe8] sm:$0xff]   ;;  %s6495_s11 = smov 20   ;;  %s6496_s12 = smov 32  }
   0xf   :  { %5668 = vmatpush3.bf16.msra.mxu1 %v6242_v12  ;;  %191 = vmatpush1.bf16.msra.mxu0 %v6243_v13  ;;  %v6276_v44 = vld [vmem:[%s8004_s3 + $0x170] sm:$0xff]   ;;  %v6279_v47 = vld [vmem:[%s8004_s3 + $0x178] sm:$0xff]   ;;  %v6283_v50 = vld [vmem:[%s8004_s3 + $0x40] sm:$0xff]   ;;  %s6497_s13 = smov 28   ;;  %s6498_s14 = smov 36  }
  0x10   :  { %5669 = vmatprep.subr.bf16.mxu1 %v6478_v0  ;;  %192 = vmatprep.subr.bf16.mxu0 %v6244_v14  ;;  %v6277_v45 = vld [vmem:[%s8004_s3 + $0x130] sm:$0xff]   ;;  %v6280_v48 = vld [vmem:[%s8004_s3 + $0x138] sm:$0xff]  }
  0x11   :  { %v6278_v46 = vld [vmem:[%s8004_s3 + $0xf0] sm:$0xff]   ;;  %v6281_v49 = vld [vmem:[%s8004_s3 + $0xf8] sm:$0xff]  }
  0x13   :  { %5670 = vmatpush3.bf16.msra.mxu1 %v6246_v15  ;;  %193 = vmatpush1.bf16.msra.mxu0 %v6247_v16 }
  0x14   :  { %5671 = vmatprep.subr.bf16.mxu1 %v6478_v0  ;;  %194 = vmatprep.subr.bf16.mxu0 %v6605_v17 }
  0x17   :  { %5672 = vmatpush3.bf16.msra.mxu1 %v6610_v18  ;;  %195 = vmatpush1.bf16.msra.mxu0 %v6616_v19 }
  0x18   :  { %5685 = vmatprep.subr.bf16.mxu1 %v6478_v0  ;;  %392 = vmatprep.subr.bf16.mxu0 %v6228_v1 }
  0x1a   :  { %5674 = vmatmul.mubr.msk.bf16.vlgmr.msra.gmra.mrb[0].mxu1 %vm174_vm1, %v6252_v20  ;;  %4730 = vmatmul.mubr.msk.bf16.vlgmr.msra.gmra.mrb[0].mxu0 %vm174_vm1, %v6252_v20 }
  0x1b   :  { %5686 = vmatpush3.bf16.msra.mxu1 %v6230_v2  ;;  %393 = vmatpush1.bf16.msra.mxu0 %v6231_v4 }
  0x1c   :  { %5687 = vmatprep.subr.bf16.mxu1 %v6478_v0  ;;  %394 = vmatprep.subr.bf16.mxu0 %v6232_v5 }
  0x1d   :  { %5677 = vmatprep.mubr.msk.bf16.mxu1 %vm6479_vm0, %v6478_v0  ;;  %226 = vmatprep.mubr.bf16.mxu0 %v6480_v3 }
  0x1f   :  { %5688 = vmatpush3.bf16.msra.mxu1 %v6234_v6  ;;  %395 = vmatpush1.bf16.msra.mxu0 %v6235_v7 }
  0x20   :  { %5689 = vmatprep.subr.bf16.mxu1 %v6478_v0  ;;  %396 = vmatprep.subr.bf16.mxu0 %v6236_v8 }
  0x22   :  { %5678 = vmatmul.mubr.msk.bf16.gmra.mrb[4].mxu1 %vm174_vm1, %v6253_v21  ;;  %4731 = vmatmul.mubr.msk.bf16.gmra.mrb[4].mxu0 %vm174_vm1, %v6253_v21 }
  0x23   :  { %5690 = vmatpush3.bf16.msra.mxu1 %v6238_v9  ;;  %397 = vmatpush1.bf16.msra.mxu0 %v6239_v10 }
  0x24   :  { %5691 = vmatprep.subr.bf16.mxu1 %v6478_v0  ;;  %398 = vmatprep.subr.bf16.mxu0 %v6240_v11 }
  0x25   :  { %5681 = vmatprep.mubr.msk.bf16.mxu1 %vm6479_vm0, %v6478_v0  ;;  %236 = vmatprep.mubr.bf16.mxu0 %v6480_v3 }
  0x27   :  { %5692 = vmatpush3.bf16.msra.mxu1 %v6242_v12  ;;  %399 = vmatpush1.bf16.msra.mxu0 %v6243_v13 }
  0x28   :  { %5693 = vmatprep.subr.bf16.mxu1 %v6478_v0  ;;  %400 = vmatprep.subr.bf16.mxu0 %v6244_v14 }
  0x2a   :  { %5682 = vmatmul.mubr.msk.bf16.gmra.mrb[8].mxu1 %vm174_vm1, %v6254_v22  ;;  %4732 = vmatmul.mubr.msk.bf16.gmra.mrb[8].mxu0 %vm174_vm1, %v6254_v22 }
  0x2b   :  { %5694 = vmatpush3.bf16.msra.mxu1 %v6246_v15  ;;  %401 = vmatpush1.bf16.msra.mxu0 %v6247_v16 }
  0x2c   :  { %5695 = vmatprep.subr.bf16.mxu1 %v6478_v0  ;;  %402 = vmatprep.subr.bf16.mxu0 %v6605_v17 }
  0x2d   :  { %5697 = vmatprep.mubr.msk.bf16.mxu1 %vm6479_vm0, %v6478_v0  ;;  %424 = vmatprep.mubr.bf16.mxu0 %v6480_v3 }
  0x2f   :  { %5696 = vmatpush3.bf16.msra.mxu1 %v6610_v18  ;;  %403 = vmatpush1.bf16.msra.mxu0 %v6616_v19 }
  0x30   :  { %5709 = vmatprep.subr.bf16.mxu1 %v6478_v0  ;;  %5320 = vmatprep.subr.bf16.mxu0 %v6259_v23 }
  0x32   :  { %5698 = vmatmul.mubr.msk.bf16.vlgmr.msra.gmra.mrb[12].mxu1 %vm174_vm1, %v6255_v24  ;;  %4745 = vmatmul.mubr.msk.bf16.vlgmr.msra.gmra.mrb[12].mxu0 %vm174_vm1, %v6255_v24 }
  0x33   :  { %5701 = vmatprep.mubr.msk.bf16.mxu1 %vm6479_vm0, %v6478_v0  ;;  %434 = vmatprep.mubr.bf16.mxu0 %v6480_v3 }
  0x34   :  { %5710 = vmatpush3.bf16.msra.mxu1 %v6258_v25  ;;  %5321 = vmatpush3.bf16.msra.mxu0 %v6260_v26 }
  0x35   :  { %5711 = vmatprep.subr.bf16.mxu1 %v6478_v0  ;;  %5322 = vmatprep.subr.bf16.mxu0 %v6262_v30  ;;  %v6282_v30 = vld [vmem:[%s8004_s3 + $0x80] sm:$0xff]  }
  0x38   :  { %5712 = vmatpush3.bf16.msra.mxu1 %v6261_v29  ;;  %5323 = vmatpush3.bf16.msra.mxu0 %v6263_v31 }
  0x39   :  { %5713 = vmatprep.subr.bf16.mxu1 %v6478_v0  ;;  %5324 = vmatprep.subr.bf16.mxu0 %v6265_v33 }
  0x3a   :  { %5702 = vmatmul.mubr.msk.bf16.gmra.mrb[16].mxu1 %vm174_vm1, %v6256_v27  ;;  %4746 = vmatmul.mubr.msk.bf16.gmra.mrb[16].mxu0 %vm174_vm1, %v6256_v27 }
  0x3b   :  { %5705 = vmatprep.mubr.msk.bf16.mxu1 %vm6479_vm0, %v6478_v0  ;;  %444 = vmatprep.mubr.bf16.mxu0 %v6480_v3 }
  0x3c   :  { %5714 = vmatpush3.bf16.msra.mxu1 %v6264_v32  ;;  %5325 = vmatpush3.bf16.msra.mxu0 %v6266_v34 }
  0x3d   :  { %5715 = vmatprep.subr.bf16.mxu1 %v6478_v0  ;;  %5326 = vmatprep.subr.bf16.mxu0 %v6268_v36 }
  0x40   :  { %5716 = vmatpush3.bf16.msra.mxu1 %v6267_v35  ;;  %5327 = vmatpush3.bf16.msra.mxu0 %v6269_v37  ;;  %v6284_v37 = vld [vmem:[%s8004_s3] sm:$0xff]  }
  0x41   :  { %5717 = vmatprep.subr.bf16.mxu1 %v6478_v0  ;;  %5328 = vmatprep.subr.bf16.mxu0 %v6271_v39  ;;  %v6286_v39 = vld [vmem:[%s8004_s3 + $0x48] sm:$0xff]  }
  0x42   :  { %5706 = vmatmul.mubr.msk.bf16.gmra.mrb[20].mxu1 %vm174_vm1, %v6257_v28  ;;  %4747 = vmatmul.mubr.msk.bf16.gmra.mrb[20].mxu0 %vm174_vm1, %v6257_v28 }
  0x43   :  { %5725 = vmatprep.mubr.msk.bf16.mxu1 %vm6479_vm0, %v6478_v0 }
  0x44   :  { %5718 = vmatpush3.bf16.msra.mxu1 %v6270_v38  ;;  %5329 = vmatpush3.bf16.msra.mxu0 %v6272_v40  ;;  %v6285_v38 = vld [vmem:[%s8004_s3 + $0x88] sm:$0xff]  }
  0x45   :  { %5719 = vmatprep.subr.bf16.mxu1 %v6478_v0  ;;  %5330 = vmatprep.subr.bf16.mxu0 %v6274_v42  ;;  %v6287_v42 = vld [vmem:[%s8004_s3 + $0x8] sm:$0xff]  }
  0x48   :  { %5720 = vmatpush3.bf16.msra.mxu1 %v6273_v41  ;;  %5331 = vmatpush3.bf16.msra.mxu0 %v6275_v43 }
  0x49   :  { %5721 = vmatprep.subr.bf16.mxu1 %v6478_v0  ;;  %5332 = vmatprep.subr.bf16.mxu0 %v6277_v45  ;;  %v6288_v45 = vld [vmem:[%s8004_s3 + $0x90] sm:$0xff]  }
  0x4c   :  { %5722 = vmatpush3.bf16.msra.mxu1 %v6276_v44  ;;  %5333 = vmatpush3.bf16.msra.mxu0 %v6278_v46  ;;  %v6289_v46 = vld [vmem:[%s8004_s3 + $0x50] sm:$0xff]  }
  0x4d   :  { %5723 = vmatprep.subr.bf16.mxu1 %v6478_v0  ;;  %5334 = vmatprep.subr.bf16.mxu0 %v6280_v48 }
  0x50   :  { %5724 = vmatpush3.bf16.msra.mxu1 %v6279_v47  ;;  %5335 = vmatpush3.bf16.msra.mxu0 %v6281_v49 }
  0x51   :  { %5737 = vmatprep.subr.bf16.mxu1 %v6478_v0  ;;  %5365 = vmatprep.subr.bf16.mxu0 %v6283_v50 }
  0xed   :  { %v6761_v51 = vpop.f32.mrb[0].mxu1  ;;  %v6763_v52 = vpop.f32.mrb[0].mxu0 }
  0xee   :  { %v5675_v53 = vpop.f32.mrb[1].mxu1  ;;  %v6765_v54 = vpop.f32.mrb[1].mxu0 }
  0xef   :  { %v6767_v55 = vpop.f32.mrb[2].mxu1  ;;  %v6769_v56 = vpop.f32.mrb[2].mxu0 }
  0xf0   :  { %v354_v57 = vpack.c.bf16 %v6767_v55, %v6761_v51  ;;  %v5676_v58 = vpop.f32.mrb[3].mxu1  ;;  %v352_v59 = vpack.c.bf16 %v6769_v56, %v6763_v52  ;;  %v6775_v60 = vpop.f32.mrb[3].mxu0  ;;  %v6928_v51 = vld [vmem:[%s8002_s0] ss:$12 sps:$4 sm:$0xff]   ;;  %v6934_v55 = vld [vmem:[%s8002_s0 + $0x1c] ss:$12 sps:$4 sm:$0xff]  }
  0xf1   :  { %v353_v61 = vpack.c.bf16 %v6775_v60, %v6765_v54  ;;  %v6302_v54 = vld [vmem:[%s8004_s3 + $0x30] sm:$0xff]   ;;  %v6303_v60 = vld [vmem:[%s8004_s3 + $0xb8] sm:$0xff]   ;;  %v6940_v52 = vld [vmem:[%s8002_s0 + $0x20] ss:$12 sps:$4 sm:$0xff]  }
  0xf2   :  { %v6950_v56 = vld [vmem:[%s8002_s0 + $0x18] ss:$12 sps:$4 sm:$0xff]  }
  0xf5   :  { %v6779_v62 = vpop.f32.mrb[4].mxu1  ;;  %v6781_v63 = vpop.f32.mrb[4].mxu0 }
  0xf6   :  { %v5679_v1 = vpop.f32.mrb[5].mxu1  ;;  %v6783_v2 = vpop.f32.mrb[5].mxu0 }
  0xf7   :  { %v6785_v4 = vpop.f32.mrb[6].mxu1  ;;  %v6787_v5 = vpop.f32.mrb[6].mxu0 }
  0xf8   :  { %v357_v6 = vpack.c.bf16 %v6785_v4, %v6779_v62  ;;  %v5680_v7 = vpop.f32.mrb[7].mxu1  ;;  %v355_v8 = vpack.c.bf16 %v6787_v5, %v6781_v63  ;;  %v6793_v9 = vpop.f32.mrb[7].mxu0  ;;  %v6977_v62 = vld [vmem:[%s8002_s0 + $0x30] ss:$12 sps:$4 sm:$0xff]   ;;  %v6999_v4 = vld [vmem:[%s8002_s0 + $0x48] ss:$12 sps:$4 sm:$0xff]  }
  0xf9   :  { %v356_v10 = vpack.c.bf16 %v6793_v9, %v6783_v2  ;;  %v6290_v7 = vld [vmem:[%s8004_s3 + $0x10] sm:$0xff]   ;;  %v6983_v2 = vld [vmem:[%s8002_s0 + $0x4c] ss:$12 sps:$4 sm:$0xff]  }
  0xfa   :  { %v6989_v63 = vld [vmem:[%s8002_s0 + $0x50] ss:$12 sps:$4 sm:$0xff]  }
  0xfb   :  { %v7005_v5 = vld [vmem:[%s8002_s0 + $0x64] ss:$12 sps:$4 sm:$0xff]  }
  0xfc   :  { %v6306_v9 = vld [vmem:[%s8003_s2 + $0x30] sm:$0xff]  }
  0xfd   :  { %v6797_v11 = vpop.f32.mrb[8].mxu1  ;;  %v6799_v12 = vpop.f32.mrb[8].mxu0 }
  0xfe   :  { %v5683_v13 = vpop.f32.mrb[9].mxu1  ;;  %v6801_v14 = vpop.f32.mrb[9].mxu0 }
  0xff   :  { %v6803_v15 = vpop.f32.mrb[10].mxu1  ;;  %v6805_v16 = vpop.f32.mrb[10].mxu0  ;;  %v6291_v13 = vld [vmem:[%s8004_s3 + $0x98] sm:$0xff]  }
 0x100   :  { %v360_v20 = vpack.c.bf16 %v6803_v15, %v6797_v11  ;;  %v5684_v21 = vpop.f32.mrb[11].mxu1  ;;  %v358_v22 = vpack.c.bf16 %v6805_v16, %v6799_v12  ;;  %v6811_v23 = vpop.f32.mrb[11].mxu0  ;;  %v6311_v11 = vld [vmem:[%s8004_s3 + $0x200] sm:$0xff]   ;;  %v6312_v12 = vld [vmem:[%s8004_s3 + $0x1c8] sm:$0xff]   ;;  %v6315_v16 = vld [vmem:[%s8004_s3 + $0x1d0] sm:$0xff]  }
 0x101   :  { %v359_v24 = vpack.c.bf16 %v6811_v23, %v6801_v14  ;;  %v6292_v21 = vld [vmem:[%s8004_s3 + $0x58] sm:$0xff]   ;;  %v6313_v14 = vld [vmem:[%s8004_s3 + $0x188] sm:$0xff]  }
 0x102   :  { %v6314_v15 = vld [vmem:[%s8004_s3 + $0x208] sm:$0xff]   ;;  %v6318_v23 = vld [vmem:[%s8004_s3 + $0x1d8] sm:$0xff]  }
 0x105   :  { %v489_v25 = vpop.f32.mrb[12].mxu1  ;;  %v426_v26 = vpop.f32.mrb[12].mxu0 }
 0x106   :  { %v5699_v27 = vpop.f32.mrb[13].mxu1  ;;  %v428_v28 = vpop.f32.mrb[13].mxu0 }
 0x107   :  { %v492_v29 = vpop.f32.mrb[14].mxu1  ;;  %v430_v32 = vpop.f32.mrb[14].mxu0  ;;  %v6293_v27 = vld [vmem:[%s8004_s3 + $0x18] sm:$0xff]  }
 0x108   :  { %v563_v31 = vpack.c.bf16 %v492_v29, %v489_v25  ;;  %v5700_v33 = vpop.f32.mrb[15].mxu1  ;;  %v561_v34 = vpack.c.bf16 %v430_v32, %v426_v26  ;;  %v432_v35 = vpop.f32.mrb[15].mxu0 }
 0x109   :  { %v562_v36 = vpack.c.bf16 %v432_v35, %v428_v28 }
 0x10a   :  { %5726 = vmatmul.mubr.bf16.vlgmr.msra.gmra.mrb[24].mxu1 %v563_v31  ;;  %v6295_v31 = vld [vmem:[%s8004_s3 + $0x60] sm:$0xff]  }
 0x10b   :  { %5738 = vmatpush3.bf16.msra.mxu1 %v6282_v30  ;;  %5729 = vmatprep.mubr.msk.bf16.mxu1 %vm6479_vm0, %v6478_v0  ;;  %v6294_v30 = vld [vmem:[%s8004_s3 + $0xa0] sm:$0xff]  }
 0x10c   :  { %746 = vmatprep.mubr.bf16.mxu0 %v562_v36  ;;  %5739 = vmatprep.subr.bf16.mxu1 %v6478_v0 }
 0x10d   :  { %747 = vmatmul.mubr.bf16.vlgmr.msra.gmra.mrb[24].mxu0 %v561_v34  ;;  %v497_v40 = vpop.f32.mrb[16].mxu1  ;;  %v436_v41 = vpop.f32.mrb[16].mxu0 }
 0x10e   :  { %5366 = vmatpush3.bf16.msra.mxu0 %v6284_v37  ;;  %v5703_v43 = vpop.f32.mrb[17].mxu1  ;;  %v438_v44 = vpop.f32.mrb[17].mxu0 }
 0x10f   :  { %5740 = vmatpush3.bf16.msra.mxu1 %v6285_v38  ;;  %5367 = vmatprep.subr.bf16.mxu0 %v6286_v39  ;;  %v500_v47 = vpop.f32.mrb[18].mxu1  ;;  %v440_v48 = vpop.f32.mrb[18].mxu0  ;;  %v6296_v39 = vld [vmem:[%s8004_s3 + $0x20] sm:$0xff]   ;;  %v6300_v43 = vld [vmem:[%s8004_s3 + $0xb0] sm:$0xff]  }
 0x110   :  { %5741 = vmatprep.subr.bf16.mxu1 %v6478_v0  ;;  %v566_v49 = vpack.c.bf16 %v500_v47, %v497_v40  ;;  %v5704_v50 = vpop.f32.mrb[19].mxu1  ;;  %v564_v53 = vpack.c.bf16 %v440_v48, %v436_v41  ;;  %v442_v58 = vpop.f32.mrb[19].mxu0  ;;  %v6297_v40 = vld [vmem:[%s8004_s3 + $0xa8] sm:$0xff]   ;;  %v6320_v48 = vld [vmem:[%s8004_s3 + $0x218] sm:$0xff]  }
 0x111   :  { %v565_v1 = vpack.c.bf16 %v442_v58, %v438_v44  ;;  %v6298_v41 = vld [vmem:[%s8004_s3 + $0x68] sm:$0xff]   ;;  %v6301_v44 = vld [vmem:[%s8004_s3 + $0x70] sm:$0xff]   ;;  %v6322_v50 = vld [vmem:[%s8004_s3 + $0x1a0] sm:$0xff]  }
 0x112   :  { %5368 = vmatpush3.bf16.msra.mxu0 %v6287_v42  ;;  %5730 = vmatmul.mubr.bf16.gmra.mrb[28].mxu1 %v566_v49  ;;  %v6299_v42 = vld [vmem:[%s8004_s3 + $0x28] sm:$0xff]   ;;  %v6321_v49 = vld [vmem:[%s8004_s3 + $0x1e0] sm:$0xff]  }
 0x113   :  { %5742 = vmatpush3.bf16.msra.mxu1 %v6288_v45  ;;  %5369 = vmatprep.subr.bf16.mxu0 %v6289_v46  ;;  %v6305_v45 = vld [vmem:[%s8004_s3 + $0x38] sm:$0xff]   ;;  %v6907_v46 = vld [vmem:[%s8002_s0 + $0x4] ss:$12 sps:$4 sm:$0xff]   ;;  %v6913_v47 = vld [vmem:[%s8002_s0 + $0x8] ss:$12 sps:$4 sm:$0xff]  }
 0x114   :  { %754 = vmatprep.mubr.bf16.mxu0 %v565_v1  ;;  %5743 = vmatprep.subr.bf16.mxu1 %v6478_v0  ;;  %v6324_v58 = vld [vmem:[%s8004_s3 + $0x1e8] sm:$0xff]  }
 0x115   :  { %755 = vmatmul.mubr.bf16.gmra.mrb[28].mxu0 %v564_v53  ;;  %v505_v25 = vpop.f32.mrb[20].mxu1  ;;  %5733 = vmatprep.mubr.msk.bf16.mxu1 %vm6479_vm0, %v6478_v0  ;;  %v446_v26 = vpop.f32.mrb[20].mxu0  ;;  %v6323_v53 = vld [vmem:[%s8004_s3 + $0x220] sm:$0xff]   ;;  %v6325_v1 = vld [vmem:[%s8004_s3 + $0x1a8] sm:$0xff]  }
 0x116   :  { %5370 = vmatpush3.bf16.msra.mxu0 %v6290_v7  ;;  %v5707_v28 = vpop.f32.mrb[21].mxu1  ;;  %v448_v29 = vpop.f32.mrb[21].mxu0  ;;  %v6326_v7 = vld [vmem:[%s8004_s3 + $0x228] sm:$0xff]  }
 0x117   :  { %5744 = vmatpush3.bf16.msra.mxu1 %v6291_v13  ;;  %5371 = vmatprep.subr.bf16.mxu0 %v6292_v21  ;;  %v508_v32 = vpop.f32.mrb[22].mxu1  ;;  %v450_v33 = vpop.f32.mrb[22].mxu0  ;;  %v6327_v13 = vld [vmem:[%s8004_s3 + $0x1f0] sm:$0xff]   ;;  %v6332_v28 = vld [vmem:[%s8004_s3 + $0x238] sm:$0xff]  }
 0x118   :  { %5745 = vmatprep.subr.bf16.mxu1 %v6478_v0  ;;  %v569_v34 = vpack.c.bf16 %v508_v32, %v505_v25  ;;  %v5708_v35 = vpop.f32.mrb[23].mxu1  ;;  %v567_v36 = vpack.c.bf16 %v450_v33, %v446_v26  ;;  %v452_v37 = vpop.f32.mrb[23].mxu0  ;;  %v6328_v21 = vld [vmem:[%s8004_s3 + $0x1b0] sm:$0xff]   ;;  %v6330_v26 = vld [vmem:[%s8004_s3 + $0x1f8] sm:$0xff]  }
 0x119   :  { %v568_v38 = vpack.c.bf16 %v452_v37, %v448_v29  ;;  %v6329_v25 = vld [vmem:[%s8004_s3 + $0x230] sm:$0xff]  }
 0x11a   :  { %5372 = vmatpush3.bf16.msra.mxu0 %v6293_v27  ;;  %5734 = vmatmul.mubr.bf16.gmra.mrb[32].mxu1 %v569_v34  ;;  %v6331_v27 = vld [vmem:[%s8004_s3 + $0x1b8] sm:$0xff]  }
 0x11b   :  { %5746 = vmatpush3.bf16.msra.mxu1 %v6294_v30  ;;  %5373 = vmatprep.subr.bf16.mxu0 %v6295_v31 }
 0x11c   :  { %762 = vmatprep.mubr.bf16.mxu0 %v568_v38  ;;  %5747 = vmatprep.subr.bf16.mxu1 %v6478_v0 }
 0x11d   :  { %763 = vmatmul.mubr.bf16.gmra.mrb[32].mxu0 %v567_v36  ;;  %5753 = vmatprep.mubr.msk.bf16.mxu1 %vm6479_vm0, %v6478_v0 }
 0x11e   :  { %5374 = vmatpush3.bf16.msra.mxu0 %v6296_v39  ;;  %1004 = vmatprep.mubr.bf16.mxu0 %v353_v61  ;;  %v6304_v61 = vld [vmem:[%s8004_s3 + $0x78] sm:$0xff]  }
 0x11f   :  { %5748 = vmatpush3.bf16.msra.mxu1 %v6297_v40  ;;  %5375 = vmatprep.subr.bf16.mxu0 %v6298_v41 }
 0x120   :  { %5749 = vmatprep.subr.bf16.mxu1 %v6478_v0 }
 0x122   :  { %5376 = vmatpush3.bf16.msra.mxu0 %v6299_v42 }
 0x123   :  { %5750 = vmatpush3.bf16.msra.mxu1 %v6300_v43  ;;  %5377 = vmatprep.subr.bf16.mxu0 %v6301_v44 }
 0x124   :  { %5751 = vmatprep.subr.bf16.mxu1 %v6478_v0 }
 0x126   :  { %5378 = vmatpush3.bf16.msra.mxu0 %v6302_v54 }
 0x127   :  { %5752 = vmatpush3.bf16.msra.mxu1 %v6303_v60  ;;  %5379 = vmatprep.subr.bf16.mxu0 %v6304_v61 }
 0x128   :  { %5765 = vmatprep.subr.bf16.mxu1 %v6478_v0 }
 0x12a   :  { %5380 = vmatpush3.bf16.msra.mxu0 %v6305_v45  ;;  %5754 = vmatmul.mubr.bf16.vlgmr.msra.gmra.mrb[36].mxu1 %v354_v57  ;;  %v6956_v57 = vld [vmem:[%s8002_s0 + $0x34] ss:$12 sps:$4 sm:$0xff]  }
 0x12b   :  { %1117 = vmatprep.subr.bf16.mxu0 %v6907_v46  ;;  %5766 = vmatpush3.bf16.msra.mxu1 %v6913_v47 }
 0x12c   :  { %5757 = vmatprep.mubr.msk.bf16.mxu1 %vm6479_vm0, %v6478_v0  ;;  %5767 = vmatprep.subr.bf16.mxu1 %v6478_v0 }
 0x12d   :  { %1005 = vmatmul.mubr.bf16.vlgmr.msra.gmra.mrb[36].mxu0 %v352_v59  ;;  %v6962_v59 = vld [vmem:[%s8002_s0 + $0x38] ss:$12 sps:$4 sm:$0xff]  }
 0x12e   :  { %1012 = vmatprep.mubr.bf16.mxu0 %v356_v10  ;;  %1118 = vmatpush1.bf16.msra.mxu0 %v6928_v51  ;;  %v6310_v10 = vld [vmem:[%s8004_s3 + $0x180] sm:$0xff]  }
 0x12f   :  { %1119 = vmatprep.subr.bf16.mxu0 %v6934_v55  ;;  %5768 = vmatpush3.bf16.msra.mxu1 %v6940_v52 }
 0x130   :  { %5769 = vmatprep.subr.bf16.mxu1 %v6478_v0 }
 0x132   :  { %5758 = vmatmul.mubr.bf16.gmra.mrb[40].mxu1 %v357_v6  ;;  %1120 = vmatpush1.bf16.msra.mxu0 %v6950_v56  ;;  %v7011_v6 = vld [vmem:[%s8002_s0 + $0x68] ss:$12 sps:$4 sm:$0xff]  }
 0x133   :  { %1121 = vmatprep.subr.bf16.mxu0 %v6956_v57  ;;  %5770 = vmatpush3.bf16.msra.mxu1 %v6962_v59 }
 0x134   :  { %5761 = vmatprep.mubr.msk.bf16.mxu1 %vm6479_vm0, %v6478_v0  ;;  %5771 = vmatprep.subr.bf16.mxu1 %v6478_v0 }
 0x135   :  { %1013 = vmatmul.mubr.bf16.gmra.mrb[40].mxu0 %v355_v8  ;;  %v7023_v8 = vld [vmem:[%s8002_s0 + $0x60] ss:$12 sps:$4 sm:$0xff]  }
 0x136   :  { %1020 = vmatprep.mubr.bf16.mxu0 %v359_v24  ;;  %1122 = vmatpush1.bf16.msra.mxu0 %v6977_v62  ;;  %v6319_v24 = vld [vmem:[%s8004_s3 + $0x198] sm:$0xff]  }
 0x137   :  { %1123 = vmatprep.subr.bf16.mxu0 %v6983_v2  ;;  %5772 = vmatpush3.bf16.msra.mxu1 %v6989_v63 }
 0x138   :  { %5773 = vmatprep.subr.bf16.mxu1 %v6478_v0 }
 0x13a   :  { %5762 = vmatmul.mubr.bf16.gmra.mrb[44].mxu1 %v360_v20  ;;  %1124 = vmatpush1.bf16.msra.mxu0 %v6999_v4  ;;  %v6316_v20 = vld [vmem:[%s8004_s3 + $0x190] sm:$0xff]  }
 0x13b   :  { %1125 = vmatprep.subr.bf16.mxu0 %v7005_v5  ;;  %5774 = vmatpush3.bf16.msra.mxu1 %v7011_v6 }
 0x13c   :  { %5775 = vmatprep.subr.bf16.mxu1 %v6478_v0  ;;  %5777 = vmatprep.mubr.msk.bf16.mxu1 %vm6479_vm0, %v6478_v0 }
 0x13d   :  { %1021 = vmatmul.mubr.bf16.gmra.mrb[44].mxu0 %v358_v22  ;;  %v6317_v22 = vld [vmem:[%s8004_s3 + $0x210] sm:$0xff]  }
 0x13e   :  { %1126 = vmatpush1.bf16.msra.mxu0 %v7023_v8  ;;  %1149 = vmatprep.mubr.bf16.mxu0 %v6480_v3 }
 0x13f   :  { %1127 = vmatprep.subr.bf16.mxu0 %v6605_v17  ;;  %5776 = vmatpush3.bf16.msra.mxu1 %v6610_v18  ;;  %v6307_v17 = vld [vmem:[%s8003_s2 + $0x38] sm:$0xff]   ;;  %v6308_v18 = vld [vmem:[%s8003_s2 + $0x40] sm:$0x7f]  }
 0x140   :  { %5789 = vmatprep.subr.bf16.mxu1 %v6478_v0 }
 0x142   :  { %1128 = vmatpush1.bf16.msra.mxu0 %v6616_v19  ;;  %5778 = vmatmul.mubr.msk.bf16.vlgmr.msra.gmra.mrb[48].mxu1 %vm174_vm1, %v6306_v9  ;;  %v6309_v19 = vld [vmem:[%s8004_s3 + $0x1c0] sm:$0xff]  }
 0x143   :  { %5781 = vmatprep.mubr.msk.bf16.mxu1 %vm6479_vm0, %v6478_v0  ;;  %5419 = vmatprep.subr.bf16.mxu0 %v6309_v19 }
 0x144   :  { %5790 = vmatpush3.bf16.msra.mxu1 %v6311_v11 }
 0x145   :  { %4856 = vmatmul.mubr.msk.bf16.vlgmr.msra.gmra.mrb[48].mxu0 %vm174_vm1, %v6306_v9  ;;  %5791 = vmatprep.subr.bf16.mxu1 %v6478_v0 }
 0x146   :  { %1159 = vmatprep.mubr.bf16.mxu0 %v6480_v3  ;;  %5420 = vmatpush3.bf16.msra.mxu0 %v6310_v10 }
 0x147   :  { %5421 = vmatprep.subr.bf16.mxu0 %v6312_v12 }
 0x148   :  { %5792 = vmatpush3.bf16.msra.mxu1 %v6314_v15 }
 0x149   :  { %5793 = vmatprep.subr.bf16.mxu1 %v6478_v0 }
 0x14a   :  { %5782 = vmatmul.mubr.msk.bf16.gmra.mrb[52].mxu1 %vm174_vm1, %v6307_v17  ;;  %5422 = vmatpush3.bf16.msra.mxu0 %v6313_v14 }
 0x14b   :  { %5785 = vmatprep.mubr.msk.bf16.mxu1 %vm6479_vm0, %v6478_v0  ;;  %5423 = vmatprep.subr.bf16.mxu0 %v6315_v16 }
 0x14c   :  { %5794 = vmatpush3.bf16.msra.mxu1 %v6317_v22 }
 0x14d   :  { %4857 = vmatmul.mubr.msk.bf16.gmra.mrb[52].mxu0 %vm174_vm1, %v6307_v17  ;;  %5795 = vmatprep.subr.bf16.mxu1 %v6478_v0 }
 0x14e   :  { %1169 = vmatprep.mubr.bf16.mxu0 %v6480_v3  ;;  %5424 = vmatpush3.bf16.msra.mxu0 %v6316_v20 }
 0x14f   :  { %5425 = vmatprep.subr.bf16.mxu0 %v6318_v23 }
 0x150   :  { %5796 = vmatpush3.bf16.msra.mxu1 %v6320_v48 }
 0x151   :  { %5797 = vmatprep.subr.bf16.mxu1 %v6478_v0 }
 0x152   :  { %5786 = vmatmul.mubr.msk.bf16.gmra.mrb[56].mxu1 %vm174_vm1, %v6308_v18  ;;  %5426 = vmatpush3.bf16.msra.mxu0 %v6319_v24 }
 0x153   :  { %5805 = vmatprep.mubr.msk.bf16.mxu1 %vm6479_vm0, %v6478_v0  ;;  %5427 = vmatprep.subr.bf16.mxu0 %v6321_v49 }
 0x154   :  { %5798 = vmatpush3.bf16.msra.mxu1 %v6323_v53 }
 0x155   :  { %4858 = vmatmul.mubr.msk.bf16.gmra.mrb[56].mxu0 %vm174_vm1, %v6308_v18  ;;  %5799 = vmatprep.subr.bf16.mxu1 %v6478_v0 }
 0x156   :  { %5428 = vmatpush3.bf16.msra.mxu0 %v6322_v50 }
 0x157   :  { %5429 = vmatprep.subr.bf16.mxu0 %v6324_v58 }
 0x158   :  { %5800 = vmatpush3.bf16.msra.mxu1 %v6326_v7 }
 0x159   :  { %5801 = vmatprep.subr.bf16.mxu1 %v6478_v0 }
 0x15a   :  { %5430 = vmatpush3.bf16.msra.mxu0 %v6325_v1 }
 0x15b   :  { %5431 = vmatprep.subr.bf16.mxu0 %v6327_v13 }
 0x15c   :  { %5802 = vmatpush3.bf16.msra.mxu1 %v6329_v25 }
 0x15d   :  { %5803 = vmatprep.subr.bf16.mxu1 %v6478_v0 }
 0x15e   :  { %5432 = vmatpush3.bf16.msra.mxu0 %v6328_v21 }
 0x15f   :  { %5433 = vmatprep.subr.bf16.mxu0 %v6330_v26 }
 0x160   :  { %5804 = vmatpush3.bf16.msra.mxu1 %v6332_v28 }
 0x161   :  { %5817 = vmatprep.subr.bf16.mxu1 %v6478_v0 }
 0x162   :  { %5434 = vmatpush3.bf16.msra.mxu0 %v6331_v27 }
 0x163   :  { %1590 = vmatprep.subr.bf16.mxu0 %v6907_v46 }
 0x1dd   :  { %v805_v29 = vpop.f32.mrb[24].mxu1 }
 0x1de   :  { %v5727_v30 = vpop.f32.mrb[25].mxu1 }
 0x1df   :  { %v808_v31 = vpop.f32.mrb[26].mxu1 }
 0x1e0   :  { %v5336_v32 = vpop.f32.mrb[24].mxu0  ;;  %v5728_v33 = vpop.f32.mrb[27].mxu1 }
 0x1e1   :  { %v5337_v34 = vpop.f32.mrb[25].mxu0 }
 0x1e2   :  { %v5338_v35 = vadd.f32 %v5337_v34, %v5336_v32  ;;  %v5339_v36 = vpop.f32.mrb[26].mxu0 }
 0x1e3   :  { %v5340_v37 = vpop.f32.mrb[27].mxu0 }
 0x1e4   :  { %v806_v38 = vadd.f32 %v5338_v35, %v805_v29  ;;  %v5341_v39 = vadd.f32 %v5340_v37, %v5339_v36 }
 0x1e5   :  { %v813_v40 = vpop.f32.mrb[28].mxu1 }
 0x1e6   :  { %v809_v41 = vadd.f32 %v5341_v39, %v808_v31  ;;  %v5731_v42 = vpop.f32.mrb[29].mxu1 }
 0x1e7   :  { %v816_v43 = vpop.f32.mrb[30].mxu1 }
 0x1e8   :  { %v5342_v44 = vpop.f32.mrb[28].mxu0  ;;  %v5732_v54 = vpop.f32.mrb[31].mxu1 }
 0x1e9   :  { %v5343_v60 = vpop.f32.mrb[29].mxu0 }
 0x1ea   :  { %v5344_v61 = vadd.f32 %v5343_v60, %v5342_v44  ;;  %v5345_v45 = vpop.f32.mrb[30].mxu0 }
 0x1eb   :  { %v5346_v46 = vpop.f32.mrb[31].mxu0 }
 0x1ec   :  { %v5347_v9 = vadd.f32 %v5346_v46, %v5345_v45  ;;  %v814_v17 = vadd.f32 %v5344_v61, %v813_v40 }
 0x1ed   :  { %v821_v18 = vpop.f32.mrb[32].mxu1 }
 0x1ee   :  { %v817_v19 = vadd.f32 %v5347_v9, %v816_v43  ;;  %v5735_v10 = vpop.f32.mrb[33].mxu1 }
 0x1ef   :  { %v824_v11 = vpop.f32.mrb[34].mxu1 }
 0x1f0   :  { %v5348_v12 = vpop.f32.mrb[32].mxu0  ;;  %v5736_v14 = vpop.f32.mrb[35].mxu1 }
 0x1f1   :  { %v5349_v15 = vpop.f32.mrb[33].mxu0 }
 0x1f2   :  { %v5350_v16 = vadd.f32 %v5349_v15, %v5348_v12  ;;  %v5351_v20 = vpop.f32.mrb[34].mxu0 }
 0x1f3   :  { %v5352_v22 = vpop.f32.mrb[35].mxu0 }
 0x1f4   :  { %v5353_v23 = vadd.f32 %v5352_v22, %v5351_v20  ;;  %v822_v24 = vadd.f32 %v5350_v16, %v821_v18 }
 0x1f6   :  { %v825_v48 = vadd.f32 %v5353_v23, %v824_v11 }
 0x1fd   :  { %v1063_v49 = vpop.f32.mrb[36].mxu1 }
 0x1fe   :  { %v5755_v50 = vpop.f32.mrb[37].mxu1 }
 0x1ff   :  { %v1066_v53 = vpop.f32.mrb[38].mxu1 }
 0x200   :  { %v5381_v58 = vpop.f32.mrb[36].mxu0  ;;  %v5756_v1 = vpop.f32.mrb[39].mxu1 }
 0x201   :  { %v5382_v7 = vpop.f32.mrb[37].mxu0 }
 0x202   :  { %v5383_v13 = vadd.f32 %v5382_v7, %v5381_v58  ;;  %v5384_v21 = vpop.f32.mrb[38].mxu0 }
 0x203   :  { %v5385_v25 = vpop.f32.mrb[39].mxu0 }
 0x204   :  { %v1007_v26 = vadd.f32 %v5383_v13, %v806_v38  ;;  %v5386_v27 = vadd.f32 %v5385_v25, %v5384_v21 }
 0x205   :  { %v1071_v28 = vpop.f32.mrb[40].mxu1 }
 0x206   :  { %v7135_v29 = vadd.f32 %v1063_v49, %v1007_v26  ;;  %v1010_v30 = vadd.f32 %v5386_v27, %v809_v41  ;;  %v5759_v31 = vpop.f32.mrb[41].mxu1 }
 0x207   :  { %v1074_v32 = vpop.f32.mrb[42].mxu1 }
 0x208   :  { %v7137_v33 = vadd.f32 %v1066_v53, %v1010_v30  ;;  %v5387_v34 = vpop.f32.mrb[40].mxu0  ;;  %v5760_v35 = vpop.f32.mrb[43].mxu1 }
 0x209   :  { %v5388_v36 = vpop.f32.mrb[41].mxu0 }
 0x20a   :  { %v5389_v37 = vadd.f32 %v5388_v36, %v5387_v34  ;;  %v5390_v39 = vpop.f32.mrb[42].mxu0 }
 0x20b   :  { %v5391_v40 = vpop.f32.mrb[43].mxu0 }
 0x20c   :  { %v1015_v42 = vadd.f32 %v5389_v37, %v814_v17  ;;  %v5392_v43 = vadd.f32 %v5391_v40, %v5390_v39  ;;  %v6334_v39 = vld [vmem:[%s8003_s2 + $0x50] sm:$0xff]   ;;  %v6335_v40 = vld [vmem:[%s8003_s2 + $0x58] sm:$0x7f]  }
 0x20d   :  { %v1079_v44 = vpop.f32.mrb[44].mxu1 }
 0x20e   :  { %v7139_v54 = vadd.f32 %v1071_v28, %v1015_v42  ;;  %v1018_v38 = vadd.f32 %v5392_v43, %v817_v19  ;;  %v5763_v60 = vpop.f32.mrb[45].mxu1  ;;  %v6338_v42 = vld [vmem:[%s8004_s3 + $0x240] sm:$0xff]   ;;  %v6339_v43 = vld [vmem:[%s8004_s3 + $0x2c8] sm:$0xff]  }
 0x20f   :  { %v1082_v61 = vpop.f32.mrb[46].mxu1  ;;  %v6343_v60 = vld [vmem:[%s8004_s3 + $0x290] sm:$0xff]  }
 0x210   :  { %v7141_v45 = vadd.f32 %v1074_v32, %v1018_v38  ;;  %v5393_v41 = vpop.f32.mrb[44].mxu0  ;;  %v5764_v46 = vpop.f32.mrb[47].mxu1  ;;  %v6342_v38 = vld [vmem:[%s8004_s3 + $0x2d0] sm:$0xff]  }
 0x211   :  { %v5394_v9 = vpop.f32.mrb[45].mxu0  ;;  %v6346_v46 = vld [vmem:[%s8004_s3 + $0x298] sm:$0xff]  }
 0x212   :  { %v5395_v18 = vadd.f32 %v5394_v9, %v5393_v41  ;;  %v5396_v10 = vpop.f32.mrb[46].mxu0  ;;  %v6345_v41 = vld [vmem:[%s8004_s3 + $0x2d8] sm:$0xff]  }
 0x213   :  { %v5397_v11 = vpop.f32.mrb[47].mxu0  ;;  %v6347_v9 = vld [vmem:[%s8004_s3 + $0x258] sm:$0xff]  }
 0x214   :  { %v1023_v12 = vadd.f32 %v5395_v18, %v822_v24  ;;  %v5398_v14 = vadd.f32 %v5397_v11, %v5396_v10  ;;  %v6348_v18 = vld [vmem:[%s8004_s3 + $0x2e0] sm:$0xff]  }
 0x215   :  { %v1214_v15 = vpop.f32.mrb[48].mxu1  ;;  %v6349_v10 = vld [vmem:[%s8004_s3 + $0x2a0] sm:$0xff]  }
 0x216   :  { %v7143_v16 = vadd.f32 %v1079_v44, %v1023_v12  ;;  %v1026_v17 = vadd.f32 %v5398_v14, %v825_v48  ;;  %v5779_v20 = vpop.f32.mrb[49].mxu1  ;;  %v6341_v44 = vld [vmem:[%s8004_s3 + $0x248] sm:$0xff]   ;;  %v6350_v11 = vld [vmem:[%s8004_s3 + $0x260] sm:$0xff]  }
 0x217   :  { %v1217_v22 = vpop.f32.mrb[50].mxu1  ;;  %v6351_v12 = vld [vmem:[%s8004_s3 + $0x2e8] sm:$0xff]   ;;  %v6355_v20 = vld [vmem:[%s8004_s3 + $0x2b0] sm:$0xff]  }
 0x218   :  { %v7145_v23 = vadd.f32 %v1082_v61, %v1026_v17  ;;  %v1151_v19 = vpop.f32.mrb[48].mxu0  ;;  %v1288_v49 = vpack.c.bf16 %v1217_v22, %v1214_v15  ;;  %v5780_v50 = vpop.f32.mrb[51].mxu1  ;;  %v6344_v61 = vld [vmem:[%s8004_s3 + $0x250] sm:$0xff]   ;;  %v6352_v14 = vld [vmem:[%s8004_s3 + $0x2a8] sm:$0xff]  }
 0x219   :  { %v1153_v53 = vpop.f32.mrb[49].mxu0  ;;  %v6353_v15 = vld [vmem:[%s8004_s3 + $0x268] sm:$0xff]   ;;  %v6354_v17 = vld [vmem:[%s8004_s3 + $0x2f0] sm:$0xff]   ;;  %v6359_v50 = vld [vmem:[%s8004_s3 + $0x278] sm:$0xff]  }
 0x21a   :  { %v1155_v58 = vpop.f32.mrb[50].mxu0  ;;  %5806 = vmatmul.mubr.bf16.vlgmr.msra.gmra.mrb[60].mxu1 %v1288_v49  ;;  %v6356_v22 = vld [vmem:[%s8004_s3 + $0x270] sm:$0xff]   ;;  %v6358_v49 = vld [vmem:[%s8004_s3 + $0x2b8] sm:$0xff]  }
 0x21b   :  { %v1286_v1 = vpack.c.bf16 %v1155_v58, %v1151_v19  ;;  %v1157_v7 = vpop.f32.mrb[51].mxu0  ;;  %5818 = vmatpush3.bf16.msra.mxu1 %v6913_v47  ;;  %5809 = vmatprep.mubr.msk.bf16.mxu1 %vm6479_vm0, %v6478_v0  ;;  %v6357_v19 = vld [vmem:[%s8004_s3 + $0x2f8] sm:$0xff]  }
 0x21c   :  { %v1287_v24 = vpack.c.bf16 %v1157_v7, %v1153_v53  ;;  %5819 = vmatprep.subr.bf16.mxu1 %v6478_v0 }
 0x21d   :  { %v1222_v48 = vpop.f32.mrb[52].mxu1 }
 0x21e   :  { %1471 = vmatprep.mubr.bf16.mxu0 %v1287_v24  ;;  %v5783_v13 = vpop.f32.mrb[53].mxu1 }
 0x21f   :  { %1472 = vmatmul.mubr.bf16.vlgmr.msra.gmra.mrb[60].mxu0 %v1286_v1  ;;  %v1225_v21 = vpop.f32.mrb[54].mxu1  ;;  %5820 = vmatpush3.bf16.msra.mxu1 %v6940_v52 }
 0x220   :  { %v1161_v25 = vpop.f32.mrb[52].mxu0  ;;  %1591 = vmatpush1.bf16.msra.mxu0 %v6928_v51  ;;  %v1291_v26 = vpack.c.bf16 %v1225_v21, %v1222_v48  ;;  %v5784_v27 = vpop.f32.mrb[55].mxu1  ;;  %5821 = vmatprep.subr.bf16.mxu1 %v6478_v0 }
 0x221   :  { %v1163_v47 = vpop.f32.mrb[53].mxu0  ;;  %1592 = vmatprep.subr.bf16.mxu0 %v6934_v55 }
 0x222   :  { %v1165_v28 = vpop.f32.mrb[54].mxu0  ;;  %5810 = vmatmul.mubr.bf16.gmra.mrb[64].mxu1 %v1291_v26 }
 0x223   :  { %v1289_v30 = vpack.c.bf16 %v1165_v28, %v1161_v25  ;;  %v1167_v31 = vpop.f32.mrb[55].mxu0  ;;  %5822 = vmatpush3.bf16.msra.mxu1 %v6962_v59  ;;  %5813 = vmatprep.mubr.msk.bf16.mxu1 %vm6479_vm0, %v6478_v0 }
 0x224   :  { %v1290_v52 = vpack.c.bf16 %v1167_v31, %v1163_v47  ;;  %1593 = vmatpush1.bf16.msra.mxu0 %v6950_v56  ;;  %5823 = vmatprep.subr.bf16.mxu1 %v6478_v0 }
 0x225   :  { %1594 = vmatprep.subr.bf16.mxu0 %v6956_v57  ;;  %v1230_v51 = vpop.f32.mrb[56].mxu1 }
 0x226   :  { %1479 = vmatprep.mubr.bf16.mxu0 %v1290_v52  ;;  %v5787_v32 = vpop.f32.mrb[57].mxu1 }
 0x227   :  { %1480 = vmatmul.mubr.bf16.gmra.mrb[64].mxu0 %v1289_v30  ;;  %v1233_v55 = vpop.f32.mrb[58].mxu1  ;;  %5824 = vmatpush3.bf16.msra.mxu1 %v6989_v63 }
 0x228   :  { %v1171_v34 = vpop.f32.mrb[56].mxu0  ;;  %1595 = vmatpush1.bf16.msra.mxu0 %v6977_v62  ;;  %v1294_v59 = vpack.c.bf16 %v1233_v55, %v1230_v51  ;;  %v5788_v35 = vpop.f32.mrb[59].mxu1  ;;  %5825 = vmatprep.subr.bf16.mxu1 %v6478_v0  ;;  %v6333_v62 = vld [vmem:[%s8003_s2 + $0x48] sm:$0xff]  }
 0x229   :  { %v1173_v36 = vpop.f32.mrb[57].mxu0  ;;  %1596 = vmatprep.subr.bf16.mxu0 %v6983_v2  ;;  %v6475_v2 = vld [vmem:[%s8002_s0 + $0x80] ss:$12 sps:$4 sm:$0xff]  }
 0x22a   :  { %v1175_v56 = vpop.f32.mrb[58].mxu0  ;;  %5814 = vmatmul.mubr.bf16.gmra.mrb[68].mxu1 %v1294_v59 }
 0x22b   :  { %v1292_v57 = vpack.c.bf16 %v1175_v56, %v1171_v34  ;;  %v1177_v37 = vpop.f32.mrb[59].mxu0  ;;  %5826 = vmatpush3.bf16.msra.mxu1 %v7011_v6  ;;  %5829 = vmatprep.mubr.msk.bf16.mxu1 %vm6479_vm0, %v6478_v0  ;;  %v6336_v6 = vld [vmem:[%s8004_s3 + $0x2c0] sm:$0xff]  }
 0x22c   :  { %v1293_v63 = vpack.c.bf16 %v1177_v37, %v1173_v36  ;;  %1597 = vmatpush1.bf16.msra.mxu0 %v6999_v4  ;;  %5827 = vmatprep.subr.bf16.mxu1 %v6478_v0  ;;  %v6476_v4 = vld [vmem:[%s8002_s0 + $0x7c] ss:$12 sps:$4 sm:$0xff]  }
 0x22d   :  { %1598 = vmatprep.subr.bf16.mxu0 %v7005_v5  ;;  %v6337_v5 = vld [vmem:[%s8004_s3 + $0x280] sm:$0xff]  }
 0x22e   :  { %1487 = vmatprep.mubr.bf16.mxu0 %v1293_v63 }
 0x22f   :  { %1488 = vmatmul.mubr.bf16.gmra.mrb[68].mxu0 %v1292_v57  ;;  %5828 = vmatpush3.bf16.msra.mxu1 %v6475_v2 }
 0x230   :  { %1599 = vmatpush1.bf16.msra.mxu0 %v7023_v8  ;;  %1622 = vmatprep.mubr.bf16.mxu0 %v6480_v3  ;;  %v6477_v8 = vld [vmem:[%s8002_s0 + $0x78] ss:$12 sps:$4 sm:$0xff]   ;;  %s6484_s0 = smov 120  }
 0x231   :  { %1600 = vmatprep.subr.bf16.mxu0 %v6476_v4  ;;  %5841 = vmatprep.subr.bf16.mxu1 %v6478_v0 }
 0x232   :  { %5830 = vmatmul.mubr.msk.bf16.vlgmr.msra.gmra.mrb[72].mxu1 %vm174_vm1, %v6333_v62 }
 0x233   :  { %5833 = vmatprep.mubr.msk.bf16.mxu1 %vm6479_vm0, %v6478_v0  ;;  %5842 = vmatpush3.bf16.msra.mxu1 %v6336_v6 }
 0x234   :  { %1601 = vmatpush1.bf16.msra.mxu0 %v6477_v8  ;;  %5843 = vmatprep.subr.bf16.mxu1 %v6478_v0 }
 0x235   :  { %5473 = vmatprep.subr.bf16.mxu0 %v6337_v5 }
 0x237   :  { %4943 = vmatmul.mubr.msk.bf16.vlgmr.msra.gmra.mrb[72].mxu0 %vm174_vm1, %v6333_v62  ;;  %5844 = vmatpush3.bf16.msra.mxu1 %v6339_v43 }
 0x238   :  { %1632 = vmatprep.mubr.bf16.mxu0 %v6480_v3  ;;  %5474 = vmatpush3.bf16.msra.mxu0 %v6338_v42 }
 0x239   :  { %5845 = vmatprep.subr.bf16.mxu1 %v6478_v0 }
 0x23a   :  { %5834 = vmatmul.mubr.msk.bf16.gmra.mrb[76].mxu1 %vm174_vm1, %v6334_v39 }
 0x23b   :  { %5837 = vmatprep.mubr.msk.bf16.mxu1 %vm6479_vm0, %v6478_v0  ;;  %5846 = vmatpush3.bf16.msra.mxu1 %v6342_v38 }
 0x23c   :  { %5847 = vmatprep.subr.bf16.mxu1 %v6478_v0 }
 0x23f   :  { %4944 = vmatmul.mubr.msk.bf16.gmra.mrb[76].mxu0 %vm174_vm1, %v6334_v39  ;;  %5848 = vmatpush3.bf16.msra.mxu1 %v6345_v41 }
 0x240   :  { %1642 = vmatprep.mubr.bf16.mxu0 %v6480_v3  ;;  %v6340_v3 = vld [vmem:[%s8004_s3 + $0x288] sm:$0xff]   ;;  %5849 = vmatprep.subr.bf16.mxu1 %v6478_v0  ;;  %s6483_s3 = smov 112  }
 0x241   :  { %5475 = vmatprep.subr.bf16.mxu0 %v6340_v3 }
 0x242   :  { %5838 = vmatmul.mubr.msk.bf16.gmra.mrb[80].mxu1 %vm174_vm1, %v6335_v40  ;;  %5476 = vmatpush3.bf16.msra.mxu0 %v6341_v44 }
 0x243   :  { %5857 = vmatprep.mubr.msk.bf16.mxu1 %vm6479_vm0, %v6478_v0  ;;  %5477 = vmatprep.subr.bf16.mxu0 %v6343_v60 }
 0x244   :  { %5850 = vmatpush3.bf16.msra.mxu1 %v6348_v18 }
 0x245   :  { %5851 = vmatprep.subr.bf16.mxu1 %v6478_v0 }
 0x246   :  { %5478 = vmatpush3.bf16.msra.mxu0 %v6344_v61 }
 0x247   :  { %4945 = vmatmul.mubr.msk.bf16.gmra.mrb[80].mxu0 %vm174_vm1, %v6335_v40  ;;  %5479 = vmatprep.subr.bf16.mxu0 %v6346_v46  ;;  %vm2791_vm1 = vcmask 322560  }
 0x248   :  { %5852 = vmatpush3.bf16.msra.mxu1 %v6351_v12 }
 0x249   :  { %5853 = vmatprep.subr.bf16.mxu1 %v6478_v0 }
 0x24a   :  { %5480 = vmatpush3.bf16.msra.mxu0 %v6347_v9 }
 0x24b   :  { %5481 = vmatprep.subr.bf16.mxu0 %v6349_v10 }
 0x24c   :  { %5854 = vmatpush3.bf16.msra.mxu1 %v6354_v17 }
 0x24d   :  { %5855 = vmatprep.subr.bf16.mxu1 %v6478_v0 }
 0x24e   :  { %5482 = vmatpush3.bf16.msra.mxu0 %v6350_v11 }
 0x24f   :  { %5483 = vmatprep.subr.bf16.mxu0 %v6352_v14 }
 0x250   :  { %5856 = vmatpush3.bf16.msra.mxu1 %v6357_v19 }
 0x252   :  { %5484 = vmatpush3.bf16.msra.mxu0 %v6353_v15 }
 0x253   :  { %5485 = vmatprep.subr.bf16.mxu0 %v6355_v20 }
 0x256   :  { %5486 = vmatpush3.bf16.msra.mxu0 %v6356_v22 }
 0x257   :  { %5487 = vmatprep.subr.bf16.mxu0 %v6358_v49 }
 0x25a   :  { %5488 = vmatpush3.bf16.msra.mxu0 %v6359_v50 }
 0x2ed   :  { %v1530_v53 = vpop.f32.mrb[60].mxu1 }
 0x2ee   :  { %v5807_v58 = vpop.f32.mrb[61].mxu1 }
 0x2ef   :  { %v1533_v1 = vpop.f32.mrb[62].mxu1 }
 0x2f0   :  { %v5808_v7 = vpop.f32.mrb[63].mxu1 }
 0x2f2   :  { %v5435_v24 = vpop.f32.mrb[60].mxu0 }
 0x2f3   :  { %v5436_v48 = vpop.f32.mrb[61].mxu0 }
 0x2f4   :  { %v5437_v13 = vadd.f32 %v5436_v48, %v5435_v24  ;;  %v5438_v21 = vpop.f32.mrb[62].mxu0 }
 0x2f5   :  { %v5439_v25 = vpop.f32.mrb[63].mxu0  ;;  %v1538_v26 = vpop.f32.mrb[64].mxu1 }
 0x2f6   :  { %v1531_v27 = vadd.f32 %v5437_v13, %v1530_v53  ;;  %v5440_v47 = vadd.f32 %v5439_v25, %v5438_v21  ;;  %v5811_v28 = vpop.f32.mrb[65].mxu1 }
 0x2f7   :  { %v1541_v30 = vpop.f32.mrb[66].mxu1  ;;  %v6360_v28 = vld [vmem:[%s8003_s2 + $0x60] sm:$0xff]  }
 0x2f8   :  { %v7286_v31 = vadd.f32 %v1531_v27, %v7135_v29  ;;  %v1534_v52 = vadd.f32 %v5440_v47, %v1533_v1  ;;  %v5812_v51 = vpop.f32.mrb[67].mxu1 }
 0x2fa   :  { %v7289_v32 = vadd.f32 %v1534_v52, %v7137_v33  ;;  %v5441_v55 = vpop.f32.mrb[64].mxu0 }
 0x2fb   :  { %v5442_v34 = vpop.f32.mrb[65].mxu0 }
 0x2fc   :  { %v5443_v59 = vadd.f32 %v5442_v34, %v5441_v55  ;;  %v5444_v35 = vpop.f32.mrb[66].mxu0 }
 0x2fd   :  { %v5445_v36 = vpop.f32.mrb[67].mxu0  ;;  %v1546_v56 = vpop.f32.mrb[68].mxu1 }
 0x2fe   :  { %v1539_v57 = vadd.f32 %v5443_v59, %v1538_v26  ;;  %v5446_v37 = vadd.f32 %v5445_v36, %v5444_v35  ;;  %v5815_v63 = vpop.f32.mrb[69].mxu1 }
 0x2ff   :  { %v1549_v62 = vpop.f32.mrb[70].mxu1 }
 0x300   :  { %v7292_v2 = vadd.f32 %v1539_v57, %v7139_v54  ;;  %v1542_v29 = vadd.f32 %v5446_v37, %v1541_v30  ;;  %v5816_v6 = vpop.f32.mrb[71].mxu1  ;;  %v6361_v30 = vld [vmem:[%s8003_s2 + $0x78] sm:$0xff]  }
 0x302   :  { %v7295_v4 = vadd.f32 %v1542_v29, %v7141_v45  ;;  %v5447_v33 = vpop.f32.mrb[68].mxu0 }
 0x303   :  { %v5448_v5 = vpop.f32.mrb[69].mxu0 }
 0x304   :  { %v5449_v8 = vadd.f32 %v5448_v5, %v5447_v33  ;;  %v5450_v39 = vpop.f32.mrb[70].mxu0  ;;  %v5021_v5 = vld [vmem:[%s8006_s7] ss:$0 sm:$0xff] }
 0x305   :  { %v5451_v40 = vpop.f32.mrb[71].mxu0  ;;  %v1687_v42 = vpop.f32.mrb[72].mxu1 }
 0x306   :  { %v1547_v43 = vadd.f32 %v5449_v8, %v1546_v56  ;;  %v5452_v3 = vadd.f32 %v5451_v40, %v5450_v39  ;;  %v5831_v44 = vpop.f32.mrb[73].mxu1 }
 0x307   :  { %v1690_v38 = vpop.f32.mrb[74].mxu1 }
 0x308   :  { %v7298_v60 = vadd.f32 %v1547_v43, %v7143_v16  ;;  %v1550_v54 = vadd.f32 %v5452_v3, %v1549_v62  ;;  %v1761_v61 = vpack.c.bf16 %v1690_v38, %v1687_v42  ;;  %v5832_v41 = vpop.f32.mrb[75].mxu1 }
 0x30a   :  { %v7301_v46 = vadd.f32 %v1550_v54, %v7145_v23  ;;  %v1624_v45 = vpop.f32.mrb[72].mxu0  ;;  %5858 = vmatmul.mubr.bf16.vlgmr.msra.gmra.mrb[84].mxu1 %v1761_v61 }
 0x30b   :  { %v1626_v9 = vpop.f32.mrb[73].mxu0  ;;  %5861 = vmatprep.mubr.msk.bf16.mxu1 %vm6479_vm0, %v6478_v0 }
 0x30c   :  { %v1628_v18 = vpop.f32.mrb[74].mxu0 }
 0x30d   :  { %v1759_v10 = vpack.c.bf16 %v1628_v18, %v1624_v45  ;;  %v1630_v11 = vpop.f32.mrb[75].mxu0  ;;  %v1695_v12 = vpop.f32.mrb[76].mxu1 }
 0x30e   :  { %v1760_v14 = vpack.c.bf16 %v1630_v11, %v1626_v9  ;;  %v5835_v15 = vpop.f32.mrb[77].mxu1 }
 0x30f   :  { %v1698_v16 = vpop.f32.mrb[78].mxu1 }
 0x310   :  { %1944 = vmatprep.mubr.bf16.mxu0 %v1760_v14  ;;  %v1764_v17 = vpack.c.bf16 %v1698_v16, %v1695_v12  ;;  %v5836_v20 = vpop.f32.mrb[79].mxu1 }
 0x311   :  { %1945 = vmatmul.mubr.bf16.vlgmr.msra.gmra.mrb[84].mxu0 %v1759_v10 }
 0x312   :  { %v1634_v22 = vpop.f32.mrb[76].mxu0  ;;  %5862 = vmatmul.mubr.bf16.gmra.mrb[88].mxu1 %v1764_v17 }
 0x313   :  { %v1636_v23 = vpop.f32.mrb[77].mxu0  ;;  %5865 = vmatprep.mubr.msk.bf16.mxu1 %vm6479_vm0, %v6478_v0 }
 0x314   :  { %v1638_v19 = vpop.f32.mrb[78].mxu0 }
 0x315   :  { %v1762_v49 = vpack.c.bf16 %v1638_v19, %v1634_v22  ;;  %v1640_v50 = vpop.f32.mrb[79].mxu0  ;;  %v1703_v53 = vpop.f32.mrb[80].mxu1 }
 0x316   :  { %v1763_v58 = vpack.c.bf16 %v1640_v50, %v1636_v23  ;;  %v5839_v1 = vpop.f32.mrb[81].mxu1 }
 0x317   :  { %v1706_v7 = vpop.f32.mrb[82].mxu1 }
 0x318   :  { %1952 = vmatprep.mubr.bf16.mxu0 %v1763_v58  ;;  %v1767_v24 = vpack.c.bf16 %v1706_v7, %v1703_v53  ;;  %v5840_v48 = vpop.f32.mrb[83].mxu1 }
 0x319   :  { %1953 = vmatmul.mubr.bf16.gmra.mrb[88].mxu0 %v1762_v49 }
 0x31a   :  { %v1644_v13 = vpop.f32.mrb[80].mxu0  ;;  %5866 = vmatmul.mubr.bf16.gmra.mrb[92].mxu1 %v1767_v24 }
 0x31b   :  { %v1646_v21 = vpop.f32.mrb[81].mxu0  ;;  %5885 = vmatprep.mubr.msk.bf16.mxu1 %vm2076_vm2, %v6361_v30 }
 0x31c   :  { %v1648_v25 = vpop.f32.mrb[82].mxu0 }
 0x31d   :  { %v1765_v26 = vpack.c.bf16 %v1648_v25, %v1644_v13  ;;  %v1650_v27 = vpop.f32.mrb[83].mxu0 }
 0x31e   :  { %v1766_v47 = vpack.c.bf16 %v1650_v27, %v1646_v21 }
 0x320   :  { %1960 = vmatprep.mubr.bf16.mxu0 %v1766_v47 }
 0x321   :  { %1961 = vmatmul.mubr.bf16.gmra.mrb[92].mxu0 %v1765_v26 }
 0x322   :  { %5875 = vmatprep.mubr.msk.bf16.mxu0 %vm2076_vm2, %v6360_v28 }
 0x3dd   :  { %v2003_v52 = vpop.f32.mrb[84].mxu1 }
 0x3de   :  { %v5859_v51 = vpop.f32.mrb[85].mxu1 }
 0x3df   :  { %v2006_v55 = vpop.f32.mrb[86].mxu1 }
 0x3e0   :  { %v5860_v34 = vpop.f32.mrb[87].mxu1 }
 0x3e1   :  { %v6362_v34 = vld [vmem:[%s8003_s2 + $0x68] ss:$0 sps:$4 sm:$0x33]  }
 0x3e4   :  { %v5489_v59 = vpop.f32.mrb[84].mxu0 }
 0x3e5   :  { %v5490_v35 = vpop.f32.mrb[85].mxu0  ;;  %v2011_v36 = vpop.f32.mrb[88].mxu1 }
 0x3e6   :  { %v5491_v56 = vadd.f32 %v5490_v35, %v5489_v59  ;;  %v5492_v57 = vpop.f32.mrb[86].mxu0  ;;  %v5863_v37 = vpop.f32.mrb[89].mxu1  ;;  %v6363_v35 = vld [vmem:[%s8003_s2 + $0x80] ss:$0 sps:$4 sm:$0x33]  }
 0x3e7   :  { %v5493_v63 = vpop.f32.mrb[87].mxu0  ;;  %v2014_v62 = vpop.f32.mrb[90].mxu1  ;;  %v6372_v37 = vld [vmem:[%s8005_s4 + $0x10] sm:$0xff]  }
 0x3e8   :  { %v2004_v29 = vadd.f32 %v5491_v56, %v2003_v52  ;;  %v5494_v6 = vadd.f32 %v5493_v63, %v5492_v57  ;;  %v5864_v33 = vpop.f32.mrb[91].mxu1  ;;  %v6371_v56 = vld [vmem:[%s8005_s4 + $0x8] sm:$0xff]   ;;  %v6366_v57 = vld [vmem:[%s8005_s4 + $0x40] sm:$0xff]  }
 0x3e9   :  { %v6367_v63 = vld [vmem:[%s8005_s4 + $0x48] sm:$0xff]   ;;  %v6369_v33 = vld [vmem:[%s8005_s4 + $0x58] sm:$0x3f]  }
 0x3ea   :  { %v2026_v8 = vadd.f32 %v2004_v29, %v7286_v31  ;;  %v2007_v39 = vadd.f32 %v5494_v6, %v2006_v55  ;;  %v6370_v55 = vld [vmem:[%s8005_s4] sm:$0xff]   ;;  %v6368_v29 = vld [vmem:[%s8005_s4 + $0x50] sm:$0xff]  }
 0x3eb   :  { %v6374_v6 = vld [vmem:[%s8005_s4 + $0x20] sm:$0xff]  }
 0x3ec   :  { %v2037_v40 = vadd.f32 %v5021_v5, %v2026_v8  ;;  %v2027_v42 = vadd.f32 %v2007_v39, %v7289_v32  ;;  %v5495_v43 = vpop.f32.mrb[88].mxu0  ;;  %v6375_v8 = vld [vmem:[%s8005_s4 + $0x28] sm:$0x3f]  }
 0x3ed   :  { %v5496_v3 = vpop.f32.mrb[89].mxu0  ;;  %v2019_v44 = vpop.f32.mrb[92].mxu1  ;;  %v2366_v39 = vsel %vm2272_vm10, %v6375_v8, 0 }
 0x3ee   :  { %v2049_v38 = vmul.f32 0.01, %v2037_v40  ;;  %v2038_v54 = vadd.f32 %v5021_v5, %v2027_v42  ;;  %v5497_v61 = vadd.f32 %v5496_v3, %v5495_v43  ;;  %v5498_v41 = vpop.f32.mrb[90].mxu0  ;;  %v5867_v45 = vpop.f32.mrb[93].mxu1  ;;  %vm2043_vm3 = vcmp.ge.f32.partialorder %v2037_v40, 0.0 }
 0x3ef   :  { %v5499_v9 = vpop.f32.mrb[91].mxu0  ;;  %v2022_v18 = vpop.f32.mrb[94].mxu1 }
 0x3f0   :  { %vm2044_vm4 = vcmp.ge.f32.partialorder %v2038_v54, 0.0  ;;  %v2050_v10 = vmul.f32 0.01, %v2038_v54  ;;  %v2012_v11 = vadd.f32 %v5497_v61, %v2011_v36  ;;  %v5868_v12 = vpop.f32.mrb[95].mxu1  ;;  %v5500_v31 = vadd.f32 %v5499_v9, %v5498_v41  ;;  %v6365_v36 = vld [vmem:[%s8005_s4 + $0x38] sm:$0xff]  }
 0x3f1   :  { %v2055_v14 = vsel %vm2043_vm3, %v2037_v40, %v2049_v38  ;;  %v6380_v40 = vld [vmem:[%s8005_s4 + $0x60] sm:$0xff]   ;;  %v6381_v12 = vld [vmem:[%s8005_s4 + $0x68] sm:$0xff]   ;;  %vm2868_vm3 = vcmask 64512  }
 0x3f2   :  { %v2056_v15 = vsel %vm2044_vm4, %v2038_v54, %v2050_v10  ;;  %v2028_v32 = vadd.f32 %v2012_v11, %v7292_v2  ;;  %v2015_v17 = vadd.f32 %v5500_v31, %v2014_v62  ;;  %v6373_v62 = vld [vmem:[%s8005_s4 + $0x18] sm:$0xff]   ;;  %v6376_v10 = vld [vmem:[%s8003_s2 + $0x90] sm:$0xff]   ;;  %vm2870_vm4 = vcmask 97280  }
 0x3f3   :  { %v7321_v16 = vpack.c.bf16 %v2056_v15, %v2055_v14  ;;  %v6377_v31 = vld [vmem:[%s8003_s2 + $0x98] ss:$0 sps:$4 sm:$0x33]   ;;  %v6378_v14 = vld [vmem:[%s8003_s2 + $0xa8] sm:$0xff]  }
 0x3f4   :  { %v2039_v20 = vadd.f32 %v5021_v5, %v2028_v32  ;;  %v5501_v22 = vpop.f32.mrb[92].mxu0  ;;  %v2029_v23 = vadd.f32 %v2015_v17, %v7295_v4  ;;  %v6379_v15 = vld [vmem:[%s8003_s2 + $0xb0] ss:$0 sps:$4 sm:$0x33]  }
 0x3f5   :  { %v5502_v19 = vpop.f32.mrb[93].mxu0  ;;  %5869 = vmatprep.subr.bf16.mxu0 %v7321_v16  ;;  %5879 = vmatprep.subr.bf16.mxu1 %v7321_v16  ;;  %v6382_v32 = vld [vmem:[%s8005_s4 + $0x70] sm:$0xff]  }
 0x3f6   :  { %v5503_v49 = vadd.f32 %v5502_v19, %v5501_v22  ;;  %v5504_v50 = vpop.f32.mrb[94].mxu0  ;;  %5870 = vmatpush3.bf16.msra.mxu0 %v7321_v16  ;;  %5880 = vmatpush3.bf16.msra.mxu1 %v7321_v16  ;;  %v2051_v53 = vmul.f32 0.01, %v2039_v20  ;;  %v2040_v2 = vadd.f32 %v5021_v5, %v2029_v23  ;;  %vm2045_vm5 = vcmp.ge.f32.partialorder %v2039_v20, 0.0  ;;  %v6384_v17 = vld [vmem:[%s8005_s4 + $0x90] sm:$0xff]   ;;  %v6386_v22 = vld [vmem:[%s8005_s4 + $0x98] sm:$0xff]  }
 0x3f7   :  { %v5505_v58 = vpop.f32.mrb[95].mxu0  ;;  %v6387_v23 = vld [vmem:[%s8005_s4 + $0x88] sm:$0x3f]   ;;  %v6388_v19 = vld [vmem:[%s8005_s4 + $0xa0] sm:$0xff]  }
 0x3f8   :  { %v2020_v1 = vadd.f32 %v5503_v49, %v2019_v44  ;;  %v5506_v7 = vadd.f32 %v5505_v58, %v5504_v50  ;;  %vm2046_vm6 = vcmp.ge.f32.partialorder %v2040_v2, 0.0  ;;  %v2052_v24 = vmul.f32 0.01, %v2040_v2  ;;  %v6389_v50 = vld [vmem:[%s8005_s4 + $0xa8] sm:$0xff]  }
 0x3f9   :  { %v2057_v13 = vsel %vm2045_vm5, %v2039_v20, %v2051_v53  ;;  %v6385_v20 = vld [vmem:[%s8005_s4 + $0x80] sm:$0xff]   ;;  %v2539_v49 = vsel %vm2272_vm10, %v6387_v23, 0  ;;  %v6390_v53 = vld [vmem:[%s8005_s4 + $0xb0] sm:$0xff]   ;;  %vm2872_vm5 = vcmask 130048  }
 0x3fa   :  { %v2030_v4 = vadd.f32 %v2020_v1, %v7298_v60  ;;  %v2023_v48 = vadd.f32 %v5506_v7, %v2022_v18  ;;  %v2058_v21 = vsel %vm2046_vm6, %v2040_v2, %v2052_v24  ;;  %v6391_v2 = vld [vmem:[%s8005_s4 + $0xb8] sm:$0x3f]   ;;  %vm2874_vm6 = vcmask 162816  }
 0x3fb   :  { %v7329_v25 = vpack.c.bf16 %v2058_v21, %v2057_v13  ;;  %v2715_v58 = vsel %vm2272_vm10, %v6391_v2, 0 }
 0x3fc   :  { %v2041_v26 = vadd.f32 %v5021_v5, %v2030_v4  ;;  %v2031_v27 = vadd.f32 %v2023_v48, %v7301_v46  ;;  %v6364_v46 = vld [vmem:[%s8005_s4 + $0x30] sm:$0xff]  }
 0x3fd   :  { %5871 = vmatprep.subr.bf16.mxu0 %v7329_v25  ;;  %5881 = vmatprep.subr.bf16.mxu1 %v7329_v25 }
 0x3fe   :  { %v2053_v47 = vmul.f32 0.01, %v2041_v26  ;;  %v2042_v28 = vadd.f32 %v5021_v5, %v2031_v27  ;;  %vm2047_vm7 = vcmp.ge.f32.partialorder %v2041_v26, 0.0  ;;  %5872 = vmatpush3.bf16.msra.mxu0 %v7329_v25  ;;  %5882 = vmatpush3.bf16.msra.mxu1 %v7329_v25  ;;  %v2274_v5 = vsel %vm2272_vm10, %v6369_v33, 0 }
 0x400   :  { %vm2048_vm8 = vcmp.ge.f32.partialorder %v2042_v28, 0.0  ;;  %v2054_v60 = vmul.f32 0.01, %v2042_v28  ;;  %v2059_v30 = vsel %vm2047_vm7, %v2041_v26, %v2053_v47  ;;  %vm2876_vm7 = vcmask 195584  }
 0x402   :  { %v2060_v52 = vsel %vm2048_vm8, %v2042_v28, %v2054_v60  ;;  %vm2878_vm8 = vcmask 228352  }
 0x403   :  { %v7336_v51 = vpack.c.bf16 %v2060_v52, %v2059_v30 }
 0x405   :  { %6199 = vmatprep.subr.msk.bf16.mxu0 %vm2083_vm9, %v7336_v51  ;;  %6200 = vmatprep.subr.msk.bf16.mxu1 %vm2083_vm9, %v7336_v51  ;;  %v7353_v59 = vsel %vm2083_vm9, %v7336_v51, 0 }
 0x406   :  { %5874 = vmatpush3.bf16.msra.mxu0 %v7353_v59  ;;  %5884 = vmatpush3.bf16.msra.mxu1 %v7353_v59 }
 0x407   :  { %5889 = vmatprep.subr.bf16.mxu0 %v6364_v46  ;;  %5905 = vmatprep.subr.bf16.mxu1 %v6370_v55 }
 0x409   :  { %5876 = vmatmul.mubr.msk.bf16.vlgmr.msra.gmra.mrb[96].mxu0 %vm2076_vm2, %v6362_v34  ;;  %5886 = vmatmul.mubr.msk.bf16.vlgmr.msra.gmra.mrb[96].mxu1 %vm2076_vm2, %v6363_v35 }
 0x40a   :  { %5890 = vmatpush3.bf16.msra.mxu0 %v6364_v46  ;;  %5906 = vmatpush3.bf16.msra.mxu1 %v6370_v55 }
 0x40b   :  { %5891 = vmatprep.subr.bf16.mxu0 %v6365_v36  ;;  %5907 = vmatprep.subr.bf16.mxu1 %v6371_v56 }
 0x40e   :  { %5892 = vmatpush3.bf16.msra.mxu0 %v6365_v36  ;;  %5908 = vmatpush3.bf16.msra.mxu1 %v6371_v56 }
 0x40f   :  { %5893 = vmatprep.subr.bf16.mxu0 %v6366_v57  ;;  %5909 = vmatprep.subr.bf16.mxu1 %v6372_v37 }
 0x412   :  { %5894 = vmatpush3.bf16.msra.mxu0 %v6366_v57  ;;  %5910 = vmatpush3.bf16.msra.mxu1 %v6372_v37 }
 0x413   :  { %5895 = vmatprep.subr.bf16.mxu0 %v6367_v63  ;;  %5911 = vmatprep.subr.bf16.mxu1 %v6373_v62 }
 0x416   :  { %5896 = vmatpush3.bf16.msra.mxu0 %v6367_v63  ;;  %5912 = vmatpush3.bf16.msra.mxu1 %v6373_v62 }
 0x417   :  { %5897 = vmatprep.subr.bf16.mxu0 %v6368_v29  ;;  %5913 = vmatprep.subr.bf16.mxu1 %v6374_v6 }
 0x41a   :  { %5898 = vmatpush3.bf16.msra.mxu0 %v6368_v29  ;;  %5914 = vmatpush3.bf16.msra.mxu1 %v6374_v6 }
 0x41b   :  { %6201 = vmatprep.subr.msk.bf16.mxu0 %vm2272_vm10, %v6369_v33  ;;  %6202 = vmatprep.subr.msk.bf16.mxu1 %vm2272_vm10, %v6375_v8  ;;  %v5118_v8 = vld [vmem:[%s8006_s7 + $0x1] ss:$0 sm:$0xff] }
 0x41e   :  { %5900 = vmatpush3.bf16.msra.mxu0 %v2274_v5  ;;  %5916 = vmatpush3.bf16.msra.mxu1 %v2366_v39 }
 0x41f   :  { %5921 = vmatprep.subr.bf16.mxu0 %v7321_v16  ;;  %5931 = vmatprep.subr.bf16.mxu1 %v6380_v40 }
 0x4dc   :  { %v5877_v42 = vpop.f32.mrb[96].mxu0  ;;  %v5887_v43 = vpop.f32.mrb[96].mxu1 }
 0x4dd   :  { %v2121_v3 = vpop.f32.mrb[97].mxu0  ;;  %v2201_v44 = vpop.f32.mrb[97].mxu1  ;;  %v2148_v61 = vpack.c.bf16 %v5877_v42, %v5877_v42  ;;  %v2229_v11 = vpack.c.bf16 %v5887_v43, %v5887_v43 }
 0x4de   :  { %v5878_v38 = vpop.f32.mrb[98].mxu0  ;;  %v5888_v54 = vpop.f32.mrb[98].mxu1 }
 0x4df   :  { %v2124_v41 = vpop.f32.mrb[99].mxu0  ;;  %v2204_v45 = vpop.f32.mrb[99].mxu1 }
 0x4e0   :  { %v2147_v9 = vpack.c.bf16 %v2124_v41, %v2121_v3  ;;  %v2228_v18 = vpack.c.bf16 %v2204_v45, %v2201_v44 }
 0x4e2   :  { %5901 = vmatprep.mubr.msk.bf16.mxu0 %vm2265_vm11, %v2228_v18  ;;  %5917 = vmatprep.mubr.msk.bf16.mxu1 %vm2265_vm11, %v2147_v9 }
 0x4e3   :  { %5902 = vmatmul.mubr.msk.bf16.vlgmr.msra.gmra.mrb[100].mxu0 %vm2265_vm11, %v2229_v11  ;;  %5918 = vmatmul.mubr.msk.bf16.vlgmr.msra.gmra.mrb[100].mxu1 %vm2265_vm11, %v2148_v61 }
 0x4e4   :  { %5922 = vmatpush3.bf16.msra.mxu0 %v7321_v16  ;;  %5927 = vmatprep.mubr.msk.bf16.mxu0 %vm2076_vm2, %v6376_v10 }
 0x4e5   :  { %5923 = vmatprep.subr.bf16.mxu0 %v7329_v25  ;;  %5932 = vmatpush3.bf16.msra.mxu1 %v6380_v40 }
 0x4e6   :  { %5933 = vmatprep.subr.bf16.mxu1 %v6381_v12 }
 0x4e8   :  { %5924 = vmatpush3.bf16.msra.mxu0 %v7329_v25 }
 0x4e9   :  { %6203 = vmatprep.subr.msk.bf16.mxu0 %vm2083_vm9, %v7336_v51  ;;  %5934 = vmatpush3.bf16.msra.mxu1 %v6381_v12 }
 0x4ea   :  { %5935 = vmatprep.subr.bf16.mxu1 %v6382_v32 }
 0x4ec   :  { %5926 = vmatpush3.bf16.msra.mxu0 %v7353_v59 }
 0x4ed   :  { %5947 = vmatprep.subr.bf16.mxu0 %v7321_v16  ;;  %5936 = vmatpush3.bf16.msra.mxu1 %v6382_v32 }
 0x4ef   :  { %5928 = vmatmul.mubr.msk.bf16.vlgmr.msra.gmra.mrb[104].mxu0 %vm2076_vm2, %v6377_v31 }
 0x4f0   :  { %5948 = vmatpush3.bf16.msra.mxu0 %v7321_v16  ;;  %5953 = vmatprep.mubr.msk.bf16.mxu0 %vm2076_vm2, %v6378_v14  ;;  %v6383_v16 = vld [vmem:[%s8005_s4 + $0x78] sm:$0xff]  }
 0x4f1   :  { %5949 = vmatprep.subr.bf16.mxu0 %v7329_v25  ;;  %5937 = vmatprep.subr.bf16.mxu1 %v6383_v16 }
 0x4f2   :  { %5938 = vmatpush3.bf16.msra.mxu1 %v6383_v16 }
 0x4f3   :  { %5939 = vmatprep.subr.bf16.mxu1 %v6385_v20 }
 0x4f4   :  { %5950 = vmatpush3.bf16.msra.mxu0 %v7329_v25 }
 0x4f5   :  { %6205 = vmatprep.subr.msk.bf16.mxu0 %vm2083_vm9, %v7336_v51  ;;  %vm2880_vm9 = vcmask 261120  }
 0x4f6   :  { %5940 = vmatpush3.bf16.msra.mxu1 %v6385_v20 }
 0x4f7   :  { %6204 = vmatprep.subr.msk.bf16.mxu1 %vm2272_vm10, %v6387_v23 }
 0x4f8   :  { %5952 = vmatpush3.bf16.msra.mxu0 %v7353_v59 }
 0x4f9   :  { %5957 = vmatprep.subr.bf16.mxu0 %v6384_v17 }
 0x4fa   :  { %5942 = vmatpush3.bf16.msra.mxu1 %v2539_v49 }
 0x4fb   :  { %5954 = vmatmul.mubr.msk.bf16.vlgmr.msra.gmra.mrb[108].mxu0 %vm2076_vm2, %v6379_v15  ;;  %5981 = vmatprep.subr.bf16.mxu1 %v6478_v0  ;;  %vm2866_vm2 = vcmask 31744  }
 0x4fc   :  { %5958 = vmatpush3.bf16.msra.mxu0 %v6384_v17 }
 0x4fd   :  { %5959 = vmatprep.subr.bf16.mxu0 %v6386_v22 }
 0x500   :  { %5960 = vmatpush3.bf16.msra.mxu0 %v6386_v22 }
 0x501   :  { %5961 = vmatprep.subr.bf16.mxu0 %v6388_v19 }
 0x504   :  { %5962 = vmatpush3.bf16.msra.mxu0 %v6388_v19 }
 0x505   :  { %5963 = vmatprep.subr.bf16.mxu0 %v6389_v50 }
 0x508   :  { %5964 = vmatpush3.bf16.msra.mxu0 %v6389_v50 }
 0x509   :  { %5965 = vmatprep.subr.bf16.mxu0 %v6390_v53 }
 0x50c   :  { %5966 = vmatpush3.bf16.msra.mxu0 %v6390_v53 }
 0x50d   :  { %6206 = vmatprep.subr.msk.bf16.mxu0 %vm2272_vm10, %v6391_v2 }
 0x510   :  { %5968 = vmatpush3.bf16.msra.mxu0 %v2715_v58 }
 0x511   :  { %5973 = vmatprep.subr.bf16.mxu0 %v6478_v0 }
 0x5b6   :  { %v5903_v1 = vpop.f32.mrb[100].mxu0  ;;  %v5919_v7 = vpop.f32.mrb[100].mxu1 }
 0x5b7   :  { %v2411_v24 = vadd.f32 %v5919_v7, %v5903_v1  ;;  %v2310_v4 = vpop.f32.mrb[101].mxu0  ;;  %v2402_v48 = vpop.f32.mrb[101].mxu1 }
 0x5b8   :  { %v2403_v13 = vadd.f32 %v2402_v48, %v2310_v4  ;;  %v5904_v21 = vpop.f32.mrb[102].mxu0  ;;  %v5920_v25 = vpop.f32.mrb[102].mxu1 }
 0x5b9   :  { %v2313_v26 = vpop.f32.mrb[103].mxu0  ;;  %v2405_v27 = vpop.f32.mrb[103].mxu1 }
 0x5ba   :  { %v2406_v47 = vadd.f32 %v2405_v27, %v2313_v26 }
 0x5c2   :  { %v5929_v28 = vpop.f32.mrb[104].mxu0 }
 0x5c3   :  { %v2468_v60 = vpop.f32.mrb[105].mxu0  ;;  %v2496_v46 = vpack.c.bf16 %v5929_v28, %v5929_v28 }
 0x5c4   :  { %v5930_v30 = vpop.f32.mrb[106].mxu0 }
 0x5c5   :  { %v2471_v52 = vpop.f32.mrb[107].mxu0 }
 0x5c6   :  { %v2495_v51 = vpack.c.bf16 %v2471_v52, %v2468_v60 }
 0x5c8   :  { %5943 = vmatprep.mubr.msk.bf16.mxu1 %vm2265_vm11, %v2495_v51 }
 0x5c9   :  { %5944 = vmatmul.mubr.msk.bf16.vlgmr.msra.gmra.mrb[104].mxu1 %vm2265_vm11, %v2496_v46 }
 0x5ca   :  { %5985 = vmatprep.mubr.msk.bf16.mxu1 %vm6479_vm0, %v6478_v0 }
 0x5ce   :  { %v5955_v55 = vpop.f32.mrb[108].mxu0 }
 0x5cf   :  { %v2644_v34 = vpop.f32.mrb[109].mxu0  ;;  %v2672_v56 = vpack.c.bf16 %v5955_v55, %v5955_v55 }
 0x5d0   :  { %v5956_v59 = vpop.f32.mrb[110].mxu0 }
 0x5d1   :  { %v2647_v35 = vpop.f32.mrb[111].mxu0 }
 0x5d2   :  { %v2671_v36 = vpack.c.bf16 %v2647_v35, %v2644_v34 }
 0x5d4   :  { %5969 = vmatprep.mubr.msk.bf16.mxu0 %vm2265_vm11, %v2671_v36  ;;  %v2884_v36 = vlaneseq }
 0x5d5   :  { %5970 = vmatmul.mubr.msk.bf16.vlgmr.msra.gmra.mrb[112].mxu0 %vm2265_vm11, %v2672_v56  ;;  %vm2882_vm11 = vcmask 293888  }
 0x5d6   :  { %5977 = vmatprep.mubr.msk.bf16.mxu0 %vm6479_vm0, %v6478_v0 }
 0x69c   :  { %v5945_v57 = vpop.f32.mrb[104].mxu1 }
 0x69d   :  { %v2591_v37 = vadd.f32 %v5945_v57, %v2411_v24  ;;  %v2575_v63 = vpop.f32.mrb[105].mxu1 }
 0x69e   :  { %v2589_v62 = vadd.f32 %v2575_v63, %v2403_v13  ;;  %v5946_v29 = vpop.f32.mrb[106].mxu1 }
 0x69f   :  { %v2578_v6 = vpop.f32.mrb[107].mxu1 }
 0x6a0   :  { %v2590_v33 = vadd.f32 %v2578_v6, %v2406_v47 }
 0x6a8   :  { %v5971_v5 = vpop.f32.mrb[112].mxu0 }
 0x6a9   :  { %v2767_v39 = vadd.f32 %v5971_v5, %v2591_v37  ;;  %v2751_v40 = vpop.f32.mrb[113].mxu0 }
 0x6aa   :  { %v2765_v42 = vadd.f32 %v2751_v40, %v2589_v62  ;;  %v5972_v43 = vpop.f32.mrb[114].mxu0  ;;  %v2885_v62 = vshrl.u32 %v2884_v36, 7 }
 0x6ab   :  { %v2775_v3 = vadd.f32 %v5118_v8, %v2767_v39  ;;  %v2754_v44 = vpop.f32.mrb[115].mxu0 }
 0x6ac   :  { %v2773_v38 = vadd.f32 %v5118_v8, %v2765_v42  ;;  %v2766_v54 = vadd.f32 %v2754_v44, %v2590_v33 }
 0x6ad   :  { %v2781_v61 = vmul.f32 0.01, %v2775_v3  ;;  %vm2778_vm13 = vcmp.ge.f32.partialorder %v2775_v3, 0.0 }
 0x6ae   :  { %vm2776_vm12 = vcmp.ge.f32.partialorder %v2773_v38, 0.0  ;;  %v2779_v41 = vmul.f32 0.01, %v2773_v38  ;;  %v2774_v45 = vadd.f32 %v5118_v8, %v2766_v54  ;;  %v7520_v8 = vsub.s32 0, %v2885_v62 }
 0x6af   :  { %v7485_v10 = vsel %vm2778_vm13, %v2775_v3, %v2781_v61  ;;  %vm3161_vm13 = vcmask 1043456  }
 0x6b0   :  { %v7483_v9 = vsel %vm2776_vm12, %v2773_v38, %v2779_v41  ;;  %vm2777_vm15 = vcmp.ge.f32.partialorder %v2774_v45, 0.0  ;;  %v2780_v18 = vmul.f32 0.01, %v2774_v45  ;;  %v2792_v15 = vsel %vm2791_vm1, %v7485_v10, 0.0 }
 0x6b1   :  { %v2788_v12 = vsel %vm2787_vm14, %v7483_v9, 0.0  ;;  %vm3041_vm12 = vcmask 1041408  }
 0x6b2   :  { %v7487_v11 = vsel %vm2777_vm15, %v2774_v45, %v2780_v18 }
 0x6b3   :  { %v2789_v31 = vsel %vm2787_vm14, %v7487_v11, 0.0 }
 0x6b4   :  { %v2790_v14 = vadd.f32 %v2789_v31, %v2788_v12 }
 0x6b6   :  { %v2793_v32 = vadd.f32 %v2792_v15, %v2790_v14 }
 0x6b8   :  { %v2794_v16 = vrot.slane %v2793_v32, 4 }
 0x6ba   :  { %v2795_v17 = vadd.f32 %v2794_v16, %v2793_v32 }
 0x6bc   :  { %v2796_v20 = vrot.slane %v2795_v17, 2 }
 0x6be   :  { %v2797_v22 = vadd.f32 %v2796_v20, %v2795_v17  ;;  %v2786_v17 = vld [vmem:[%s8006_s7 + $0x5] sm:$0x1] }
 0x6c0   :  { %v2798_v23 = vrot.slane %v2797_v22, 1 }
 0x6c2   :  { %v2799_v19 = vadd.f32 %v2798_v23, %v2797_v22 }
 0x6c4   :  { %2809 = vrot.lane.b32.xlu1 %v2799_v19, %s6481_s20  ;;  %2801 = vrot.lane.b32.xlu0 %v2799_v19, %s6482_s21 }
 0x6c8   :  { %2813 = vrot.lane.b32.xlu1 %v2799_v19, %s6483_s3  ;;  %2805 = vrot.lane.b32.xlu0 %v2799_v19, %s6484_s0 }
 0x6cc   :  { %2821 = vrot.lane.b32.xlu1 %v2799_v19, %s6485_s22  ;;  %2817 = vrot.lane.b32.xlu0 %v2799_v19, %s6486_s23 }
 0x6d0   :  { %2829 = vrot.lane.b32.xlu1 %v2799_v19, %s6487_s24  ;;  %2825 = vrot.lane.b32.xlu0 %v2799_v19, %s6488_s25 }
 0x6d4   :  { %2833 = vrot.lane.b32.xlu0 %v2799_v19, %s6489_s26 }
 0x736   :  { %v2810_v49 = vpop.permute.xlu1 %2809  ;;  %v2802_v50 = vpop.permute.xlu0 %2801 }
 0x737   :  { %v2804_v53 = vadd.f32 %v2802_v50, %v2799_v19 }
 0x73a   :  { %v2814_v2 = vpop.permute.xlu1 %2813  ;;  %v2806_v58 = vpop.permute.xlu0 %2805 }
 0x73b   :  { %v2808_v1 = vadd.f32 %v2806_v58, %v2804_v53 }
 0x73d   :  { %v2812_v7 = vadd.f32 %v2810_v49, %v2808_v1 }
 0x73e   :  { %v2818_v24 = vpop.permute.xlu0 %2817  ;;  %v2822_v48 = vpop.permute.xlu1 %2821 }
 0x73f   :  { %v2816_v4 = vadd.f32 %v2814_v2, %v2812_v7 }
 0x741   :  { %v2820_v13 = vadd.f32 %v2818_v24, %v2816_v4 }
 0x742   :  { %v2826_v21 = vpop.permute.xlu0 %2825  ;;  %v2830_v27 = vpop.permute.xlu1 %2829 }
 0x743   :  { %v2824_v25 = vadd.f32 %v2822_v48, %v2820_v13 }
 0x745   :  { %v2828_v26 = vadd.f32 %v2826_v21, %v2824_v25 }
 0x746   :  { %v2834_v28 = vpop.permute.xlu0 %2833 }
 0x747   :  { %v2832_v47 = vadd.f32 %v2830_v27, %v2828_v26 }
 0x749   :  { %v2836_v60 = vadd.f32 %v2834_v28, %v2832_v47  ;;  %v2785_v28 = vld [vmem:[%s8006_s7 + $0x4] sm:$0x1] }
 0x74b   :  { %v2837_v30 = vmul.f32 0.005, %v2836_v60 }
 0x74d   :  { %2842 = vrot.lane.b32.xlu0 %v2837_v30, %s6490_s27  ;;  %2839 = vrot.lane.b32.xlu1 %v2837_v30, %s6491_s28 }
 0x751   :  { %2848 = vrot.lane.b32.xlu0 %v2837_v30, %s6492_s29  ;;  %2845 = vrot.lane.b32.xlu1 %v2837_v30, %s6493_s30 }
 0x755   :  { %2854 = vrot.lane.b32.xlu0 %v2837_v30, %s6494_s10  ;;  %2851 = vrot.lane.b32.xlu1 %v2837_v30, %s6495_s11 }
 0x759   :  { %2860 = vrot.lane.b32.xlu0 %v2837_v30, %s6496_s12  ;;  %2857 = vrot.lane.b32.xlu1 %v2837_v30, %s6497_s13 }
 0x75d   :  { %2863 = vrot.lane.b32.xlu1 %v2837_v30, %s6498_s14 }
 0x7bf   :  { %v2843_v52 = vpop.permute.xlu0 %2842  ;;  %v2840_v51 = vpop.permute.xlu1 %2839 }
 0x7c0   :  { %v2867_v46 = vsel %vm2866_vm2, %v2837_v30, %v2840_v51 }
 0x7c1   :  { %v2869_v34 = vsel %vm2868_vm3, %v2867_v46, %v2843_v52 }
 0x7c3   :  { %v2849_v55 = vpop.permute.xlu0 %2848  ;;  %v2846_v59 = vpop.permute.xlu1 %2845 }
 0x7c4   :  { %v2871_v35 = vsel %vm2870_vm4, %v2869_v34, %v2846_v59 }
 0x7c5   :  { %v2873_v57 = vsel %vm2872_vm5, %v2871_v35, %v2849_v55 }
 0x7c7   :  { %v2855_v56 = vpop.permute.xlu0 %2854  ;;  %v2852_v37 = vpop.permute.xlu1 %2851 }
 0x7c8   :  { %v2875_v63 = vsel %vm2874_vm6, %v2873_v57, %v2852_v37 }
 0x7c9   :  { %v2877_v29 = vsel %vm2876_vm7, %v2875_v63, %v2855_v56 }
 0x7cb   :  { %v2858_v6 = vpop.permute.xlu1 %2857  ;;  %v2861_v33 = vpop.permute.xlu0 %2860 }
 0x7cc   :  { %v2879_v5 = vsel %vm2878_vm8, %v2877_v29, %v2858_v6 }
 0x7cd   :  { %v2881_v39 = vsel %vm2880_vm9, %v2879_v5, %v2861_v33 }
 0x7cf   :  { %v2864_v40 = vpop.permute.xlu1 %2863 }
 0x7d0   :  { %v2883_v42 = vsel %vm2882_vm11, %v2881_v39, %v2864_v40 }
 0x7d1   :  { %v2887_v43 = vrot.slane %v2883_v42, %v7520_v8 }
 0x7d3   :  { %v7526_v3 = vsub.f32 %v7483_v9, %v2887_v43  ;;  %v7529_v44 = vsub.f32 %v7487_v11, %v2887_v43  ;;  %v7532_v38 = vsub.f32 %v7485_v10, %v2887_v43 }
 0x7d5   :  { %v2891_v54 = vmul.f32 %v7526_v3, %v7526_v3  ;;  %v2892_v61 = vmul.f32 %v7529_v44, %v7529_v44  ;;  %v2893_v41 = vmul.f32 %v7532_v38, %v7532_v38 }
 0x7d7   :  { %v2894_v45 = vsel %vm2787_vm14, %v2891_v54, 0.0  ;;  %v2895_v9 = vsel %vm2787_vm14, %v2892_v61, 0.0  ;;  %v2897_v11 = vsel %vm2791_vm1, %v2893_v41, 0.0  ;;  %vm3911_vm1 = vcmask 25600  }
 0x7d8   :  { %v2896_v18 = vadd.f32 %v2895_v9, %v2894_v45 }
 0x7da   :  { %v2898_v12 = vadd.f32 %v2897_v11, %v2896_v18 }
 0x7dc   :  { %v2899_v31 = vrot.slane %v2898_v12, 4 }
 0x7de   :  { %v2900_v10 = vadd.f32 %v2899_v31, %v2898_v12 }
 0x7e0   :  { %v2901_v14 = vrot.slane %v2900_v10, 2 }
 0x7e2   :  { %v2902_v15 = vadd.f32 %v2901_v14, %v2900_v10 }
 0x7e4   :  { %v2903_v32 = vrot.slane %v2902_v15, 1 }
 0x7e6   :  { %v2904_v16 = vadd.f32 %v2903_v32, %v2902_v15 }
 0x7e8   :  { %2910 = vrot.lane.b32.xlu1 %v2904_v16, %s6484_s0  ;;  %2906 = vrot.lane.b32.xlu0 %v2904_v16, %s6482_s21 }
 0x7ec   :  { %2918 = vrot.lane.b32.xlu1 %v2904_v16, %s6483_s3  ;;  %2914 = vrot.lane.b32.xlu0 %v2904_v16, %s6481_s20 }
 0x7f0   :  { %2926 = vrot.lane.b32.xlu1 %v2904_v16, %s6485_s22  ;;  %2922 = vrot.lane.b32.xlu0 %v2904_v16, %s6486_s23 }
 0x7f4   :  { %2934 = vrot.lane.b32.xlu1 %v2904_v16, %s6487_s24  ;;  %2930 = vrot.lane.b32.xlu0 %v2904_v16, %s6488_s25 }
 0x7f8   :  { %2938 = vrot.lane.b32.xlu0 %v2904_v16, %s6489_s26 }
 0x7fc   :  { %2991 = vrot.lane.b32.xlu0 %v2786_v17, %s6491_s28 }
 0x800   :  { %2994 = vrot.lane.b32.xlu0 %v2786_v17, %s6490_s27 }
 0x804   :  { %2997 = vrot.lane.b32.xlu0 %v2786_v17, %s6493_s30 }
 0x808   :  { %3000 = vrot.lane.b32.xlu0 %v2786_v17, %s6492_s29 }
 0x80c   :  { %3003 = vrot.lane.b32.xlu0 %v2786_v17, %s6495_s11 }
 0x85a   :  { %v2911_v20 = vpop.permute.xlu1 %2910  ;;  %v2907_v22 = vpop.permute.xlu0 %2906 }
 0x85b   :  { %v2909_v23 = vadd.f32 %v2907_v22, %v2904_v16 }
 0x85d   :  { %v2913_v19 = vadd.f32 %v2911_v20, %v2909_v23 }
 0x85e   :  { %v2919_v49 = vpop.permute.xlu1 %2918  ;;  %v2915_v50 = vpop.permute.xlu0 %2914 }
 0x85f   :  { %v2917_v53 = vadd.f32 %v2915_v50, %v2913_v19 }
 0x861   :  { %v2921_v2 = vadd.f32 %v2919_v49, %v2917_v53 }
 0x862   :  { %v2927_v58 = vpop.permute.xlu1 %2926  ;;  %v2923_v1 = vpop.permute.xlu0 %2922 }
 0x863   :  { %v2925_v7 = vadd.f32 %v2923_v1, %v2921_v2 }
 0x865   :  { %v2929_v24 = vadd.f32 %v2927_v58, %v2925_v7  ;;  %v6392_v7 = vld [vmem:[%s8007_s5 + $0x14] sm:$0xff]  }
 0x866   :  { %v2931_v4 = vpop.permute.xlu0 %2930  ;;  %v2935_v13 = vpop.permute.xlu1 %2934 }
 0x867   :  { %v2933_v48 = vadd.f32 %v2931_v4, %v2929_v24  ;;  %v6393_v24 = vld [vmem:[%s8007_s5] sm:$0xff]  }
 0x868   :  { %v6394_v4 = vld [vmem:[%s8007_s5 + $0x1c] sm:$0xff]  }
 0x869   :  { %v2937_v21 = vadd.f32 %v2935_v13, %v2933_v48  ;;  %v6395_v48 = vld [vmem:[%s8007_s5 + $0x8] sm:$0xff]   ;;  %v6396_v13 = vld [vmem:[%s8007_s5 + $0x24] ss:$0 sps:$4 sm:$0xff]  }
 0x86a   :  { %v2939_v25 = vpop.permute.xlu0 %2938 }
 0x86b   :  { %v2941_v26 = vadd.f32 %v2939_v25, %v2937_v21  ;;  %v3163_v21 = vsel %vm3161_vm13, %v6396_v13, 0  ;;  %v6397_v25 = vld [vmem:[%s8007_s5 + $0x10] ss:$0 sps:$4 sm:$0xff]   ;;  %v6405_v13 = vld [vmem:[%s8008_s6 + $0x8] sm:$0xff]  }
 0x86d   :  { %v2942_v27 = vmul.f32 0.005, %v2941_v26  ;;  %v3224_v26 = vsel %vm3161_vm13, %v6397_v25, 0 }
 0x86e   :  { %v2992_v52 = vpop.permute.xlu0 %2991 }
 0x86f   :  { %v2943_v47 = vadd.f32 1e-05, %v2942_v27  ;;  %v3018_v57 = vsel %vm2866_vm2, %v2786_v17, %v2992_v52 }
 0x871   :  { %6448 = vrsqrt.f32 %v2943_v47 }
 0x872   :  { %v2995_v51 = vpop.permute.xlu0 %2994 }
 0x873   :  { %v3019_v62 = vsel %vm2868_vm3, %v3018_v57, %v2995_v51  ;;  %v6400_v57 = vld [vmem:[%s8007_s5 + $0x38] ss:$0 sps:$4 sm:$0xff]  }
 0x876   :  { %v2998_v46 = vpop.permute.xlu0 %2997 }
 0x877   :  { %v3020_v6 = vsel %vm2870_vm4, %v3019_v62, %v2998_v46  ;;  %v6402_v62 = vld [vmem:[%s8007_s5 + $0x44] sm:$0xff]  }
 0x87a   :  { %v3001_v34 = vpop.permute.xlu0 %3000 }
 0x87b   :  { %v6449_v60 = vpop.eup %6448  ;;  %v3021_v40 = vsel %vm2872_vm5, %v3020_v6, %v3001_v34 }
 0x87c   :  { %v2945_v30 = vmul.f32 %v6449_v60, %v2785_v28 }
 0x87e   :  { %2950 = vrot.lane.b32.xlu0 %v2945_v30, %s6490_s27  ;;  %2947 = vrot.lane.b32.xlu1 %v2945_v30, %s6491_s28  ;;  %v3004_v36 = vpop.permute.xlu0 %3003 }
 0x87f   :  { %v3022_v41 = vsel %vm2874_vm6, %v3021_v40, %v3004_v36  ;;  %v6398_v36 = vld [vmem:[%s8007_s5 + $0x28] sm:$0xff]  }
 0x882   :  { %3006 = vrot.lane.b32.xlu0 %v2786_v17, %s6494_s10  ;;  %2953 = vrot.lane.b32.xlu1 %v2945_v30, %s6493_s30 }
 0x886   :  { %3009 = vrot.lane.b32.xlu0 %v2786_v17, %s6497_s13  ;;  %2956 = vrot.lane.b32.xlu1 %v2945_v30, %s6492_s29 }
 0x88a   :  { %2959 = vrot.lane.b32.xlu1 %v2945_v30, %s6495_s11  ;;  %3015 = vrot.lane.b32.xlu0 %v2786_v17, %s6498_s14 }
 0x88e   :  { %2962 = vrot.lane.b32.xlu1 %v2945_v30, %s6494_s10 }
 0x892   :  { %2965 = vrot.lane.b32.xlu1 %v2945_v30, %s6497_s13 }
 0x896   :  { %2968 = vrot.lane.b32.xlu1 %v2945_v30, %s6496_s12 }
 0x89a   :  { %2971 = vrot.lane.b32.xlu1 %v2945_v30, %s6498_s14 }
 0x89e   :  { %3012 = vrot.lane.b32.xlu1 %v2786_v17, %s6496_s12 }
 0x8f0   :  { %v2948_v55 = vpop.permute.xlu1 %2947  ;;  %v2951_v37 = vpop.permute.xlu0 %2950 }
 0x8f1   :  { %v2974_v29 = vsel %vm2866_vm2, %v2945_v30, %v2948_v55 }
 0x8f2   :  { %v2975_v39 = vsel %vm2868_vm3, %v2974_v29, %v2951_v37  ;;  %v6401_v37 = vld [vmem:[%s8007_s5 + $0x3c] sm:$0xff]   ;;  %v6403_v29 = vld [vmem:[%s8007_s5 + $0x4c] ss:$0 sps:$4 sm:$0xff]  }
 0x8f3   :  { %v3451_v6 = vsel %vm3161_vm13, %v6403_v29, 0 }
 0x8f4   :  { %v2954_v59 = vpop.permute.xlu1 %2953  ;;  %v3007_v5 = vpop.permute.xlu0 %3006 }
 0x8f5   :  { %v2976_v42 = vsel %vm2870_vm4, %v2975_v39, %v2954_v59  ;;  %v3023_v31 = vsel %vm2876_vm7, %v3022_v41, %v3007_v5  ;;  %v5136_v59 = vld [vmem:[%s8003_s2 + $0xf0] sm:$0xf] }
 0x8f8   :  { %v2957_v35 = vpop.permute.xlu1 %2956  ;;  %v3010_v9 = vpop.permute.xlu0 %3009 }
 0x8f9   :  { %v2977_v43 = vsel %vm2872_vm5, %v2976_v42, %v2957_v35  ;;  %v3024_v32 = vsel %vm2878_vm8, %v3023_v31, %v3010_v9  ;;  %v5147_v35 = vld [vmem:[%s8003_s2 + $0x108] sm:$0xf] }
 0x8fc   :  { %v2960_v56 = vpop.permute.xlu1 %2959  ;;  %v3016_v15 = vpop.permute.xlu0 %3015 }
 0x8fd   :  { %v2978_v61 = vsel %vm2874_vm6, %v2977_v43, %v2960_v56  ;;  %v6399_v56 = vld [vmem:[%s8007_s5 + $0x30] sm:$0xff]  }
 0x900   :  { %v2963_v63 = vpop.permute.xlu1 %2962 }
 0x901   :  { %v2979_v45 = vsel %vm2876_vm7, %v2978_v61, %v2963_v63  ;;  %v3337_v63 = vsel %vm3161_vm13, %v6400_v57, 0 }
 0x904   :  { %v2966_v33 = vpop.permute.xlu1 %2965 }
 0x905   :  { %v2980_v18 = vsel %vm2878_vm8, %v2979_v45, %v2966_v33 }
 0x908   :  { %v2969_v54 = vpop.permute.xlu1 %2968 }
 0x909   :  { %v2981_v11 = vsel %vm2880_vm9, %v2980_v18, %v2969_v54 }
 0x90c   :  { %v2972_v12 = vpop.permute.xlu1 %2971 }
 0x90d   :  { %v2982_v10 = vsel %vm2882_vm11, %v2981_v11, %v2972_v12 }
 0x90e   :  { %v2986_v14 = vrot.slane %v2982_v10, %v7520_v8 }
 0x910   :  { %v3013_v16 = vpop.permute.xlu1 %3012  ;;  %v2987_v22 = vmul.f32 %v2986_v14, %v7526_v3  ;;  %v2988_v23 = vmul.f32 %v2986_v14, %v7529_v44  ;;  %v2989_v19 = vmul.f32 %v2986_v14, %v7532_v38  ;;  %v5119_v44 = vld [vmem:[%s8003_s2 + $0xc0] sm:$0xf]  ;;  %v5121_v38 = vld [vmem:[%s8003_s2 + $0xd8] sm:$0xf] }
 0x911   :  { %v3025_v17 = vsel %vm2880_vm9, %v3024_v32, %v3013_v16 }
 0x912   :  { %v3026_v20 = vsel %vm2882_vm11, %v3025_v17, %v3016_v15 }
 0x913   :  { %v3030_v49 = vrot.slane %v3026_v20, %v7520_v8 }
 0x915   :  { %v3031_v50 = vadd.f32 %v3030_v49, %v2987_v22  ;;  %v3032_v53 = vadd.f32 %v3030_v49, %v2988_v23  ;;  %v3033_v2 = vadd.f32 %v3030_v49, %v2989_v19  ;;  %v5158_v49 = vld [vmem:[%s8006_s7 + $0x2] ss:$0 sm:$0xff] }
 0x917   :  { %v3034_v58 = vpack.c.bf16 %v3032_v53, %v3031_v50  ;;  %v3035_v1 = vpack.c.bf16 %v3033_v2, %v3033_v2 }
 0x919   :  { %5974 = vmatpush3.bf16.msra.mxu0 %v3034_v58  ;;  %5982 = vmatpush3.bf16.msra.mxu1 %v3034_v58  ;;  %v3043_v3 = vsel %vm3041_vm12, %v3035_v1, 0 }
 0x91a   :  { %5975 = vmatprep.subr.bf16.mxu0 %v6478_v0  ;;  %5983 = vmatprep.subr.bf16.mxu1 %v6478_v0 }
 0x91d   :  { %5976 = vmatpush3.bf16.msra.mxu0 %v3043_v3  ;;  %5984 = vmatpush3.bf16.msra.mxu1 %v3043_v3 }
 0x91e   :  { %5989 = vmatprep.subr.bf16.mxu1 %v6478_v0  ;;  %5999 = vmatprep.subr.bf16.mxu0 %v6478_v0 }
 0x920   :  { %5978 = vmatmul.mubr.msk.bf16.vlgmr.msra.gmra.mrb[116].mxu0 %vm2874_vm6, %v5119_v44  ;;  %5986 = vmatmul.mubr.msk.bf16.vlgmr.msra.gmra.mrb[108].mxu1 %vm2874_vm6, %v5121_v38 }
 0x921   :  { %5990 = vmatpush3.bf16.msra.mxu1 %v6392_v7  ;;  %6000 = vmatpush3.bf16.msra.mxu0 %v6393_v24  ;;  %v5159_v24 = vld [vmem:[%s8003_s2 + $0x120] sm:$0x1] }
 0x922   :  { %5991 = vmatprep.subr.bf16.mxu1 %v6478_v0  ;;  %6001 = vmatprep.subr.bf16.mxu0 %v6478_v0 }
 0x923   :  { %5995 = vmatprep.mubr.msk.bf16.mxu1 %vm6479_vm0, %v6478_v0  ;;  %6005 = vmatprep.mubr.msk.bf16.mxu0 %vm6479_vm0, %v6478_v0 }
 0x925   :  { %5992 = vmatpush3.bf16.msra.mxu1 %v6394_v4  ;;  %6002 = vmatpush3.bf16.msra.mxu0 %v6395_v48  ;;  %v5161_v4 = vld [vmem:[%s8003_s2 + $0x138] sm:$0x1]  ;;  %v6404_v48 = vld [vmem:[%s8008_s6] sm:$0xff]  }
 0x926   :  { %5993 = vmatprep.subr.bf16.mxu1 %v6478_v0  ;;  %6003 = vmatprep.subr.bf16.mxu0 %v6478_v0 }
 0x929   :  { %5994 = vmatpush3.bf16.msra.mxu1 %v3163_v21  ;;  %6004 = vmatpush3.bf16.msra.mxu0 %v3224_v26 }
 0x92a   :  { %6009 = vmatprep.subr.bf16.mxu1 %v6478_v0  ;;  %6017 = vmatprep.subr.bf16.mxu0 %v6478_v0 }
 0x9f3   :  { %v3079_v27 = vpop.f32.mrb[116].mxu0  ;;  %v3130_v47 = vpop.f32.mrb[108].mxu1 }
 0x9f4   :  { %v3090_v28 = vpack.c.bf16 %v3079_v27, %v3079_v27  ;;  %v3142_v60 = vpack.c.bf16 %v3130_v47, %v3130_v47  ;;  %v5987_v30 = vpop.f32.mrb[109].mxu1  ;;  %v5979_v52 = vpop.f32.mrb[117].mxu0 }
 0x9f5   :  { %v3133_v51 = vpop.f32.mrb[110].mxu1  ;;  %v3082_v46 = vpop.f32.mrb[118].mxu0 }
 0x9f6   :  { %v5988_v55 = vpop.f32.mrb[111].mxu1  ;;  %5996 = vmatmul.mubr.msk.bf16.vlgmr.msra.gmra.mrb[112].mxu1 %vm2787_vm14, %v3142_v60  ;;  %6006 = vmatmul.mubr.msk.bf16.vlgmr.msra.gmra.mrb[120].mxu0 %vm2787_vm14, %v3090_v28  ;;  %v5980_v34 = vpop.f32.mrb[119].mxu0  ;;  %v5169_v46 = vld [vmem:[%s8003_s2 + $0x150] sm:$0x1] }
 0x9f7   :  { %6010 = vmatpush3.bf16.msra.mxu1 %v3034_v58  ;;  %6013 = vmatprep.mubr.msk.bf16.mxu1 %vm6479_vm0, %v6478_v0  ;;  %v5175_v55 = vld [vmem:[%s8003_s2 + $0x168] sm:$0x1]  ;;  %v6406_v34 = vld [vmem:[%s8008_s6 + $0x10] sm:$0xff]  }
 0x9f8   :  { %6011 = vmatprep.subr.bf16.mxu1 %v6478_v0  ;;  %6023 = vmatprep.mubr.msk.bf16.mxu0 %vm6479_vm0, %v6478_v0 }
 0x9f9   :  { %6018 = vmatpush3.bf16.msra.mxu0 %v6398_v36 }
 0x9fa   :  { %6019 = vmatprep.subr.bf16.mxu0 %v6478_v0 }
 0x9fb   :  { %6012 = vmatpush3.bf16.msra.mxu1 %v3043_v3 }
 0x9fc   :  { %6027 = vmatprep.subr.bf16.mxu1 %v6478_v0 }
 0x9fd   :  { %6020 = vmatpush3.bf16.msra.mxu0 %v6399_v56 }
 0x9fe   :  { %6014 = vmatmul.mubr.msk.bf16.vlgmr.msra.gmra.mrb[116].mxu1 %vm2874_vm6, %v5136_v59  ;;  %6021 = vmatprep.subr.bf16.mxu0 %v6478_v0 }
 0x9ff   :  { %6028 = vmatpush3.bf16.msra.mxu1 %v3034_v58  ;;  %6031 = vmatprep.mubr.msk.bf16.mxu1 %vm6479_vm0, %v6478_v0 }
 0xa00   :  { %6029 = vmatprep.subr.bf16.mxu1 %v6478_v0 }
 0xa01   :  { %6022 = vmatpush3.bf16.msra.mxu0 %v3337_v63 }
 0xa02   :  { %6045 = vmatprep.subr.bf16.mxu0 %v6478_v0 }
 0xa03   :  { %6030 = vmatpush3.bf16.msra.mxu1 %v3043_v3 }
 0xa04   :  { %6035 = vmatprep.subr.bf16.mxu1 %v6478_v0 }
 0xa06   :  { %6032 = vmatmul.mubr.msk.bf16.vlgmr.msra.gmra.mrb[120].mxu1 %vm2874_vm6, %v5147_v35 }
 0xa07   :  { %6041 = vmatprep.mubr.msk.bf16.mxu1 %vm6479_vm0, %v6478_v0  ;;  %6036 = vmatpush3.bf16.msra.mxu1 %v6401_v37 }
 0xa08   :  { %6037 = vmatprep.subr.bf16.mxu1 %v6478_v0 }
 0xa0b   :  { %6038 = vmatpush3.bf16.msra.mxu1 %v6402_v62 }
 0xa0c   :  { %6039 = vmatprep.subr.bf16.mxu1 %v6478_v0 }
 0xa0f   :  { %6040 = vmatpush3.bf16.msra.mxu1 %v3451_v6 }
 0xa10   :  { %6057 = vmatprep.subr.bf16.mxu1 %v6478_v0 }
 0xac9   :  { %v3199_v33 = vpop.f32.mrb[112].mxu1  ;;  %v3260_v5 = vpop.f32.mrb[120].mxu0 }
 0xaca   :  { %v3261_v39 = vadd.f32 %v3260_v5, %v3199_v33  ;;  %v5997_v40 = vpop.f32.mrb[113].mxu1  ;;  %v6007_v42 = vpop.f32.mrb[121].mxu0  ;;  %v6407_v33 = vld [vmem:[%s8008_s6 + $0x18] sm:$0xff]  }
 0xacb   :  { %v3202_v43 = vpop.f32.mrb[114].mxu1  ;;  %v3263_v54 = vpop.f32.mrb[122].mxu0 }
 0xacc   :  { %v5998_v61 = vpop.f32.mrb[115].mxu1  ;;  %v6008_v41 = vpop.f32.mrb[123].mxu0 }
 0xad1   :  { %v3305_v45 = vpop.f32.mrb[116].mxu1 }
 0xad2   :  { %v3317_v9 = vpack.c.bf16 %v3305_v45, %v3305_v45  ;;  %v6015_v18 = vpop.f32.mrb[117].mxu1 }
 0xad3   :  { %v3308_v11 = vpop.f32.mrb[118].mxu1  ;;  %v3945_v18 = vld [vmem:[%s8009_s8 + $0x4] sm:$0xf] }
 0xad4   :  { %v6016_v12 = vpop.f32.mrb[119].mxu1  ;;  %6024 = vmatmul.mubr.msk.bf16.vlgmr.msra.gmra.mrb[124].mxu0 %vm2787_vm14, %v3317_v9  ;;  %v3944_v9 = vld [vmem:[%s8009_s8] sm:$0xf] }
 0xad5   :  { %6047 = vmatprep.mubr.msk.bf16.mxu0 %vm6479_vm0, %v6478_v0  ;;  %v5183_v11 = vcombine.low %v3944_v9, %v3945_v18  ;;  %v6409_v12 = vld [vmem:[%s8009_s8 + $0x8] sm:$0xff]  }
 0xad9   :  { %v3419_v31 = vpop.f32.mrb[120].mxu1 }
 0xada   :  { %v3431_v10 = vpack.c.bf16 %v3419_v31, %v3419_v31  ;;  %v6033_v14 = vpop.f32.mrb[121].mxu1  ;;  %v4002_v31 = vrot.slane %v5183_v11, 2 }
 0xadb   :  { %v3422_v15 = vpop.f32.mrb[122].mxu1 }
 0xadc   :  { %v6034_v32 = vpop.f32.mrb[123].mxu1  ;;  %6042 = vmatmul.mubr.msk.bf16.vlgmr.msra.gmra.mrb[124].mxu1 %vm2787_vm14, %v3431_v10  ;;  %v4003_v10 = vrot.slane %v6409_v12, 2  ;;  %v6410_v15 = vld [vmem:[%s8009_s8 + $0x10] sm:$0xff]   ;;  %vm4024_vm14 = vcmask 1014784   ;;  %v5182_v12 = vld [vmem:[%s8006_s7 + $0x7] ss:$0 sm:$0xff] }
 0xadd   :  { %6059 = vmatprep.mubr.msk.bf16.mxu1 %vm6479_vm0, %v6478_v0  ;;  %6058 = vmatpush3.bf16.msra.mxu1 %v6405_v13  ;;  %v4005_v32 = vrot.slane %v6410_v15, 2 }
 0xade   :  { %6069 = vmatprep.subr.bf16.mxu1 %v6478_v0  ;;  %v4004_v14 = vsel %vm2272_vm10, %v4002_v31, %v4003_v10 }
 0xba7   :  { %v3373_v16 = vpop.f32.mrb[124].mxu0 }
 0xba8   :  { %v3379_v17 = vadd.f32 %v3373_v16, %v3261_v39  ;;  %v6025_v20 = vpop.f32.mrb[125].mxu0  ;;  %v4006_v16 = vsel %vm2272_vm10, %v4003_v10, %v4005_v32 }
 0xba9   :  { %v3376_v22 = vpop.f32.mrb[126].mxu0 }
 0xbaa   :  { %v6026_v23 = vpop.f32.mrb[127].mxu0 }
 0xbab   :  { %v6412_v23 = vld [vmem:[%s8009_s8 + $0x20] sm:$0xff]  }
 0xbaf   :  { %v3487_v19 = vpop.f32.mrb[124].mxu1 }
 0xbb0   :  { %v3493_v50 = vadd.f32 %v3487_v19, %v3379_v17  ;;  %v6043_v53 = vpop.f32.mrb[125].mxu1  ;;  %v6411_v17 = vld [vmem:[%s8009_s8 + $0x18] sm:$0xff]   ;;  %v4009_v19 = vrot.slane %v6412_v23, 2 }
 0xbb1   :  { %v3490_v2 = vpop.f32.mrb[126].mxu1  ;;  %v4007_v20 = vrot.slane %v6411_v17, 2  ;;  %v6419_v23 = vld [vmem:[%s8009_s8 + $0x58] sm:$0xff]  }
 0xbb2   :  { %v3499_v58 = vadd.f32 %v5158_v49, %v3493_v50  ;;  %v6044_v1 = vpop.f32.mrb[127].mxu1  ;;  %v6413_v50 = vld [vmem:[%s8009_s8 + $0x28] sm:$0xff]  }
 0xbb3   :  { %v4008_v22 = vsel %vm2272_vm10, %v4005_v32, %v4007_v20  ;;  %v4010_v49 = vsel %vm2272_vm10, %v4007_v20, %v4009_v19  ;;  %v4011_v53 = vrot.slane %v6413_v50, 2  ;;  %v6417_v20 = vld [vmem:[%s8009_s8 + $0x48] sm:$0xff]   ;;  %v6422_v50 = vld [vmem:[%s8009_s8 + $0x70] sm:$0xff]  }
 0xbb4   :  { %vm3500_vm15 = vcmp.ge.f32.partialorder %v3499_v58, 0.0  ;;  %v3501_v3 = vmul.f32 0.01, %v3499_v58 }
 0xbb5   :  { %v4012_v2 = vsel %vm2272_vm10, %v4009_v19, %v4011_v53  ;;  %v6420_v19 = vld [vmem:[%s8009_s8 + $0x60] sm:$0xff]  }
 0xbb6   :  { %v3502_v44 = vsel %vm3500_vm15, %v3499_v58, %v3501_v3  ;;  %v6414_v58 = vld [vmem:[%s8009_s8 + $0x30] sm:$0xff]  }
 0xbb7   :  { %v3503_v38 = vpack.c.bf16 %v3502_v44, %v3502_v44  ;;  %v4013_v1 = vrot.slane %v6414_v58, 2  ;;  %v6415_v44 = vld [vmem:[%s8009_s8 + $0x38] sm:$0xff]   ;;  %v5193_v58 = vld [vmem:[%s8006_s7 + $0x8] ss:$0 sm:$0xff] }
 0xbb9   :  { %v3510_v7 = vsel %vm3161_vm13, %v3503_v38, 0  ;;  %v4014_v3 = vsel %vm2272_vm10, %v4011_v53, %v4013_v1  ;;  %v4015_v38 = vrot.slane %v6415_v44, 2  ;;  %v6423_v53 = vld [vmem:[%s8009_s8 + $0x78] sm:$0xff]  }
 0xbba   :  { %6046 = vmatpush3.bf16.msra.mxu0 %v3510_v7 }
 0xbbb   :  { %6051 = vmatprep.subr.bf16.mxu0 %v6478_v0 }
 0xbbd   :  { %6048 = vmatmul.mubr.msk.bf16.vlgmr.msra.gmra.mrb[128].mxu0 %vm2868_vm3, %v5159_v24  ;;  %v4029_v24 = vsel %vm2272_vm10, %v4015_v38, 0 }
 0xbbe   :  { %6052 = vmatpush3.bf16.msra.mxu0 %v3510_v7  ;;  %6053 = vmatprep.mubr.msk.bf16.mxu0 %vm6479_vm0, %v6478_v0 }
 0xbbf   :  { %6063 = vmatprep.subr.bf16.mxu0 %v6478_v0 }
 0xbc5   :  { %6054 = vmatmul.mubr.msk.bf16.vlgmr.msra.gmra.mrb[132].mxu0 %vm2868_vm3, %v5161_v4  ;;  %v4075_v4 = vsel %vm3041_vm12, %v3944_v9, 0 }
 0xbc6   :  { %6065 = vmatprep.mubr.msk.bf16.mxu0 %vm6479_vm0, %v6478_v0  ;;  %6064 = vmatpush3.bf16.msra.mxu0 %v6404_v48  ;;  %v3960_v48 = vld [vmem:[%s8010_s1] sm:$0x1] }
 0xbc7   :  { %6075 = vmatprep.subr.bf16.mxu0 %v6478_v0 }
 0xc90   :  { %v3546_v21 = vpop.f32.mrb[128].mxu0 }
 0xc91   :  { %v3554_v25 = vpack.c.bf16 %v3546_v21, %v3546_v21  ;;  %v6049_v26 = vpop.f32.mrb[129].mxu0 }
 0xc92   :  { %v3549_v27 = vpop.f32.mrb[130].mxu0 }
 0xc93   :  { %v6050_v47 = vpop.f32.mrb[131].mxu0  ;;  %6066 = vmatmul.mubr.msk.bf16.vlgmr.msra.gmra.mrb[136].mxu0 %vm2872_vm5, %v3554_v25 }
 0xc94   :  { %6077 = vmatprep.mubr.msk.bf16.mxu0 %vm6479_vm0, %v6478_v0  ;;  %6076 = vmatpush3.bf16.msra.mxu0 %v6406_v34 }
 0xc95   :  { %6087 = vmatprep.subr.bf16.mxu0 %v6478_v0 }
 0xc98   :  { %v3594_v28 = vpop.f32.mrb[132].mxu0 }
 0xc99   :  { %v3603_v60 = vpack.c.bf16 %v3594_v28, %v3594_v28  ;;  %v6055_v30 = vpop.f32.mrb[133].mxu0  ;;  %v5181_v28 = vld [vmem:[%s8006_s7 + $0x3] ss:$0 sm:$0xff] }
 0xc9a   :  { %v3597_v52 = vpop.f32.mrb[134].mxu0 }
 0xc9b   :  { %6060 = vmatmul.mubr.msk.bf16.vlgmr.msra.gmra.mrb[128].mxu1 %vm2872_vm5, %v3603_v60  ;;  %v6056_v51 = vpop.f32.mrb[135].mxu0 }
 0xc9c   :  { %6070 = vmatpush3.bf16.msra.mxu1 %v3510_v7  ;;  %6071 = vmatprep.mubr.msk.bf16.mxu1 %vm6479_vm0, %v6478_v0 }
 0xc9d   :  { %6081 = vmatprep.subr.bf16.mxu1 %v6478_v0 }
 0xca3   :  { %6072 = vmatmul.mubr.msk.bf16.vlgmr.msra.gmra.mrb[132].mxu1 %vm2868_vm3, %v5169_v46 }
 0xca4   :  { %6082 = vmatpush3.bf16.msra.mxu1 %v3510_v7  ;;  %6083 = vmatprep.mubr.msk.bf16.mxu1 %vm6479_vm0, %v6478_v0  ;;  %v4016_v7 = vsel %vm2272_vm10, %v4013_v1, %v4015_v38 }
 0xca5   :  { %6093 = vmatprep.subr.bf16.mxu1 %v6478_v0 }
 0xcab   :  { %6084 = vmatmul.mubr.msk.bf16.vlgmr.msra.gmra.mrb[136].mxu1 %vm2868_vm3, %v5175_v55 }
 0xcac   :  { %6109 = vmatprep.mubr.msk.bf16.mxu1 %vm6479_vm0, %v6478_v0  ;;  %6094 = vmatpush3.bf16.msra.mxu1 %v4004_v14 }
 0xcad   :  { %6095 = vmatprep.subr.bf16.mxu1 %v6478_v0 }
 0xcb0   :  { %6096 = vmatpush3.bf16.msra.mxu1 %v4006_v16 }
 0xcb1   :  { %6097 = vmatprep.subr.bf16.mxu1 %v6478_v0 }
 0xcb4   :  { %6098 = vmatpush3.bf16.msra.mxu1 %v4008_v22  ;;  %v6418_v22 = vld [vmem:[%s8009_s8 + $0x50] sm:$0xff]  }
 0xcb5   :  { %6099 = vmatprep.subr.bf16.mxu1 %v6478_v0 }
 0xcb8   :  { %6100 = vmatpush3.bf16.msra.mxu1 %v4010_v49  ;;  %v6421_v49 = vld [vmem:[%s8009_s8 + $0x68] sm:$0xff]  }
 0xcb9   :  { %6101 = vmatprep.subr.bf16.mxu1 %v6478_v0 }
 0xcbc   :  { %6102 = vmatpush3.bf16.msra.mxu1 %v4012_v2 }
 0xcbd   :  { %6103 = vmatprep.subr.bf16.mxu1 %v6478_v0 }
 0xcc0   :  { %6104 = vmatpush3.bf16.msra.mxu1 %v4014_v3 }
 0xcc1   :  { %6105 = vmatprep.subr.bf16.mxu1 %v6478_v0 }
 0xcc4   :  { %6106 = vmatpush3.bf16.msra.mxu1 %v4016_v7 }
 0xcc5   :  { %6107 = vmatprep.subr.bf16.mxu1 %v6478_v0 }
 0xcc8   :  { %6108 = vmatpush3.bf16.msra.mxu1 %v4029_v24 }
 0xcc9   :  { %6139 = vmatprep.subr.bf16.mxu1 %v6478_v0 }
 0xccb   :  { %6110 = vmatmul.mubr.msk.bf16.vlgmr.msra.gmra.mrb[140].mxu1 %vm4024_vm14, %v3960_v48 }
 0xccc   :  { %6155 = vmatprep.mubr.msk.bf16.mxu1 %vm6479_vm0, %v6478_v0 }
 0xd66   :  { %v3696_v59 = vpop.f32.mrb[136].mxu0 }
 0xd67   :  { %v6067_v35 = vpop.f32.mrb[137].mxu0 }
 0xd68   :  { %v3699_v36 = vpop.f32.mrb[138].mxu0 }
 0xd69   :  { %v6068_v56 = vpop.f32.mrb[139].mxu0 }
 0xd6e   :  { %v3647_v57 = vpop.f32.mrb[128].mxu1 }
 0xd6f   :  { %v7746_v37 = vadd.f32 %v3696_v59, %v3647_v57  ;;  %v6061_v63 = vpop.f32.mrb[129].mxu1 }
 0xd70   :  { %v3650_v62 = vpop.f32.mrb[130].mxu1 }
 0xd71   :  { %v6062_v29 = vpop.f32.mrb[131].mxu1 }
 0xd76   :  { %v3741_v6 = vpop.f32.mrb[132].mxu1 }
 0xd77   :  { %v3750_v5 = vpack.c.bf16 %v3741_v6, %v3741_v6  ;;  %v6073_v39 = vpop.f32.mrb[133].mxu1 }
 0xd78   :  { %v3744_v40 = vpop.f32.mrb[134].mxu1 }
 0xd79   :  { %6078 = vmatmul.mubr.msk.bf16.vlgmr.msra.gmra.mrb[140].mxu0 %vm2872_vm5, %v3750_v5  ;;  %v6074_v42 = vpop.f32.mrb[135].mxu1 }
 0xd7a   :  { %6088 = vmatpush3.bf16.msra.mxu0 %v6407_v33  ;;  %6089 = vmatprep.mubr.msk.bf16.mxu0 %vm6479_vm0, %v6478_v0 }
 0xd7b   :  { %6113 = vmatprep.subr.bf16.mxu0 %v6478_v0 }
 0xd7e   :  { %v3840_v43 = vpop.f32.mrb[136].mxu1 }
 0xd7f   :  { %v3849_v54 = vpack.c.bf16 %v3840_v43, %v3840_v43  ;;  %v6085_v61 = vpop.f32.mrb[137].mxu1 }
 0xd80   :  { %v3843_v41 = vpop.f32.mrb[138].mxu1 }
 0xd81   :  { %6090 = vmatmul.mubr.msk.bf16.vlgmr.msra.gmra.mrb[144].mxu0 %vm2872_vm5, %v3849_v54  ;;  %v6086_v45 = vpop.f32.mrb[139].mxu1 }
 0xd82   :  { %6115 = vmatprep.mubr.msk.bf16.mxu0 %vm6479_vm0, %v6478_v0  ;;  %6114 = vmatpush3.bf16.msra.mxu0 %v4075_v4  ;;  %v3909_v45 = vld [vmem:[%s8006_s7 + $0x6] sm:$0x1] }
 0xd83   :  { %6119 = vmatprep.subr.bf16.mxu0 %v6478_v0 }
 0xd9e   :  { %v4065_v15 = vpop.f32.mrb[140].mxu1 }
 0xd9f   :  { %v6111_v32 = vpop.f32.mrb[141].mxu1 }
 0xda0   :  { %v4068_v16 = vpop.f32.mrb[142].mxu1 }
 0xda1   :  { %v6112_v17 = vpop.f32.mrb[143].mxu1 }
 0xe4c   :  { %v3794_v13 = vpop.f32.mrb[140].mxu0 }
 0xe4d   :  { %v3800_v21 = vadd.f32 %v3794_v13, %v7746_v37  ;;  %v6079_v25 = vpop.f32.mrb[141].mxu0 }
 0xe4e   :  { %v3797_v26 = vpop.f32.mrb[142].mxu0 }
 0xe4f   :  { %v6080_v27 = vpop.f32.mrb[143].mxu0 }
 0xe54   :  { %v3893_v47 = vpop.f32.mrb[144].mxu0 }
 0xe55   :  { %v3899_v60 = vadd.f32 %v3893_v47, %v3800_v21  ;;  %v6091_v30 = vpop.f32.mrb[145].mxu0 }
 0xe56   :  { %v3896_v52 = vpop.f32.mrb[146].mxu0 }
 0xe57   :  { %v3905_v51 = vadd.f32 %v5181_v28, %v3899_v60  ;;  %v6092_v46 = vpop.f32.mrb[147].mxu0 }
 0xe59   :  { %vm3906_vm10 = vcmp.ge.f32.partialorder %v3905_v51, 0.0  ;;  %v3907_v55 = vmul.f32 0.01, %v3905_v51 }
 0xe5b   :  { %v3908_v34 = vsel %vm3906_vm10, %v3905_v51, %v3907_v55 }
 0xe5c   :  { %v3912_v59 = vsel %vm3911_vm1, %v3908_v34, 0.0 }
 0xe5d   :  { %v3913_v35 = vrot.slane %v3912_v59, 4 }
 0xe5f   :  { %v3914_v36 = vadd.f32 %v3913_v35, %v3912_v59 }
 0xe61   :  { %v3915_v56 = vrot.slane %v3914_v36, 2 }
 0xe63   :  { %v3916_v57 = vadd.f32 %v3915_v56, %v3914_v36 }
 0xe65   :  { %v3917_v37 = vrot.slane %v3916_v57, 1 }
 0xe67   :  { %v3918_v63 = vadd.f32 %v3917_v37, %v3916_v57  ;;  %v5194_v57 = vld [vmem:[%s8006_s7 + $0xc] ss:$0 sm:$0xff] }
 0xe69   :  { %v3919_v62 = vmul.f32 0.5, %v3918_v63  ;;  %v5195_v63 = vld [vmem:[%s8006_s7 + $0x10] ss:$0 sm:$0xff] }
 0xe6b   :  { %v3920_v29 = vsub.f32 %v3908_v34, %v3919_v62 }
 0xe6d   :  { %v3921_v6 = vmul.f32 %v3920_v29, %v3920_v29 }
 0xe6f   :  { %v3922_v33 = vsel %vm3911_vm1, %v3921_v6, 0.0 }
 0xe70   :  { %v3923_v5 = vrot.slane %v3922_v33, 4 }
 0xe72   :  { %v3924_v39 = vadd.f32 %v3923_v5, %v3922_v33  ;;  %v6424_v33 = vld [vmem:[%s8009_s8 + $0x80] sm:$0xff]   ;;  %v6425_v5 = vld [vmem:[%s8009_s8 + $0x88] sm:$0xff]  }
 0xe73   :  { %6140 = vmatpush3.bf16.msra.mxu1 %v6424_v33 }
 0xe74   :  { %v3925_v40 = vrot.slane %v3924_v39, 2  ;;  %6141 = vmatprep.subr.bf16.mxu1 %v6478_v0 }
 0xe76   :  { %v3926_v42 = vadd.f32 %v3925_v40, %v3924_v39  ;;  %v6426_v39 = vld [vmem:[%s8009_s8 + $0x90] sm:$0xff]   ;;  %v6427_v40 = vld [vmem:[%s8009_s8 + $0x98] sm:$0xff]  }
 0xe77   :  { %6142 = vmatpush3.bf16.msra.mxu1 %v6425_v5 }
 0xe78   :  { %v3927_v43 = vrot.slane %v3926_v42, 1  ;;  %6143 = vmatprep.subr.bf16.mxu1 %v6478_v0 }
 0xe7a   :  { %v3928_v54 = vadd.f32 %v3927_v43, %v3926_v42  ;;  %v6428_v42 = vld [vmem:[%s8009_s8 + $0xa0] sm:$0xff]   ;;  %v6429_v43 = vld [vmem:[%s8009_s8 + $0xa8] sm:$0xff]  }
 0xe7b   :  { %6144 = vmatpush3.bf16.msra.mxu1 %v6426_v39 }
 0xe7c   :  { %v3929_v61 = vmul.f32 0.5, %v3928_v54  ;;  %6145 = vmatprep.subr.bf16.mxu1 %v6478_v0  ;;  %v6430_v54 = vld [vmem:[%s8009_s8 + $0xb0] sm:$0xff]  }
 0xe7e   :  { %v3930_v41 = vadd.f32 1e-05, %v3929_v61  ;;  %v6431_v61 = vld [vmem:[%s8009_s8 + $0xb8] sm:$0xff]  }
 0xe7f   :  { %6146 = vmatpush3.bf16.msra.mxu1 %v6427_v40 }
 0xe80   :  { %6450 = vrsqrt.f32 %v3930_v41  ;;  %6147 = vmatprep.subr.bf16.mxu1 %v6478_v0  ;;  %v5212_v41 = vld [vmem:[%s8006_s7 + $0x9] ss:$0 sm:$0xff] }
 0xe83   :  { %6148 = vmatpush3.bf16.msra.mxu1 %v6428_v42 }
 0xe84   :  { %6149 = vmatprep.subr.bf16.mxu1 %v6478_v0 }
 0xe87   :  { %6150 = vmatpush3.bf16.msra.mxu1 %v6429_v43 }
 0xe88   :  { %6151 = vmatprep.subr.bf16.mxu1 %v6478_v0 }
 0xe8a   :  { %v6451_v9 = vpop.eup %6450 }
 0xe8b   :  { %v3932_v18 = vmul.f32 %v6451_v9, %v3909_v45  ;;  %6152 = vmatpush3.bf16.msra.mxu1 %v6430_v54 }
 0xe8c   :  { %6153 = vmatprep.subr.bf16.mxu1 %v6478_v0 }
 0xe8d   :  { %v3936_v11 = vrot.slane %v3932_v18, %v7520_v8  ;;  %v6416_v8 = vld [vmem:[%s8009_s8 + $0x40] sm:$0xff]  }
 0xe8f   :  { %v3937_v31 = vmul.f32 %v3936_v11, %v3920_v29  ;;  %6154 = vmatpush3.bf16.msra.mxu1 %v6431_v61 }
 0xe90   :  { %6179 = vmatprep.subr.bf16.mxu1 %v6478_v0 }
 0xe91   :  { %v3942_v10 = vadd.f32 %v5182_v12, %v3937_v31 }
 0xe93   :  { %v3943_v14 = vpack.c.bf16 %v3942_v10, %v3942_v10 }
 0xe95   :  { %6116 = vmatmul.mubr.msk.bf16.vlgmr.msra.gmra.mrb[148].mxu0 %vm2866_vm2, %v3943_v14 }
 0xe96   :  { %6135 = vmatprep.mubr.msk.bf16.mxu0 %vm6479_vm0, %v6478_v0  ;;  %6120 = vmatpush3.bf16.msra.mxu0 %v6416_v8 }
 0xe97   :  { %6121 = vmatprep.subr.bf16.mxu0 %v6478_v0 }
 0xe9a   :  { %6122 = vmatpush3.bf16.msra.mxu0 %v6417_v20 }
 0xe9b   :  { %6123 = vmatprep.subr.bf16.mxu0 %v6478_v0 }
 0xe9e   :  { %6124 = vmatpush3.bf16.msra.mxu0 %v6418_v22 }
 0xe9f   :  { %6125 = vmatprep.subr.bf16.mxu0 %v6478_v0 }
 0xea2   :  { %6126 = vmatpush3.bf16.msra.mxu0 %v6419_v23 }
 0xea3   :  { %6127 = vmatprep.subr.bf16.mxu0 %v6478_v0 }
 0xea6   :  { %6128 = vmatpush3.bf16.msra.mxu0 %v6420_v19 }
 0xea7   :  { %6129 = vmatprep.subr.bf16.mxu0 %v6478_v0 }
 0xeaa   :  { %6130 = vmatpush3.bf16.msra.mxu0 %v6421_v49 }
 0xeab   :  { %6131 = vmatprep.subr.bf16.mxu0 %v6478_v0 }
 0xeae   :  { %6132 = vmatpush3.bf16.msra.mxu0 %v6422_v50 }
 0xeaf   :  { %6133 = vmatprep.subr.bf16.mxu0 %v6478_v0 }
 0xeb2   :  { %6134 = vmatpush3.bf16.msra.mxu0 %v6423_v53 }
 0xeb3   :  { %6159 = vmatprep.subr.bf16.mxu0 %v6478_v0 }
 0xf68   :  { %v4111_v2 = vpop.f32.mrb[148].mxu0 }
 0xf69   :  { %v4112_v1 = vadd.f32 %v4111_v2, %v4065_v15  ;;  %v6117_v3 = vpop.f32.mrb[149].mxu0 }
 0xf6a   :  { %v4114_v44 = vpop.f32.mrb[150].mxu0 }
 0xf6b   :  { %v4122_v38 = vadd.f32 %v5193_v58, %v4112_v1  ;;  %v6118_v7 = vpop.f32.mrb[151].mxu0 }
 0xf6c   :  { %v5221_v7 = vld [vmem:[%s8006_s7 + $0xd] ss:$0 sm:$0xff] }
 0xf6d   :  { %v4123_v24 = vmax.f32 %v4122_v38, 0.0 }
 0xf6f   :  { %v4124_v4 = vsel %vm3041_vm12, %v4123_v24, 0.0 }
 0xf70   :  { %v4125_v48 = vrot.slane %v4124_v4, 4 }
 0xf72   :  { %v4126_v13 = vadd.f32 %v4125_v48, %v4124_v4  ;;  %v5222_v4 = vld [vmem:[%s8006_s7 + $0x11] ss:$0 sm:$0xff] }
 0xf74   :  { %v4127_v21 = vrot.slane %v4126_v13, 2 }
 0xf76   :  { %v4128_v25 = vadd.f32 %v4127_v21, %v4126_v13 }
 0xf78   :  { %v4129_v26 = vrot.slane %v4128_v25, 1 }
 0xf7a   :  { %v4130_v27 = vadd.f32 %v4129_v26, %v4128_v25  ;;  %v6432_v25 = vld [vmem:[%s8009_s8 + $0xc0] sm:$0xff]   ;;  %v6433_v26 = vld [vmem:[%s8009_s8 + $0xc8] sm:$0xff]  }
 0xf7c   :  { %v4131_v47 = vmul.f32 0.5, %v4130_v27  ;;  %v6434_v27 = vld [vmem:[%s8009_s8 + $0xd0] sm:$0xff]  }
 0xf7e   :  { %v4132_v28 = vsub.f32 %v4123_v24, %v4131_v47  ;;  %v6435_v47 = vld [vmem:[%s8009_s8 + $0xd8] sm:$0xff]  }
 0xf80   :  { %v4133_v60 = vmul.f32 %v4132_v28, %v4132_v28 }
 0xf82   :  { %v4134_v30 = vsel %vm3041_vm12, %v4133_v60, 0.0  ;;  %v6437_v60 = vld [vmem:[%s8009_s8 + $0xe8] sm:$0xff]  }
 0xf83   :  { %v4135_v52 = vrot.slane %v4134_v30, 4 }
 0xf85   :  { %v4136_v51 = vadd.f32 %v4135_v52, %v4134_v30  ;;  %v6438_v30 = vld [vmem:[%s8009_s8 + $0xf0] sm:$0xff]   ;;  %v6439_v52 = vld [vmem:[%s8009_s8 + $0xf8] sm:$0xff]  }
 0xf87   :  { %v4137_v46 = vrot.slane %v4136_v51, 2 }
 0xf89   :  { %v4138_v55 = vadd.f32 %v4137_v46, %v4136_v51  ;;  %v5239_v51 = vld [vmem:[%s8006_s7 + $0xa] ss:$0 sm:$0xff] }
 0xf8b   :  { %v4139_v34 = vrot.slane %v4138_v55, 1 }
 0xf8d   :  { %v4140_v59 = vadd.f32 %v4139_v34, %v4138_v55 }
 0xf8f   :  { %v4141_v35 = vmul.f32 0.5, %v4140_v59 }
 0xf91   :  { %v4142_v36 = vadd.f32 1e-05, %v4141_v35 }
 0xf93   :  { %6452 = vrsqrt.f32 %v4142_v36 }
 0xf9d   :  { %v6453_v56 = vpop.eup %6452 }
 0xf9e   :  { %v4144_v37 = vmul.f32 %v6453_v56, %v4132_v28  ;;  %v6436_v28 = vld [vmem:[%s8009_s8 + $0xe0] sm:$0xff]  }
 0xfa0   :  { %v4150_v62 = vmul.f32 %v5194_v57, %v4144_v37 }
 0xfa2   :  { %v4156_v29 = vadd.f32 %v5195_v63, %v4150_v62 }
 0xfa4   :  { %v4174_v6 = vpack.c.bf16 %v4156_v29, %v4156_v29 }
 0xfa6   :  { %6136 = vmatmul.mubr.bf16.vlgmr.msra.gmra.mrb[152].mxu0 %v4174_v6 }
 0xfa7   :  { %6175 = vmatprep.mubr.msk.bf16.mxu0 %vm6479_vm0, %v6478_v0  ;;  %6160 = vmatpush3.bf16.msra.mxu0 %v6432_v25 }
 0xfa8   :  { %6161 = vmatprep.subr.bf16.mxu0 %v6478_v0 }
 0xfab   :  { %6162 = vmatpush3.bf16.msra.mxu0 %v6433_v26 }
 0xfac   :  { %6163 = vmatprep.subr.bf16.mxu0 %v6478_v0 }
 0xfaf   :  { %6164 = vmatpush3.bf16.msra.mxu0 %v6434_v27 }
 0xfb0   :  { %6165 = vmatprep.subr.bf16.mxu0 %v6478_v0 }
 0xfb3   :  { %6166 = vmatpush3.bf16.msra.mxu0 %v6435_v47 }
 0xfb4   :  { %6167 = vmatprep.subr.bf16.mxu0 %v6478_v0 }
 0xfb7   :  { %6168 = vmatpush3.bf16.msra.mxu0 %v6436_v28 }
 0xfb8   :  { %6169 = vmatprep.subr.bf16.mxu0 %v6478_v0 }
 0xfbb   :  { %6170 = vmatpush3.bf16.msra.mxu0 %v6437_v60 }
 0xfbc   :  { %6171 = vmatprep.subr.bf16.mxu0 %v6478_v0 }
 0xfbf   :  { %6172 = vmatpush3.bf16.msra.mxu0 %v6438_v30 }
 0xfc0   :  { %6173 = vmatprep.subr.bf16.mxu0 %v6478_v0 }
 0xfc3   :  { %6174 = vmatpush3.bf16.msra.mxu0 %v6439_v52 }
0x1079   :  { %v4262_v45 = vpop.f32.mrb[152].mxu0 }
0x107a   :  { %v4263_v9 = vadd.f32 %v5212_v41, %v4262_v45  ;;  %v6137_v18 = vpop.f32.mrb[153].mxu0 }
0x107b   :  { %v4265_v11 = vpop.f32.mrb[154].mxu0 }
0x107c   :  { %v4268_v12 = vmax.f32 %v4263_v9, 0.0  ;;  %v6138_v31 = vpop.f32.mrb[155].mxu0 }
0x107e   :  { %v4269_v10 = vsel %vm3041_vm12, %v4268_v12, 0.0 }
0x107f   :  { %v4270_v14 = vrot.slane %v4269_v10, 4 }
0x1081   :  { %v4271_v15 = vadd.f32 %v4270_v14, %v4269_v10  ;;  %v5249_v10 = vld [vmem:[%s8006_s7 + $0x12] ss:$0 sm:$0xff] }
0x1083   :  { %v4272_v32 = vrot.slane %v4271_v15, 2 }
0x1085   :  { %v4273_v16 = vadd.f32 %v4272_v32, %v4271_v15 }
0x1087   :  { %v4274_v17 = vrot.slane %v4273_v16, 1 }
0x1089   :  { %v4275_v8 = vadd.f32 %v4274_v17, %v4273_v16  ;;  %v6440_v16 = vld [vmem:[%s8009_s8 + $0x100] sm:$0xff]   ;;  %v6441_v17 = vld [vmem:[%s8009_s8 + $0x108] sm:$0xff]  }
0x108b   :  { %v4276_v20 = vmul.f32 0.5, %v4275_v8  ;;  %v6442_v8 = vld [vmem:[%s8009_s8 + $0x110] sm:$0xff]  }
0x108d   :  { %v4277_v22 = vsub.f32 %v4268_v12, %v4276_v20  ;;  %v5248_v12 = vld [vmem:[%s8006_s7 + $0xe] ss:$0 sm:$0xff]  ;;  %v6443_v20 = vld [vmem:[%s8009_s8 + $0x118] sm:$0xff]  }
0x108f   :  { %v4278_v23 = vmul.f32 %v4277_v22, %v4277_v22 }
0x1091   :  { %v4279_v19 = vsel %vm3041_vm12, %v4278_v23, 0.0  ;;  %v6445_v23 = vld [vmem:[%s8009_s8 + $0x128] sm:$0xff]  }
0x1092   :  { %v4280_v49 = vrot.slane %v4279_v19, 4 }
0x1094   :  { %v4281_v50 = vadd.f32 %v4280_v49, %v4279_v19  ;;  %v6446_v19 = vld [vmem:[%s8009_s8 + $0x130] sm:$0xff]   ;;  %v6447_v49 = vld [vmem:[%s8009_s8 + $0x138] sm:$0xff]  }
0x1096   :  { %v4282_v53 = vrot.slane %v4281_v50, 2 }
0x1098   :  { %v4283_v2 = vadd.f32 %v4282_v53, %v4281_v50  ;;  %v5266_v50 = vld [vmem:[%s8006_s7 + $0xb] ss:$0 sm:$0xff] }
0x109a   :  { %v4284_v58 = vrot.slane %v4283_v2, 1 }
0x109c   :  { %v4285_v1 = vadd.f32 %v4284_v58, %v4283_v2 }
0x109e   :  { %v4286_v3 = vmul.f32 0.5, %v4285_v1 }
0x10a0   :  { %v4287_v44 = vadd.f32 1e-05, %v4286_v3 }
0x10a2   :  { %6454 = vrsqrt.f32 %v4287_v44 }
0x10ac   :  { %v6455_v38 = vpop.eup %6454 }
0x10ad   :  { %v4289_v24 = vmul.f32 %v6455_v38, %v4277_v22  ;;  %v6444_v22 = vld [vmem:[%s8009_s8 + $0x120] sm:$0xff]  }
0x10af   :  { %v4295_v48 = vmul.f32 %v5221_v7, %v4289_v24 }
0x10b1   :  { %v4301_v13 = vadd.f32 %v5222_v4, %v4295_v48 }
0x10b3   :  { %v4319_v21 = vpack.c.bf16 %v4301_v13, %v4301_v13 }
0x10b5   :  { %6156 = vmatmul.mubr.bf16.vlgmr.msra.gmra.mrb[144].mxu1 %v4319_v21 }
0x10b6   :  { %6195 = vmatprep.mubr.msk.bf16.mxu1 %vm6479_vm0, %v6478_v0  ;;  %6180 = vmatpush3.bf16.msra.mxu1 %v6440_v16  ;;  %vm4703_vm0 = vcmask 1024  }
0x10b7   :  { %6181 = vmatprep.subr.bf16.mxu1 %v6478_v0 }
0x10ba   :  { %6182 = vmatpush3.bf16.msra.mxu1 %v6441_v17 }
0x10bb   :  { %6183 = vmatprep.subr.bf16.mxu1 %v6478_v0 }
0x10be   :  { %6184 = vmatpush3.bf16.msra.mxu1 %v6442_v8 }
0x10bf   :  { %6185 = vmatprep.subr.bf16.mxu1 %v6478_v0 }
0x10c2   :  { %6186 = vmatpush3.bf16.msra.mxu1 %v6443_v20 }
0x10c3   :  { %6187 = vmatprep.subr.bf16.mxu1 %v6478_v0 }
0x10c6   :  { %6188 = vmatpush3.bf16.msra.mxu1 %v6444_v22 }
0x10c7   :  { %6189 = vmatprep.subr.bf16.mxu1 %v6478_v0 }
0x10ca   :  { %6190 = vmatpush3.bf16.msra.mxu1 %v6445_v23 }
0x10cb   :  { %6191 = vmatprep.subr.bf16.mxu1 %v6478_v0 }
0x10ce   :  { %6192 = vmatpush3.bf16.msra.mxu1 %v6446_v19 }
0x10cf   :  { %6193 = vmatprep.subr.bf16.mxu1 %v6478_v0 }
0x10d2   :  { %6194 = vmatpush3.bf16.msra.mxu1 %v6447_v49 }
0x1188   :  { %v4407_v46 = vpop.f32.mrb[144].mxu1 }
0x1189   :  { %v4408_v55 = vadd.f32 %v5239_v51, %v4407_v46  ;;  %v6157_v34 = vpop.f32.mrb[145].mxu1 }
0x118a   :  { %v4410_v59 = vpop.f32.mrb[146].mxu1 }
0x118b   :  { %v4413_v35 = vmax.f32 %v4408_v55, 0.0  ;;  %v6158_v36 = vpop.f32.mrb[147].mxu1  ;;  %v5275_v59 = vld [vmem:[%s8006_s7 + $0xf] ss:$0 sm:$0xff] }
0x118c   :  { %v5276_v36 = vld [vmem:[%s8006_s7 + $0x13] ss:$0 sm:$0xff] }
0x118d   :  { %v4414_v56 = vsel %vm3041_vm12, %v4413_v35, 0.0 }
0x118e   :  { %v4415_v57 = vrot.slane %v4414_v56, 4 }
0x1190   :  { %v4416_v37 = vadd.f32 %v4415_v57, %v4414_v56 }
0x1192   :  { %v4417_v63 = vrot.slane %v4416_v37, 2 }
0x1194   :  { %v4418_v62 = vadd.f32 %v4417_v63, %v4416_v37  ;;  %v5293_v63 = vld [vmem:[%s8006_s7 + $0x14] ss:$0 sm:$0xff] }
0x1196   :  { %v4419_v29 = vrot.slane %v4418_v62, 1 }
0x1198   :  { %v4420_v6 = vadd.f32 %v4419_v29, %v4418_v62 }
0x119a   :  { %v4421_v33 = vmul.f32 0.5, %v4420_v6 }
0x119c   :  { %v4422_v5 = vsub.f32 %v4413_v35, %v4421_v33 }
0x119e   :  { %v4423_v39 = vmul.f32 %v4422_v5, %v4422_v5 }
0x11a0   :  { %v4424_v40 = vsel %vm3041_vm12, %v4423_v39, 0.0 }
0x11a1   :  { %v4425_v42 = vrot.slane %v4424_v40, 4 }
0x11a3   :  { %v4426_v43 = vadd.f32 %v4425_v42, %v4424_v40 }
0x11a5   :  { %v4427_v54 = vrot.slane %v4426_v43, 2 }
0x11a7   :  { %v4428_v61 = vadd.f32 %v4427_v54, %v4426_v43 }
0x11a9   :  { %v4429_v41 = vrot.slane %v4428_v61, 1 }
0x11ab   :  { %v4430_v45 = vadd.f32 %v4429_v41, %v4428_v61 }
0x11ad   :  { %v4431_v9 = vmul.f32 0.5, %v4430_v45 }
0x11af   :  { %v4432_v18 = vadd.f32 1e-05, %v4431_v9 }
0x11b1   :  { %6456 = vrsqrt.f32 %v4432_v18 }
0x11bb   :  { %v6457_v11 = vpop.eup %6456 }
0x11bc   :  { %v4434_v31 = vmul.f32 %v6457_v11, %v4422_v5 }
0x11be   :  { %v4440_v14 = vmul.f32 %v5248_v12, %v4434_v31 }
0x11c0   :  { %v4446_v15 = vadd.f32 %v5249_v10, %v4440_v14 }
0x11c2   :  { %v4464_v32 = vpack.c.bf16 %v4446_v15, %v4446_v15 }
0x11c4   :  { %6176 = vmatmul.mubr.bf16.vlgmr.msra.gmra.mrb[156].mxu0 %v4464_v32 }
0x1297   :  { %v4552_v53 = vpop.f32.mrb[156].mxu0 }
0x1298   :  { %v4553_v2 = vadd.f32 %v5266_v50, %v4552_v53  ;;  %v6177_v58 = vpop.f32.mrb[157].mxu0 }
0x1299   :  { %v4555_v1 = vpop.f32.mrb[158].mxu0 }
0x129a   :  { %v4558_v3 = vmax.f32 %v4553_v2, 0.0  ;;  %v6178_v44 = vpop.f32.mrb[159].mxu0 }
0x129c   :  { %v4559_v38 = vsel %vm3041_vm12, %v4558_v3, 0.0 }
0x129d   :  { %v4560_v7 = vrot.slane %v4559_v38, 4 }
0x129f   :  { %v4561_v24 = vadd.f32 %v4560_v7, %v4559_v38 }
0x12a1   :  { %v4562_v4 = vrot.slane %v4561_v24, 2 }
0x12a3   :  { %v4563_v48 = vadd.f32 %v4562_v4, %v4561_v24 }
0x12a5   :  { %v4564_v13 = vrot.slane %v4563_v48, 1 }
0x12a7   :  { %v4565_v21 = vadd.f32 %v4564_v13, %v4563_v48 }
0x12a9   :  { %v4566_v0 = vmul.f32 0.5, %v4565_v21 }
0x12ab   :  { %v4567_v25 = vsub.f32 %v4558_v3, %v4566_v0 }
0x12ad   :  { %v4568_v26 = vmul.f32 %v4567_v25, %v4567_v25 }
0x12af   :  { %v4569_v27 = vsel %vm3041_vm12, %v4568_v26, 0.0 }
0x12b0   :  { %v4570_v47 = vrot.slane %v4569_v27, 4 }
0x12b2   :  { %v4571_v28 = vadd.f32 %v4570_v47, %v4569_v27 }
0x12b4   :  { %v4572_v60 = vrot.slane %v4571_v28, 2 }
0x12b6   :  { %v4573_v30 = vadd.f32 %v4572_v60, %v4571_v28 }
0x12b8   :  { %v4574_v52 = vrot.slane %v4573_v30, 1 }
0x12ba   :  { %v4575_v51 = vadd.f32 %v4574_v52, %v4573_v30 }
0x12bc   :  { %v4576_v46 = vmul.f32 0.5, %v4575_v51 }
0x12be   :  { %v4577_v55 = vadd.f32 1e-05, %v4576_v46 }
0x12c0   :  { %6458 = vrsqrt.f32 %v4577_v55 }
0x12ca   :  { %v6459_v34 = vpop.eup %6458 }
0x12cb   :  { %v4579_v35 = vmul.f32 %v6459_v34, %v4567_v25 }
0x12cd   :  { %v4585_v56 = vmul.f32 %v5275_v59, %v4579_v35 }
0x12cf   :  { %v4591_v57 = vadd.f32 %v5276_v36, %v4585_v56 }
0x12d1   :  { %v4609_v37 = vpack.c.bf16 %v4591_v57, %v4591_v57 }
0x12d3   :  { %6196 = vmatmul.mubr.bf16.vlgmr.msra.gmra.mrb[148].mxu1 %v4609_v37 }
0x13a6   :  { %v4697_v62 = vpop.f32.mrb[148].mxu1 }
0x13a7   :  { %v4698_v29 = vadd.f32 %v5293_v63, %v4697_v62  ;;  %v6197_v6 = vpop.f32.mrb[149].mxu1 }
0x13a8   :  { %v4700_v33 = vpop.f32.mrb[150].mxu1 }
0x13a9   :  { %4704 = vst.msk [vmem:[%s8011_s9] sm:$0x3] %vm4703_vm0, %v4698_v29  ;;  %v6198_v5 = vpop.f32.mrb[151].mxu1 }

</bundles_post_ra>
